<compile_context>
chip_gen: v6e
topology: v6e:2x2x1
jax: 0.10.0
libtpu: 0.0.40
codegen_flags: <defaults>
</compile_context>

<pallas_src>
import functools

import jax
import jax.numpy as jnp
import numpy as np
from jax import lax
from jax.experimental import pallas as pl
from jax.experimental.pallas import tpu as pltpu


# ---------------------------------------------------------------------------
# Helpers.
# ---------------------------------------------------------------------------

def _round_up(x, m):
    return (x + m - 1) // m * m


def _out_dim(x):
    """Output spatial size of a 3x3 / stride-2 / pad-1 conv."""
    return (x - 1) // 2 + 1


def _vmem_block_bytes(shape, dtype):
    """VMEM footprint of one buffered block, honoring (sublane, lane) tiling.

    Last two dims round up to the dtype tile: (8,128) f32, (16,128) bf16.
    This is the 17 -> 32 sublane round-up the perf review called out.
    """
    itemsize = np.dtype(dtype).itemsize
    sublane = {4: 8, 2: 16, 1: 32}[itemsize]
    *outer, s, l = shape
    n_outer = 1
    for d in outer:
        n_outer *= int(d)
    return n_outer * _round_up(int(s), sublane) * _round_up(int(l), 128) * itemsize


def _vmem_limit_bytes():
    """Per-generation VMEM limit: v7x has 64 MiB physical, v5e/v6e have 128."""
    try:
        kind = jax.devices()[0].device_kind.lower()
    except Exception:
        kind = ""
    if "v7" in kind or "7x" in kind:
        return 48 * 1024 * 1024
    if "v6" in kind or "v5" in kind:
        return 80 * 1024 * 1024
    return 48 * 1024 * 1024            # unknown chip: stay conservative


def _invariant_spec(block_shape, index_map, single_buffer):
    """BlockSpec for a grid-invariant operand (constant index_map).

    For large blocks request a single buffer: double-buffering an operand that
    never changes across grid steps is pure VMEM waste (matters most on v7x).
    Guarded so a jax without `pipeline_mode` still works.
    """
    if single_buffer:
        try:
            return pl.BlockSpec(block_shape, index_map,
                                pipeline_mode=pl.Buffered(1))
        except TypeError:
            pass
    return pl.BlockSpec(block_shape, index_map)


def _pick_bn(n, *, ho, wo, cin, cout, out_dtype, w_single_buffered, vmem_limit):
    """Batch-block size: largest divisor of n whose buffers fit the budget.

    Preferences (in order):
      1. >= 2 grid steps whenever n >= 2 (keeps both v7x TensorCores busy).
      2. mm = bn*ho*wo a multiple of 256 (full-height 256x256 MXU tiles).
      3. Largest block (amortizes the ~0.35us/step pipeline overhead).
    """
    w_bytes = _vmem_block_bytes((9, cin, cout), jnp.bfloat16)
    w_bytes *= 1 if w_single_buffered else 2
    fixed = w_bytes + 2 * _vmem_block_bytes((1, cout), jnp.float32)
    budget = int(0.70 * vmem_limit)          # headroom for Mosaic scratch etc.

    def fits(bn):
        mm = bn * ho * wo
        total = (2 * _vmem_block_bytes((bn, 4, ho + 1, wo + 1, cin), jnp.bfloat16)
                 + 2 * _vmem_block_bytes((mm, cout), out_dtype)
                 + _vmem_block_bytes((mm, cout), jnp.float32)   # f32 acc scratch
                 + fixed)
        return total <= budget

    divisors = [d for d in range(1, n + 1) if n % d == 0]
    cands = [d for d in divisors if fits(d)]
    if not cands:
        return 1      # smallest possible block; see TODO(synk) in header

    def score(d):
        mm = d * ho * wo
        return (n < 2 or (n // d) >= 2, mm % 256 == 0, d)

    return max(cands, key=score)


# ---------------------------------------------------------------------------
# Fused bf16 "space-to-parity" prep (one pad + one transpose per conv):
#   xq[n, 2r+s, a, b, c] = zero-pad(x_nhwc)[n, 2a+r, 2b+s, c]
# so conv tap (ky,kx) of output (a,b) is xq[n, 2(ky%2)+(kx%2), ky//2+a, kx//2+b].
# ---------------------------------------------------------------------------

def _parity_from_nchw(x_nchw, ho, wo):
    """(N,C,H,W) float -> (N, 4, ho+1, wo+1, C) bf16; cast+pad+transpose fused."""
    n, c, h, w = x_nchw.shape
    hp, wp = 2 * (ho + 1), 2 * (wo + 1)
    xb = x_nchw.astype(jnp.bfloat16)                 # bf16 BEFORE any layout work
    xp = jnp.pad(xb, ((0, 0), (0, 0), (1, hp - h - 1), (1, wp - w - 1)))
    xp = xp.reshape(n, c, ho + 1, 2, wo + 1, 2)      # (n, c, a, r, b, s)
    xq = jnp.transpose(xp, (0, 3, 5, 2, 4, 1))       # NCHW->NHWC folded in here
    return xq.reshape(n, 4, ho + 1, wo + 1, c)


def _parity_from_nhwc(x_nhwc, ho, wo, *, relu=False):
    """(N,H,W,C) bf16 -> (N, 4, ho+1, wo+1, C) bf16 (+ fused ReLU)."""
    n, h, w, c = x_nhwc.shape
    hp, wp = 2 * (ho + 1), 2 * (wo + 1)
    xb = x_nhwc.astype(jnp.bfloat16)
    if relu:
        xb = jnp.maximum(xb, 0)                      # once per element, fused
    xp = jnp.pad(xb, ((0, 0), (1, hp - h - 1), (1, wp - w - 1), (0, 0)))
    xp = xp.reshape(n, ho + 1, 2, wo + 1, 2, c)      # (n, a, r, b, s, c)
    xq = jnp.transpose(xp, (0, 2, 4, 1, 3, 5))
    return xq.reshape(n, 4, ho + 1, wo + 1, c)


# ---------------------------------------------------------------------------
# Kernel.
# ---------------------------------------------------------------------------

def _conv3x3_s2_kernel(x_ref, w_ref, b_ref, o_ref, acc_ref, *,
                       bn, ho, wo, cin, cout, true_wo):
    """One grid step: bn batch planes of a 3x3 / stride-2 / pad-1 conv.

    x_ref:   (bn, 4, ho+1, wo+1, cin)  bf16  parity planes, p = 2*(ky%2)+(kx%2)
    w_ref:   (9, cin, cout)            bf16  taps ordered ky*3+kx
    b_ref:   (1, cout)                 f32
    o_ref:   (bn*ho*wo, cout)          bf16 or f32
    acc_ref: (bn*ho*wo, cout)          f32 VMEM scratch accumulator

    Output columns with w >= true_wo are written as exact zeros so the padded
    output can feed the next conv directly (zero == the real conv's padding).
    """
    mm = bn * ho * wo
    first = True
    for r in range(2):                 # tap row parity (ky % 2)
        for s in range(2):             # tap col parity (kx % 2)
            p = 2 * r + s
            for db in range(2 - s):    # kx // 2; db=1 is the misaligned window
                # Load the (possibly sublane-misaligned) column window once per
                # parity plane; both row taps below share this single relayout.
                win = x_ref[:, p, :, db:db + wo, :]           # (bn, ho+1, wo, cin)
                for da in range(2 - r):                       # ky // 2
                    a = win[:, da:da + ho].reshape(mm, cin)   # wo%16==0 -> layout-preserving
                    w_idx = (2 * da + r) * 3 + (2 * db + s)   # = ky*3 + kx
                    contrib = jnp.dot(a, w_ref[w_idx],
                                      preferred_element_type=jnp.float32)
                    if first:
                        acc_ref[...] = b_ref[...] + contrib   # bias + first tap
                        first = False
                    else:
                        acc_ref[...] += contrib
    out = acc_ref[...]
    if true_wo < wo:
        col = lax.broadcasted_iota(jnp.int32, (bn, ho, wo, cout), 2).reshape(mm, cout)
        out = jnp.where(col < true_wo, out, 0.0)
    o_ref[...] = out.astype(o_ref.dtype)


def _conv3x3_s2_pallas(xq, w_taps_bf16, bias, *, true_wo, out_dtype):
    """Conv on a parity tensor.  Returns (N, ho, wo, Cout) NHWC, wo the
    16-aligned padded width; columns >= true_wo are exact zeros."""
    n, _, hq, wq, cin = xq.shape
    ho, wo = hq - 1, wq - 1
    cout = w_taps_bf16.shape[-1]

    vmem_limit = _vmem_limit_bytes()
    w_single = _vmem_block_bytes((9, cin, cout), jnp.bfloat16) >= (512 * 1024)
    bn = _pick_bn(n, ho=ho, wo=wo, cin=cin, cout=cout, out_dtype=out_dtype,
                  w_single_buffered=w_single, vmem_limit=vmem_limit)
    mm = bn * ho * wo

    kernel = functools.partial(_conv3x3_s2_kernel, bn=bn, ho=ho, wo=wo,
                               cin=cin, cout=cout, true_wo=true_wo)
    flops = 2 * n * ho * wo * 9 * cin * cout
    bytes_accessed = int(xq.size * 2 + w_taps_bf16.size * 2 + cout * 4
                         + n * ho * wo * cout * np.dtype(out_dtype).itemsize)

    out = pl.pallas_call(
        kernel,
        out_shape=jax.ShapeDtypeStruct((n * ho * wo, cout), out_dtype),
        grid=(n // bn,),
        in_specs=[
            pl.BlockSpec((bn, 4, ho + 1, wo + 1, cin),
                         lambda i: (i, 0, 0, 0, 0)),
            _invariant_spec((9, cin, cout), lambda i: (0, 0, 0), w_single),
            _invariant_spec((1, cout), lambda i: (0, 0), w_single),
        ],
        out_specs=pl.BlockSpec((mm, cout), lambda i: (i, 0)),
        scratch_shapes=[pltpu.VMEM((mm, cout), jnp.float32)],
        compiler_params=pltpu.CompilerParams(
            dimension_semantics=("parallel",),
            vmem_limit_bytes=vmem_limit),
        cost_estimate=pl.CostEstimate(flops=flops, transcendentals=0,
                                      bytes_accessed=bytes_accessed),
    )(xq, w_taps_bf16, bias.reshape(1, cout).astype(jnp.float32))

    return out.reshape(n, ho, wo, cout)


# ---------------------------------------------------------------------------
# Module wrapper.
# ---------------------------------------------------------------------------

def _taps_from_oihw(w_oihw):
    """(Cout, Cin, 3, 3) -> (9, Cin, Cout) bf16, tap index = ky*3 + kx."""
    co, ci, kh, kw = w_oihw.shape
    return jnp.transpose(w_oihw, (2, 3, 1, 0)).reshape(kh * kw, ci, co).astype(jnp.bfloat16)


def init_last_level_p6p7_params(key, in_channels, out_channels):
    """c2_xavier_fill: kaiming_uniform_(a=1) => U(-sqrt(3/fan_in), +), bias=0."""
    k6, k7 = jax.random.split(key)
    b6 = float(np.sqrt(3.0 / (in_channels * 9)))
    b7 = float(np.sqrt(3.0 / (out_channels * 9)))
    return {
        "p6_w": jax.random.uniform(k6, (out_channels, in_channels, 3, 3),
                                   jnp.float32, -b6, b6),
        "p6_b": jnp.zeros((out_channels,), jnp.float32),
        "p7_w": jax.random.uniform(k7, (out_channels, out_channels, 3, 3),
                                   jnp.float32, -b7, b7),
        "p7_b": jnp.zeros((out_channels,), jnp.float32),
    }


def last_level_p6p7_forward(params, c5_nchw):
    """Returns [p6, p7] in f32 NCHW, matching the PyTorch module."""
    n, cin, h, w = c5_nchw.shape

    # ---- p6 = conv(c5) ------------------------------------------------------
    ho6, wo6 = _out_dim(h), _out_dim(w)
    wo6_pad = _round_up(wo6, 16)       # keeps the in-kernel flatten layout-friendly
    xq6 = _parity_from_nchw(c5_nchw, ho6, wo6_pad)
    p6_pad = _conv3x3_s2_pallas(xq6, _taps_from_oihw(params["p6_w"]),
                                params["p6_b"], true_wo=wo6,
                                out_dtype=jnp.bfloat16)      # bf16 internal p6

    # ---- p7 = conv(relu(p6)) ------------------------------------------------
    # p6_pad's extra W columns are exact zeros, so it feeds conv2 directly
    # (zeros match the real conv's zero padding) - no crop + re-pad HBM pass.
    ho7, wo7 = _out_dim(ho6), _out_dim(wo6)                  # true p7 dims
    wo7_pad = _round_up(wo7, 16)
    xq7 = _parity_from_nhwc(p6_pad, ho7, wo7_pad, relu=True)
    p7_pad = _conv3x3_s2_pallas(xq7, _taps_from_oihw(params["p7_w"]),
                                params["p7_b"], true_wo=wo7,
                                out_dtype=jnp.float32)       # final output in f32

    # ---- user-facing f32 NCHW copies (one fused crop+transpose+cast each) ---
    p6 = jnp.transpose(p6_pad[:, :, :wo6, :], (0, 3, 1, 2)).astype(jnp.float32)
    p7 = jnp.transpose(p7_pad[:, :, :wo7, :], (0, 3, 1, 2)).astype(jnp.float32)
    return [p6, p7]


def _reference_forward(params, c5):
    """lax.conv reference using the same bf16-operand / f32-accumulate scheme."""
    def conv(x, w, b):
        dn = lax.conv_dimension_numbers(x.shape, w.shape, ("NCHW", "OIHW", "NCHW"))
        y = lax.conv_general_dilated(
            x.astype(jnp.bfloat16), w.astype(jnp.bfloat16), (2, 2),
            ((1, 1), (1, 1)), dimension_numbers=dn,
            preferred_element_type=jnp.float32)
        return y + b[None, :, None, None]
    p6 = conv(c5, params["p6_w"], params["p6_b"])
    p7 = conv(jnp.maximum(p6, 0.0), params["p7_w"], params["p7_b"])
    return [p6, p7]


if __name__ == "__main__":
    key = jax.random.PRNGKey(0)
    k_param, k_x = jax.random.split(key)

    in_channels, out_channels = 4, 8
    N, H, W = 2, 16, 16

    params = init_last_level_p6p7_params(k_param, in_channels, out_channels)
    c5 = jax.random.normal(k_x, (N, in_channels, H, W), jnp.float32)

    p6, p7 = jax.jit(last_level_p6p7_forward)(params, c5)
    jax.block_until_ready(p6)
    jax.block_until_ready(p7)

    r6, r7 = _reference_forward(params, c5)
    np.testing.assert_allclose(np.asarray(p6), np.asarray(r6), rtol=2e-2, atol=2e-2)
    np.testing.assert_allclose(np.asarray(p7), np.asarray(r7), rtol=2e-2, atol=2e-2)

    assert p6.shape == (N, out_channels, H // 2, W // 2)
    assert p7.shape == (N, out_channels, H // 4, W // 4)
    print("KERNEL_OK")
</pallas_src>

<mosaic_0001>
module attributes {stable_mosaic.version = 11 : i64} {
  func.func @_conv3x3_s2_kernel(%arg0: i32, %arg1: memref<1x4x9x17x4xbf16, #tpu.memory_space<vmem>>, %arg2: memref<9x4x8xbf16, #tpu.memory_space<vmem>>, %arg3: memref<1x8xf32, #tpu.memory_space<vmem>>, %arg4: memref<128x8xbf16, #tpu.memory_space<vmem>>, %arg5: memref<128x8xf32, #tpu.memory_space<vmem>>) attributes {dimension_semantics = [#tpu.dimension_semantics<parallel>], iteration_bounds = array<i64: 2>, scalar_prefetch = 0 : i64, scratch_operands = 1 : i64, tpu.core_type = #tpu.core_type<tc>, window_params = [{transform_indices = @transform_0, window_bounds = array<i64: 1, 4, 9, 17, 4>}, {pipeline_mode = #tpu.pipeline_mode<synchronous>, transform_indices = @transform_1, window_bounds = array<i64: 9, 4, 8>}, {pipeline_mode = #tpu.pipeline_mode<synchronous>, transform_indices = @transform_2, window_bounds = array<i64: 1, 8>}, {transform_indices = @transform_3, window_bounds = array<i64: 128, 8>}]} {
    %c0 = arith.constant 0 : index
    %c0_0 = arith.constant 0 : index
    %c0_1 = arith.constant 0 : index
    %c0_2 = arith.constant 0 : index
    %c0_3 = arith.constant 0 : index
    %0 = vector.load %arg1[%c0, %c0_0, %c0_1, %c0_2, %c0_3] : memref<1x4x9x17x4xbf16, #tpu.memory_space<vmem>>, vector<1x1x9x16x4xbf16>
    %1 = vector.shape_cast %0 : vector<1x1x9x16x4xbf16> to vector<1x9x16x4xbf16>
    %2 = vector.extract_strided_slice %1 {offsets = [0, 0, 0, 0], sizes = [1, 8, 16, 4], strides = [1, 1, 1, 1]} : vector<1x9x16x4xbf16> to vector<1x8x16x4xbf16>
    %3 = vector.shape_cast %2 : vector<1x8x16x4xbf16> to vector<128x4xbf16>
    %c0_4 = arith.constant 0 : index
    %c0_5 = arith.constant 0 : index
    %c0_6 = arith.constant 0 : index
    %4 = vector.load %arg2[%c0_4, %c0_5, %c0_6] : memref<9x4x8xbf16, #tpu.memory_space<vmem>>, vector<1x4x8xbf16>
    %5 = vector.shape_cast %4 : vector<1x4x8xbf16> to vector<4x8xbf16>
    %cst = arith.constant dense<0.000000e+00> : vector<128x8xf32>
    %6 = tpu.matmul %3, %5, %cst {dimension_numbers = #tpu.dot_dimension_numbers<[1], [0], [0], [1], [0, 0, 1, 1], [], []>} : vector<128x4xbf16>, vector<4x8xbf16>, vector<128x8xf32> -> vector<128x8xf32>
    %c0_7 = arith.constant 0 : index
    %c0_8 = arith.constant 0 : index
    %7 = vector.load %arg3[%c0_7, %c0_8] : memref<1x8xf32, #tpu.memory_space<vmem>>, vector<1x8xf32>
    %8 = vector.broadcast %7 : vector<1x8xf32> to vector<128x8xf32>
    %9 = arith.addf %8, %6 : vector<128x8xf32>
    %c0_9 = arith.constant 0 : index
    %c0_10 = arith.constant 0 : index
    %10 = vector.load %arg5[%c0_9, %c0_10] : memref<128x8xf32, #tpu.memory_space<vmem>>, vector<128x8xf32>
    tpu.vector_store %arg5[%c0_9, %c0_10], %9 {strides = array<i32>} : memref<128x8xf32, #tpu.memory_space<vmem>>, vector<128x8xf32>,
    %11 = vector.extract_strided_slice %1 {offsets = [0, 1, 0, 0], sizes = [1, 8, 16, 4], strides = [1, 1, 1, 1]} : vector<1x9x16x4xbf16> to vector<1x8x16x4xbf16>
    %12 = vector.shape_cast %11 : vector<1x8x16x4xbf16> to vector<128x4xbf16>
    %c6 = arith.constant 6 : index
    %c0_11 = arith.constant 0 : index
    %c0_12 = arith.constant 0 : index
    %13 = vector.load %arg2[%c6, %c0_11, %c0_12] : memref<9x4x8xbf16, #tpu.memory_space<vmem>>, vector<1x4x8xbf16>
    %14 = vector.shape_cast %13 : vector<1x4x8xbf16> to vector<4x8xbf16>
    %cst_13 = arith.constant dense<0.000000e+00> : vector<128x8xf32>
    %15 = tpu.matmul %12, %14, %cst_13 {dimension_numbers = #tpu.dot_dimension_numbers<[1], [0], [0], [1], [0, 0, 1, 1], [], []>} : vector<128x4xbf16>, vector<4x8xbf16>, vector<128x8xf32> -> vector<128x8xf32>
    %c0_14 = arith.constant 0 : index
    %c0_15 = arith.constant 0 : index
    %16 = vector.load %arg5[%c0_14, %c0_15] : memref<128x8xf32, #tpu.memory_space<vmem>>, vector<128x8xf32>
    %17 = arith.addf %16, %15 : vector<128x8xf32>
    %c0_16 = arith.constant 0 : index
    %c0_17 = arith.constant 0 : index
    %18 = vector.load %arg5[%c0_16, %c0_17] : memref<128x8xf32, #tpu.memory_space<vmem>>, vector<128x8xf32>
    tpu.vector_store %arg5[%c0_16, %c0_17], %17 {strides = array<i32>} : memref<128x8xf32, #tpu.memory_space<vmem>>, vector<128x8xf32>,
    %c0_18 = arith.constant 0 : index
    %c0_19 = arith.constant 0 : index
    %c0_20 = arith.constant 0 : index
    %c1 = arith.constant 1 : index
    %c0_21 = arith.constant 0 : index
    %19 = vector.load %arg1[%c0_18, %c0_19, %c0_20, %c1, %c0_21] : memref<1x4x9x17x4xbf16, #tpu.memory_space<vmem>>, vector<1x1x9x16x4xbf16>
    %20 = vector.shape_cast %19 : vector<1x1x9x16x4xbf16> to vector<1x9x16x4xbf16>
    %21 = vector.extract_strided_slice %20 {offsets = [0, 0, 0, 0], sizes = [1, 8, 16, 4], strides = [1, 1, 1, 1]} : vector<1x9x16x4xbf16> to vector<1x8x16x4xbf16>
    %22 = vector.shape_cast %21 : vector<1x8x16x4xbf16> to vector<128x4xbf16>
    %c2 = arith.constant 2 : index
    %c0_22 = arith.constant 0 : index
    %c0_23 = arith.constant 0 : index
    %23 = vector.load %arg2[%c2, %c0_22, %c0_23] : memref<9x4x8xbf16, #tpu.memory_space<vmem>>, vector<1x4x8xbf16>
    %24 = vector.shape_cast %23 : vector<1x4x8xbf16> to vector<4x8xbf16>
    %cst_24 = arith.constant dense<0.000000e+00> : vector<128x8xf32>
    %25 = tpu.matmul %22, %24, %cst_24 {dimension_numbers = #tpu.dot_dimension_numbers<[1], [0], [0], [1], [0, 0, 1, 1], [], []>} : vector<128x4xbf16>, vector<4x8xbf16>, vector<128x8xf32> -> vector<128x8xf32>
    %c0_25 = arith.constant 0 : index
    %c0_26 = arith.constant 0 : index
    %26 = vector.load %arg5[%c0_25, %c0_26] : memref<128x8xf32, #tpu.memory_space<vmem>>, vector<128x8xf32>
    %27 = arith.addf %26, %25 : vector<128x8xf32>
    %c0_27 = arith.constant 0 : index
    %c0_28 = arith.constant 0 : index
    %28 = vector.load %arg5[%c0_27, %c0_28] : memref<128x8xf32, #tpu.memory_space<vmem>>, vector<128x8xf32>
    tpu.vector_store %arg5[%c0_27, %c0_28], %27 {strides = array<i32>} : memref<128x8xf32, #tpu.memory_space<vmem>>, vector<128x8xf32>,
    %29 = vector.extract_strided_slice %20 {offsets = [0, 1, 0, 0], sizes = [1, 8, 16, 4], strides = [1, 1, 1, 1]} : vector<1x9x16x4xbf16> to vector<1x8x16x4xbf16>
    %30 = vector.shape_cast %29 : vector<1x8x16x4xbf16> to vector<128x4xbf16>
    %c8 = arith.constant 8 : index
    %c0_29 = arith.constant 0 : index
    %c0_30 = arith.constant 0 : index
    %31 = vector.load %arg2[%c8, %c0_29, %c0_30] : memref<9x4x8xbf16, #tpu.memory_space<vmem>>, vector<1x4x8xbf16>
    %32 = vector.shape_cast %31 : vector<1x4x8xbf16> to vector<4x8xbf16>
    %cst_31 = arith.constant dense<0.000000e+00> : vector<128x8xf32>
    %33 = tpu.matmul %30, %32, %cst_31 {dimension_numbers = #tpu.dot_dimension_numbers<[1], [0], [0], [1], [0, 0, 1, 1], [], []>} : vector<128x4xbf16>, vector<4x8xbf16>, vector<128x8xf32> -> vector<128x8xf32>
    %c0_32 = arith.constant 0 : index
    %c0_33 = arith.constant 0 : index
    %34 = vector.load %arg5[%c0_32, %c0_33] : memref<128x8xf32, #tpu.memory_space<vmem>>, vector<128x8xf32>
    %35 = arith.addf %34, %33 : vector<128x8xf32>
    %c0_34 = arith.constant 0 : index
    %c0_35 = arith.constant 0 : index
    %36 = vector.load %arg5[%c0_34, %c0_35] : memref<128x8xf32, #tpu.memory_space<vmem>>, vector<128x8xf32>
    tpu.vector_store %arg5[%c0_34, %c0_35], %35 {strides = array<i32>} : memref<128x8xf32, #tpu.memory_space<vmem>>, vector<128x8xf32>,
    %c0_36 = arith.constant 0 : index
    %c1_37 = arith.constant 1 : index
    %c0_38 = arith.constant 0 : index
    %c0_39 = arith.constant 0 : index
    %c0_40 = arith.constant 0 : index
    %37 = vector.load %arg1[%c0_36, %c1_37, %c0_38, %c0_39, %c0_40] : memref<1x4x9x17x4xbf16, #tpu.memory_space<vmem>>, vector<1x1x9x16x4xbf16>
    %38 = vector.shape_cast %37 : vector<1x1x9x16x4xbf16> to vector<1x9x16x4xbf16>
    %39 = vector.extract_strided_slice %38 {offsets = [0, 0, 0, 0], sizes = [1, 8, 16, 4], strides = [1, 1, 1, 1]} : vector<1x9x16x4xbf16> to vector<1x8x16x4xbf16>
    %40 = vector.shape_cast %39 : vector<1x8x16x4xbf16> to vector<128x4xbf16>
    %c1_41 = arith.constant 1 : index
    %c0_42 = arith.constant 0 : index
    %c0_43 = arith.constant 0 : index
    %41 = vector.load %arg2[%c1_41, %c0_42, %c0_43] : memref<9x4x8xbf16, #tpu.memory_space<vmem>>, vector<1x4x8xbf16>
    %42 = vector.shape_cast %41 : vector<1x4x8xbf16> to vector<4x8xbf16>
    %cst_44 = arith.constant dense<0.000000e+00> : vector<128x8xf32>
    %43 = tpu.matmul %40, %42, %cst_44 {dimension_numbers = #tpu.dot_dimension_numbers<[1], [0], [0], [1], [0, 0, 1, 1], [], []>} : vector<128x4xbf16>, vector<4x8xbf16>, vector<128x8xf32> -> vector<128x8xf32>
    %c0_45 = arith.constant 0 : index
    %c0_46 = arith.constant 0 : index
    %44 = vector.load %arg5[%c0_45, %c0_46] : memref<128x8xf32, #tpu.memory_space<vmem>>, vector<128x8xf32>
    %45 = arith.addf %44, %43 : vector<128x8xf32>
    %c0_47 = arith.constant 0 : index
    %c0_48 = arith.constant 0 : index
    %46 = vector.load %arg5[%c0_47, %c0_48] : memref<128x8xf32, #tpu.memory_space<vmem>>, vector<128x8xf32>
    tpu.vector_store %arg5[%c0_47, %c0_48], %45 {strides = array<i32>} : memref<128x8xf32, #tpu.memory_space<vmem>>, vector<128x8xf32>,
    %47 = vector.extract_strided_slice %38 {offsets = [0, 1, 0, 0], sizes = [1, 8, 16, 4], strides = [1, 1, 1, 1]} : vector<1x9x16x4xbf16> to vector<1x8x16x4xbf16>
    %48 = vector.shape_cast %47 : vector<1x8x16x4xbf16> to vector<128x4xbf16>
    %c7 = arith.constant 7 : index
    %c0_49 = arith.constant 0 : index
    %c0_50 = arith.constant 0 : index
    %49 = vector.load %arg2[%c7, %c0_49, %c0_50] : memref<9x4x8xbf16, #tpu.memory_space<vmem>>, vector<1x4x8xbf16>
    %50 = vector.shape_cast %49 : vector<1x4x8xbf16> to vector<4x8xbf16>
    %cst_51 = arith.constant dense<0.000000e+00> : vector<128x8xf32>
    %51 = tpu.matmul %48, %50, %cst_51 {dimension_numbers = #tpu.dot_dimension_numbers<[1], [0], [0], [1], [0, 0, 1, 1], [], []>} : vector<128x4xbf16>, vector<4x8xbf16>, vector<128x8xf32> -> vector<128x8xf32>
    %c0_52 = arith.constant 0 : index
    %c0_53 = arith.constant 0 : index
    %52 = vector.load %arg5[%c0_52, %c0_53] : memref<128x8xf32, #tpu.memory_space<vmem>>, vector<128x8xf32>
    %53 = arith.addf %52, %51 : vector<128x8xf32>
    %c0_54 = arith.constant 0 : index
    %c0_55 = arith.constant 0 : index
    %54 = vector.load %arg5[%c0_54, %c0_55] : memref<128x8xf32, #tpu.memory_space<vmem>>, vector<128x8xf32>
    tpu.vector_store %arg5[%c0_54, %c0_55], %53 {strides = array<i32>} : memref<128x8xf32, #tpu.memory_space<vmem>>, vector<128x8xf32>,
    %c0_56 = arith.constant 0 : index
    %c2_57 = arith.constant 2 : index
    %c0_58 = arith.constant 0 : index
    %c0_59 = arith.constant 0 : index
    %c0_60 = arith.constant 0 : index
    %55 = vector.load %arg1[%c0_56, %c2_57, %c0_58, %c0_59, %c0_60] : memref<1x4x9x17x4xbf16, #tpu.memory_space<vmem>>, vector<1x1x9x16x4xbf16>
    %56 = vector.shape_cast %55 : vector<1x1x9x16x4xbf16> to vector<1x9x16x4xbf16>
    %57 = vector.extract_strided_slice %56 {offsets = [0, 0, 0, 0], sizes = [1, 8, 16, 4], strides = [1, 1, 1, 1]} : vector<1x9x16x4xbf16> to vector<1x8x16x4xbf16>
    %58 = vector.shape_cast %57 : vector<1x8x16x4xbf16> to vector<128x4xbf16>
    %c3 = arith.constant 3 : index
    %c0_61 = arith.constant 0 : index
    %c0_62 = arith.constant 0 : index
    %59 = vector.load %arg2[%c3, %c0_61, %c0_62] : memref<9x4x8xbf16, #tpu.memory_space<vmem>>, vector<1x4x8xbf16>
    %60 = vector.shape_cast %59 : vector<1x4x8xbf16> to vector<4x8xbf16>
    %cst_63 = arith.constant dense<0.000000e+00> : vector<128x8xf32>
    %61 = tpu.matmul %58, %60, %cst_63 {dimension_numbers = #tpu.dot_dimension_numbers<[1], [0], [0], [1], [0, 0, 1, 1], [], []>} : vector<128x4xbf16>, vector<4x8xbf16>, vector<128x8xf32> -> vector<128x8xf32>
    %c0_64 = arith.constant 0 : index
    %c0_65 = arith.constant 0 : index
    %62 = vector.load %arg5[%c0_64, %c0_65] : memref<128x8xf32, #tpu.memory_space<vmem>>, vector<128x8xf32>
    %63 = arith.addf %62, %61 : vector<128x8xf32>
    %c0_66 = arith.constant 0 : index
    %c0_67 = arith.constant 0 : index
    %64 = vector.load %arg5[%c0_66, %c0_67] : memref<128x8xf32, #tpu.memory_space<vmem>>, vector<128x8xf32>
    tpu.vector_store %arg5[%c0_66, %c0_67], %63 {strides = array<i32>} : memref<128x8xf32, #tpu.memory_space<vmem>>, vector<128x8xf32>,
    %c0_68 = arith.constant 0 : index
    %c2_69 = arith.constant 2 : index
    %c0_70 = arith.constant 0 : index
    %c1_71 = arith.constant 1 : index
    %c0_72 = arith.constant 0 : index
    %65 = vector.load %arg1[%c0_68, %c2_69, %c0_70, %c1_71, %c0_72] : memref<1x4x9x17x4xbf16, #tpu.memory_space<vmem>>, vector<1x1x9x16x4xbf16>
    %66 = vector.shape_cast %65 : vector<1x1x9x16x4xbf16> to vector<1x9x16x4xbf16>
    %67 = vector.extract_strided_slice %66 {offsets = [0, 0, 0, 0], sizes = [1, 8, 16, 4], strides = [1, 1, 1, 1]} : vector<1x9x16x4xbf16> to vector<1x8x16x4xbf16>
    %68 = vector.shape_cast %67 : vector<1x8x16x4xbf16> to vector<128x4xbf16>
    %c5 = arith.constant 5 : index
    %c0_73 = arith.constant 0 : index
    %c0_74 = arith.constant 0 : index
    %69 = vector.load %arg2[%c5, %c0_73, %c0_74] : memref<9x4x8xbf16, #tpu.memory_space<vmem>>, vector<1x4x8xbf16>
    %70 = vector.shape_cast %69 : vector<1x4x8xbf16> to vector<4x8xbf16>
    %cst_75 = arith.constant dense<0.000000e+00> : vector<128x8xf32>
    %71 = tpu.matmul %68, %70, %cst_75 {dimension_numbers = #tpu.dot_dimension_numbers<[1], [0], [0], [1], [0, 0, 1, 1], [], []>} : vector<128x4xbf16>, vector<4x8xbf16>, vector<128x8xf32> -> vector<128x8xf32>
    %c0_76 = arith.constant 0 : index
    %c0_77 = arith.constant 0 : index
    %72 = vector.load %arg5[%c0_76, %c0_77] : memref<128x8xf32, #tpu.memory_space<vmem>>, vector<128x8xf32>
    %73 = arith.addf %72, %71 : vector<128x8xf32>
    %c0_78 = arith.constant 0 : index
    %c0_79 = arith.constant 0 : index
    %74 = vector.load %arg5[%c0_78, %c0_79] : memref<128x8xf32, #tpu.memory_space<vmem>>, vector<128x8xf32>
    tpu.vector_store %arg5[%c0_78, %c0_79], %73 {strides = array<i32>} : memref<128x8xf32, #tpu.memory_space<vmem>>, vector<128x8xf32>,
    %c0_80 = arith.constant 0 : index
    %c3_81 = arith.constant 3 : index
    %c0_82 = arith.constant 0 : index
    %c0_83 = arith.constant 0 : index
    %c0_84 = arith.constant 0 : index
    %75 = vector.load %arg1[%c0_80, %c3_81, %c0_82, %c0_83, %c0_84] : memref<1x4x9x17x4xbf16, #tpu.memory_space<vmem>>, vector<1x1x9x16x4xbf16>
    %76 = vector.shape_cast %75 : vector<1x1x9x16x4xbf16> to vector<1x9x16x4xbf16>
    %77 = vector.extract_strided_slice %76 {offsets = [0, 0, 0, 0], sizes = [1, 8, 16, 4], strides = [1, 1, 1, 1]} : vector<1x9x16x4xbf16> to vector<1x8x16x4xbf16>
    %78 = vector.shape_cast %77 : vector<1x8x16x4xbf16> to vector<128x4xbf16>
    %c4 = arith.constant 4 : index
    %c0_85 = arith.constant 0 : index
    %c0_86 = arith.constant 0 : index
    %79 = vector.load %arg2[%c4, %c0_85, %c0_86] : memref<9x4x8xbf16, #tpu.memory_space<vmem>>, vector<1x4x8xbf16>
    %80 = vector.shape_cast %79 : vector<1x4x8xbf16> to vector<4x8xbf16>
    %cst_87 = arith.constant dense<0.000000e+00> : vector<128x8xf32>
    %81 = tpu.matmul %78, %80, %cst_87 {dimension_numbers = #tpu.dot_dimension_numbers<[1], [0], [0], [1], [0, 0, 1, 1], [], []>} : vector<128x4xbf16>, vector<4x8xbf16>, vector<128x8xf32> -> vector<128x8xf32>
    %c0_88 = arith.constant 0 : index
    %c0_89 = arith.constant 0 : index
    %82 = vector.load %arg5[%c0_88, %c0_89] : memref<128x8xf32, #tpu.memory_space<vmem>>, vector<128x8xf32>
    %83 = arith.addf %82, %81 : vector<128x8xf32>
    %c0_90 = arith.constant 0 : index
    %c0_91 = arith.constant 0 : index
    %84 = vector.load %arg5[%c0_90, %c0_91] : memref<128x8xf32, #tpu.memory_space<vmem>>, vector<128x8xf32>
    tpu.vector_store %arg5[%c0_90, %c0_91], %83 {strides = array<i32>} : memref<128x8xf32, #tpu.memory_space<vmem>>, vector<128x8xf32>,
    %c0_92 = arith.constant 0 : index
    %c0_93 = arith.constant 0 : index
    %85 = vector.load %arg5[%c0_92, %c0_93] : memref<128x8xf32, #tpu.memory_space<vmem>>, vector<128x8xf32>
    %86 = tpu.iota {dimensions = array<i32: 2>} : vector<1x8x16x8xi32>
    %87 = vector.shape_cast %86 : vector<1x8x16x8xi32> to vector<128x8xi32>
    %c8_i32 = arith.constant 8 : i32
    %88 = vector.broadcast %c8_i32 : i32 to vector<128x8xi32>
    %89 = arith.cmpi slt, %87, %88 : vector<128x8xi32>
    %cst_94 = arith.constant 0.000000e+00 : f32
    %90 = vector.broadcast %cst_94 : f32 to vector<128x8xf32>
    %91 = arith.select %89, %85, %90 : vector<128x8xi1>, vector<128x8xf32>
    %92 = arith.truncf %91 : vector<128x8xf32> to vector<128x8xbf16>
    %c0_95 = arith.constant 0 : index
    %c0_96 = arith.constant 0 : index
    %93 = vector.load %arg4[%c0_95, %c0_96] : memref<128x8xbf16, #tpu.memory_space<vmem>>, vector<128x8xbf16>
    tpu.vector_store %arg4[%c0_95, %c0_96], %92 {strides = array<i32>} : memref<128x8xbf16, #tpu.memory_space<vmem>>, vector<128x8xbf16>,
    return
  }
  func.func @transform_0(%arg0: i32) -> (i32, i32, i32, i32, i32) {
    %c0_i32 = arith.constant 0 : i32
    %c0_i32_0 = arith.constant 0 : i32
    %c0_i32_1 = arith.constant 0 : i32
    %c0_i32_2 = arith.constant 0 : i32
    %c0_i32_3 = arith.constant 0 : i32
    return %arg0, %c0_i32, %c0_i32_0, %c0_i32_1, %c0_i32_2 : i32, i32, i32, i32, i32
  }
  func.func @transform_1(%arg0: i32) -> (i32, i32, i32) {
    %c0_i32 = arith.constant 0 : i32
    %c0_i32_0 = arith.constant 0 : i32
    %c0_i32_1 = arith.constant 0 : i32
    %c0_i32_2 = arith.constant 0 : i32
    return %c0_i32, %c0_i32_0, %c0_i32_1 : i32, i32, i32
  }
  func.func @transform_2(%arg0: i32) -> (i32, i32) {
    %c0_i32 = arith.constant 0 : i32
    %c0_i32_0 = arith.constant 0 : i32
    %c0_i32_1 = arith.constant 0 : i32
    return %c0_i32, %c0_i32_0 : i32, i32
  }
  func.func @transform_3(%arg0: i32) -> (i32, i32) {
    %c0_i32 = arith.constant 0 : i32
    %c0_i32_0 = arith.constant 0 : i32
    return %arg0, %c0_i32 : i32, i32
  }
}

module attributes {stable_mosaic.version = 11 : i64} {
  func.func @_conv3x3_s2_kernel(%arg0: i32, %arg1: memref<1x4x5x17x8xbf16, #tpu.memory_space<vmem>>, %arg2: memref<9x8x8xbf16, #tpu.memory_space<vmem>>, %arg3: memref<1x8xf32, #tpu.memory_space<vmem>>, %arg4: memref<64x8xf32, #tpu.memory_space<vmem>>, %arg5: memref<64x8xf32, #tpu.memory_space<vmem>>) attributes {dimension_semantics = [#tpu.dimension_semantics<parallel>], iteration_bounds = array<i64: 2>, scalar_prefetch = 0 : i64, scratch_operands = 1 : i64, tpu.core_type = #tpu.core_type<tc>, window_params = [{transform_indices = @transform_0, window_bounds = array<i64: 1, 4, 5, 17, 8>}, {pipeline_mode = #tpu.pipeline_mode<synchronous>, transform_indices = @transform_1, window_bounds = array<i64: 9, 8, 8>}, {pipeline_mode = #tpu.pipeline_mode<synchronous>, transform_indices = @transform_2, window_bounds = array<i64: 1, 8>}, {transform_indices = @transform_3, window_bounds = array<i64: 64, 8>}]} {
    %c0 = arith.constant 0 : index
    %c0_0 = arith.constant 0 : index
    %c0_1 = arith.constant 0 : index
    %c0_2 = arith.constant 0 : index
    %c0_3 = arith.constant 0 : index
    %0 = vector.load %arg1[%c0, %c0_0, %c0_1, %c0_2, %c0_3] : memref<1x4x5x17x8xbf16, #tpu.memory_space<vmem>>, vector<1x1x5x16x8xbf16>
    %1 = vector.shape_cast %0 : vector<1x1x5x16x8xbf16> to vector<1x5x16x8xbf16>
    %2 = vector.extract_strided_slice %1 {offsets = [0, 0, 0, 0], sizes = [1, 4, 16, 8], strides = [1, 1, 1, 1]} : vector<1x5x16x8xbf16> to vector<1x4x16x8xbf16>
    %3 = vector.shape_cast %2 : vector<1x4x16x8xbf16> to vector<64x8xbf16>
    %c0_4 = arith.constant 0 : index
    %c0_5 = arith.constant 0 : index
    %c0_6 = arith.constant 0 : index
    %4 = vector.load %arg2[%c0_4, %c0_5, %c0_6] : memref<9x8x8xbf16, #tpu.memory_space<vmem>>, vector<1x8x8xbf16>
    %5 = vector.shape_cast %4 : vector<1x8x8xbf16> to vector<8x8xbf16>
    %cst = arith.constant dense<0.000000e+00> : vector<64x8xf32>
    %6 = tpu.matmul %3, %5, %cst {dimension_numbers = #tpu.dot_dimension_numbers<[1], [0], [0], [1], [0, 0, 1, 1], [], []>} : vector<64x8xbf16>, vector<8x8xbf16>, vector<64x8xf32> -> vector<64x8xf32>
    %c0_7 = arith.constant 0 : index
    %c0_8 = arith.constant 0 : index
    %7 = vector.load %arg3[%c0_7, %c0_8] : memref<1x8xf32, #tpu.memory_space<vmem>>, vector<1x8xf32>
    %8 = vector.broadcast %7 : vector<1x8xf32> to vector<64x8xf32>
    %9 = arith.addf %8, %6 : vector<64x8xf32>
    %c0_9 = arith.constant 0 : index
    %c0_10 = arith.constant 0 : index
    %10 = vector.load %arg5[%c0_9, %c0_10] : memref<64x8xf32, #tpu.memory_space<vmem>>, vector<64x8xf32>
    tpu.vector_store %arg5[%c0_9, %c0_10], %9 {strides = array<i32>} : memref<64x8xf32, #tpu.memory_space<vmem>>, vector<64x8xf32>,
    %11 = vector.extract_strided_slice %1 {offsets = [0, 1, 0, 0], sizes = [1, 4, 16, 8], strides = [1, 1, 1, 1]} : vector<1x5x16x8xbf16> to vector<1x4x16x8xbf16>
    %12 = vector.shape_cast %11 : vector<1x4x16x8xbf16> to vector<64x8xbf16>
    %c6 = arith.constant 6 : index
    %c0_11 = arith.constant 0 : index
    %c0_12 = arith.constant 0 : index
    %13 = vector.load %arg2[%c6, %c0_11, %c0_12] : memref<9x8x8xbf16, #tpu.memory_space<vmem>>, vector<1x8x8xbf16>
    %14 = vector.shape_cast %13 : vector<1x8x8xbf16> to vector<8x8xbf16>
    %cst_13 = arith.constant dense<0.000000e+00> : vector<64x8xf32>
    %15 = tpu.matmul %12, %14, %cst_13 {dimension_numbers = #tpu.dot_dimension_numbers<[1], [0], [0], [1], [0, 0, 1, 1], [], []>} : vector<64x8xbf16>, vector<8x8xbf16>, vector<64x8xf32> -> vector<64x8xf32>
    %c0_14 = arith.constant 0 : index
    %c0_15 = arith.constant 0 : index
    %16 = vector.load %arg5[%c0_14, %c0_15] : memref<64x8xf32, #tpu.memory_space<vmem>>, vector<64x8xf32>
    %17 = arith.addf %16, %15 : vector<64x8xf32>
    %c0_16 = arith.constant 0 : index
    %c0_17 = arith.constant 0 : index
    %18 = vector.load %arg5[%c0_16, %c0_17] : memref<64x8xf32, #tpu.memory_space<vmem>>, vector<64x8xf32>
    tpu.vector_store %arg5[%c0_16, %c0_17], %17 {strides = array<i32>} : memref<64x8xf32, #tpu.memory_space<vmem>>, vector<64x8xf32>,
    %c0_18 = arith.constant 0 : index
    %c0_19 = arith.constant 0 : index
    %c0_20 = arith.constant 0 : index
    %c1 = arith.constant 1 : index
    %c0_21 = arith.constant 0 : index
    %19 = vector.load %arg1[%c0_18, %c0_19, %c0_20, %c1, %c0_21] : memref<1x4x5x17x8xbf16, #tpu.memory_space<vmem>>, vector<1x1x5x16x8xbf16>
    %20 = vector.shape_cast %19 : vector<1x1x5x16x8xbf16> to vector<1x5x16x8xbf16>
    %21 = vector.extract_strided_slice %20 {offsets = [0, 0, 0, 0], sizes = [1, 4, 16, 8], strides = [1, 1, 1, 1]} : vector<1x5x16x8xbf16> to vector<1x4x16x8xbf16>
    %22 = vector.shape_cast %21 : vector<1x4x16x8xbf16> to vector<64x8xbf16>
    %c2 = arith.constant 2 : index
    %c0_22 = arith.constant 0 : index
    %c0_23 = arith.constant 0 : index
    %23 = vector.load %arg2[%c2, %c0_22, %c0_23] : memref<9x8x8xbf16, #tpu.memory_space<vmem>>, vector<1x8x8xbf16>
    %24 = vector.shape_cast %23 : vector<1x8x8xbf16> to vector<8x8xbf16>
    %cst_24 = arith.constant dense<0.000000e+00> : vector<64x8xf32>
    %25 = tpu.matmul %22, %24, %cst_24 {dimension_numbers = #tpu.dot_dimension_numbers<[1], [0], [0], [1], [0, 0, 1, 1], [], []>} : vector<64x8xbf16>, vector<8x8xbf16>, vector<64x8xf32> -> vector<64x8xf32>
    %c0_25 = arith.constant 0 : index
    %c0_26 = arith.constant 0 : index
    %26 = vector.load %arg5[%c0_25, %c0_26] : memref<64x8xf32, #tpu.memory_space<vmem>>, vector<64x8xf32>
    %27 = arith.addf %26, %25 : vector<64x8xf32>
    %c0_27 = arith.constant 0 : index
    %c0_28 = arith.constant 0 : index
    %28 = vector.load %arg5[%c0_27, %c0_28] : memref<64x8xf32, #tpu.memory_space<vmem>>, vector<64x8xf32>
    tpu.vector_store %arg5[%c0_27, %c0_28], %27 {strides = array<i32>} : memref<64x8xf32, #tpu.memory_space<vmem>>, vector<64x8xf32>,
    %29 = vector.extract_strided_slice %20 {offsets = [0, 1, 0, 0], sizes = [1, 4, 16, 8], strides = [1, 1, 1, 1]} : vector<1x5x16x8xbf16> to vector<1x4x16x8xbf16>
    %30 = vector.shape_cast %29 : vector<1x4x16x8xbf16> to vector<64x8xbf16>
    %c8 = arith.constant 8 : index
    %c0_29 = arith.constant 0 : index
    %c0_30 = arith.constant 0 : index
    %31 = vector.load %arg2[%c8, %c0_29, %c0_30] : memref<9x8x8xbf16, #tpu.memory_space<vmem>>, vector<1x8x8xbf16>
    %32 = vector.shape_cast %31 : vector<1x8x8xbf16> to vector<8x8xbf16>
    %cst_31 = arith.constant dense<0.000000e+00> : vector<64x8xf32>
    %33 = tpu.matmul %30, %32, %cst_31 {dimension_numbers = #tpu.dot_dimension_numbers<[1], [0], [0], [1], [0, 0, 1, 1], [], []>} : vector<64x8xbf16>, vector<8x8xbf16>, vector<64x8xf32> -> vector<64x8xf32>
    %c0_32 = arith.constant 0 : index
    %c0_33 = arith.constant 0 : index
    %34 = vector.load %arg5[%c0_32, %c0_33] : memref<64x8xf32, #tpu.memory_space<vmem>>, vector<64x8xf32>
    %35 = arith.addf %34, %33 : vector<64x8xf32>
    %c0_34 = arith.constant 0 : index
    %c0_35 = arith.constant 0 : index
    %36 = vector.load %arg5[%c0_34, %c0_35] : memref<64x8xf32, #tpu.memory_space<vmem>>, vector<64x8xf32>
    tpu.vector_store %arg5[%c0_34, %c0_35], %35 {strides = array<i32>} : memref<64x8xf32, #tpu.memory_space<vmem>>, vector<64x8xf32>,
    %c0_36 = arith.constant 0 : index
    %c1_37 = arith.constant 1 : index
    %c0_38 = arith.constant 0 : index
    %c0_39 = arith.constant 0 : index
    %c0_40 = arith.constant 0 : index
    %37 = vector.load %arg1[%c0_36, %c1_37, %c0_38, %c0_39, %c0_40] : memref<1x4x5x17x8xbf16, #tpu.memory_space<vmem>>, vector<1x1x5x16x8xbf16>
    %38 = vector.shape_cast %37 : vector<1x1x5x16x8xbf16> to vector<1x5x16x8xbf16>
    %39 = vector.extract_strided_slice %38 {offsets = [0, 0, 0, 0], sizes = [1, 4, 16, 8], strides = [1, 1, 1, 1]} : vector<1x5x16x8xbf16> to vector<1x4x16x8xbf16>
    %40 = vector.shape_cast %39 : vector<1x4x16x8xbf16> to vector<64x8xbf16>
    %c1_41 = arith.constant 1 : index
    %c0_42 = arith.constant 0 : index
    %c0_43 = arith.constant 0 : index
    %41 = vector.load %arg2[%c1_41, %c0_42, %c0_43] : memref<9x8x8xbf16, #tpu.memory_space<vmem>>, vector<1x8x8xbf16>
    %42 = vector.shape_cast %41 : vector<1x8x8xbf16> to vector<8x8xbf16>
    %cst_44 = arith.constant dense<0.000000e+00> : vector<64x8xf32>
    %43 = tpu.matmul %40, %42, %cst_44 {dimension_numbers = #tpu.dot_dimension_numbers<[1], [0], [0], [1], [0, 0, 1, 1], [], []>} : vector<64x8xbf16>, vector<8x8xbf16>, vector<64x8xf32> -> vector<64x8xf32>
    %c0_45 = arith.constant 0 : index
    %c0_46 = arith.constant 0 : index
    %44 = vector.load %arg5[%c0_45, %c0_46] : memref<64x8xf32, #tpu.memory_space<vmem>>, vector<64x8xf32>
    %45 = arith.addf %44, %43 : vector<64x8xf32>
    %c0_47 = arith.constant 0 : index
    %c0_48 = arith.constant 0 : index
    %46 = vector.load %arg5[%c0_47, %c0_48] : memref<64x8xf32, #tpu.memory_space<vmem>>, vector<64x8xf32>
    tpu.vector_store %arg5[%c0_47, %c0_48], %45 {strides = array<i32>} : memref<64x8xf32, #tpu.memory_space<vmem>>, vector<64x8xf32>,
    %47 = vector.extract_strided_slice %38 {offsets = [0, 1, 0, 0], sizes = [1, 4, 16, 8], strides = [1, 1, 1, 1]} : vector<1x5x16x8xbf16> to vector<1x4x16x8xbf16>
    %48 = vector.shape_cast %47 : vector<1x4x16x8xbf16> to vector<64x8xbf16>
    %c7 = arith.constant 7 : index
    %c0_49 = arith.constant 0 : index
    %c0_50 = arith.constant 0 : index
    %49 = vector.load %arg2[%c7, %c0_49, %c0_50] : memref<9x8x8xbf16, #tpu.memory_space<vmem>>, vector<1x8x8xbf16>
    %50 = vector.shape_cast %49 : vector<1x8x8xbf16> to vector<8x8xbf16>
    %cst_51 = arith.constant dense<0.000000e+00> : vector<64x8xf32>
    %51 = tpu.matmul %48, %50, %cst_51 {dimension_numbers = #tpu.dot_dimension_numbers<[1], [0], [0], [1], [0, 0, 1, 1], [], []>} : vector<64x8xbf16>, vector<8x8xbf16>, vector<64x8xf32> -> vector<64x8xf32>
    %c0_52 = arith.constant 0 : index
    %c0_53 = arith.constant 0 : index
    %52 = vector.load %arg5[%c0_52, %c0_53] : memref<64x8xf32, #tpu.memory_space<vmem>>, vector<64x8xf32>
    %53 = arith.addf %52, %51 : vector<64x8xf32>
    %c0_54 = arith.constant 0 : index
    %c0_55 = arith.constant 0 : index
    %54 = vector.load %arg5[%c0_54, %c0_55] : memref<64x8xf32, #tpu.memory_space<vmem>>, vector<64x8xf32>
    tpu.vector_store %arg5[%c0_54, %c0_55], %53 {strides = array<i32>} : memref<64x8xf32, #tpu.memory_space<vmem>>, vector<64x8xf32>,
    %c0_56 = arith.constant 0 : index
    %c2_57 = arith.constant 2 : index
    %c0_58 = arith.constant 0 : index
    %c0_59 = arith.constant 0 : index
    %c0_60 = arith.constant 0 : index
    %55 = vector.load %arg1[%c0_56, %c2_57, %c0_58, %c0_59, %c0_60] : memref<1x4x5x17x8xbf16, #tpu.memory_space<vmem>>, vector<1x1x5x16x8xbf16>
    %56 = vector.shape_cast %55 : vector<1x1x5x16x8xbf16> to vector<1x5x16x8xbf16>
    %57 = vector.extract_strided_slice %56 {offsets = [0, 0, 0, 0], sizes = [1, 4, 16, 8], strides = [1, 1, 1, 1]} : vector<1x5x16x8xbf16> to vector<1x4x16x8xbf16>
    %58 = vector.shape_cast %57 : vector<1x4x16x8xbf16> to vector<64x8xbf16>
    %c3 = arith.constant 3 : index
    %c0_61 = arith.constant 0 : index
    %c0_62 = arith.constant 0 : index
    %59 = vector.load %arg2[%c3, %c0_61, %c0_62] : memref<9x8x8xbf16, #tpu.memory_space<vmem>>, vector<1x8x8xbf16>
    %60 = vector.shape_cast %59 : vector<1x8x8xbf16> to vector<8x8xbf16>
    %cst_63 = arith.constant dense<0.000000e+00> : vector<64x8xf32>
    %61 = tpu.matmul %58, %60, %cst_63 {dimension_numbers = #tpu.dot_dimension_numbers<[1], [0], [0], [1], [0, 0, 1, 1], [], []>} : vector<64x8xbf16>, vector<8x8xbf16>, vector<64x8xf32> -> vector<64x8xf32>
    %c0_64 = arith.constant 0 : index
    %c0_65 = arith.constant 0 : index
    %62 = vector.load %arg5[%c0_64, %c0_65] : memref<64x8xf32, #tpu.memory_space<vmem>>, vector<64x8xf32>
    %63 = arith.addf %62, %61 : vector<64x8xf32>
    %c0_66 = arith.constant 0 : index
    %c0_67 = arith.constant 0 : index
    %64 = vector.load %arg5[%c0_66, %c0_67] : memref<64x8xf32, #tpu.memory_space<vmem>>, vector<64x8xf32>
    tpu.vector_store %arg5[%c0_66, %c0_67], %63 {strides = array<i32>} : memref<64x8xf32, #tpu.memory_space<vmem>>, vector<64x8xf32>,
    %c0_68 = arith.constant 0 : index
    %c2_69 = arith.constant 2 : index
    %c0_70 = arith.constant 0 : index
    %c1_71 = arith.constant 1 : index
    %c0_72 = arith.constant 0 : index
    %65 = vector.load %arg1[%c0_68, %c2_69, %c0_70, %c1_71, %c0_72] : memref<1x4x5x17x8xbf16, #tpu.memory_space<vmem>>, vector<1x1x5x16x8xbf16>
    %66 = vector.shape_cast %65 : vector<1x1x5x16x8xbf16> to vector<1x5x16x8xbf16>
    %67 = vector.extract_strided_slice %66 {offsets = [0, 0, 0, 0], sizes = [1, 4, 16, 8], strides = [1, 1, 1, 1]} : vector<1x5x16x8xbf16> to vector<1x4x16x8xbf16>
    %68 = vector.shape_cast %67 : vector<1x4x16x8xbf16> to vector<64x8xbf16>
    %c5 = arith.constant 5 : index
    %c0_73 = arith.constant 0 : index
    %c0_74 = arith.constant 0 : index
    %69 = vector.load %arg2[%c5, %c0_73, %c0_74] : memref<9x8x8xbf16, #tpu.memory_space<vmem>>, vector<1x8x8xbf16>
    %70 = vector.shape_cast %69 : vector<1x8x8xbf16> to vector<8x8xbf16>
    %cst_75 = arith.constant dense<0.000000e+00> : vector<64x8xf32>
    %71 = tpu.matmul %68, %70, %cst_75 {dimension_numbers = #tpu.dot_dimension_numbers<[1], [0], [0], [1], [0, 0, 1, 1], [], []>} : vector<64x8xbf16>, vector<8x8xbf16>, vector<64x8xf32> -> vector<64x8xf32>
    %c0_76 = arith.constant 0 : index
    %c0_77 = arith.constant 0 : index
    %72 = vector.load %arg5[%c0_76, %c0_77] : memref<64x8xf32, #tpu.memory_space<vmem>>, vector<64x8xf32>
    %73 = arith.addf %72, %71 : vector<64x8xf32>
    %c0_78 = arith.constant 0 : index
    %c0_79 = arith.constant 0 : index
    %74 = vector.load %arg5[%c0_78, %c0_79] : memref<64x8xf32, #tpu.memory_space<vmem>>, vector<64x8xf32>
    tpu.vector_store %arg5[%c0_78, %c0_79], %73 {strides = array<i32>} : memref<64x8xf32, #tpu.memory_space<vmem>>, vector<64x8xf32>,
    %c0_80 = arith.constant 0 : index
    %c3_81 = arith.constant 3 : index
    %c0_82 = arith.constant 0 : index
    %c0_83 = arith.constant 0 : index
    %c0_84 = arith.constant 0 : index
    %75 = vector.load %arg1[%c0_80, %c3_81, %c0_82, %c0_83, %c0_84] : memref<1x4x5x17x8xbf16, #tpu.memory_space<vmem>>, vector<1x1x5x16x8xbf16>
    %76 = vector.shape_cast %75 : vector<1x1x5x16x8xbf16> to vector<1x5x16x8xbf16>
    %77 = vector.extract_strided_slice %76 {offsets = [0, 0, 0, 0], sizes = [1, 4, 16, 8], strides = [1, 1, 1, 1]} : vector<1x5x16x8xbf16> to vector<1x4x16x8xbf16>
    %78 = vector.shape_cast %77 : vector<1x4x16x8xbf16> to vector<64x8xbf16>
    %c4 = arith.constant 4 : index
    %c0_85 = arith.constant 0 : index
    %c0_86 = arith.constant 0 : index
    %79 = vector.load %arg2[%c4, %c0_85, %c0_86] : memref<9x8x8xbf16, #tpu.memory_space<vmem>>, vector<1x8x8xbf16>
    %80 = vector.shape_cast %79 : vector<1x8x8xbf16> to vector<8x8xbf16>
    %cst_87 = arith.constant dense<0.000000e+00> : vector<64x8xf32>
    %81 = tpu.matmul %78, %80, %cst_87 {dimension_numbers = #tpu.dot_dimension_numbers<[1], [0], [0], [1], [0, 0, 1, 1], [], []>} : vector<64x8xbf16>, vector<8x8xbf16>, vector<64x8xf32> -> vector<64x8xf32>
    %c0_88 = arith.constant 0 : index
    %c0_89 = arith.constant 0 : index
    %82 = vector.load %arg5[%c0_88, %c0_89] : memref<64x8xf32, #tpu.memory_space<vmem>>, vector<64x8xf32>
    %83 = arith.addf %82, %81 : vector<64x8xf32>
    %c0_90 = arith.constant 0 : index
    %c0_91 = arith.constant 0 : index
    %84 = vector.load %arg5[%c0_90, %c0_91] : memref<64x8xf32, #tpu.memory_space<vmem>>, vector<64x8xf32>
    tpu.vector_store %arg5[%c0_90, %c0_91], %83 {strides = array<i32>} : memref<64x8xf32, #tpu.memory_space<vmem>>, vector<64x8xf32>,
    %c0_92 = arith.constant 0 : index
    %c0_93 = arith.constant 0 : index
    %85 = vector.load %arg5[%c0_92, %c0_93] : memref<64x8xf32, #tpu.memory_space<vmem>>, vector<64x8xf32>
    %86 = tpu.iota {dimensions = array<i32: 2>} : vector<1x4x16x8xi32>
    %87 = vector.shape_cast %86 : vector<1x4x16x8xi32> to vector<64x8xi32>
    %c4_i32 = arith.constant 4 : i32
    %88 = vector.broadcast %c4_i32 : i32 to vector<64x8xi32>
    %89 = arith.cmpi slt, %87, %88 : vector<64x8xi32>
    %cst_94 = arith.constant 0.000000e+00 : f32
    %90 = vector.broadcast %cst_94 : f32 to vector<64x8xf32>
    %91 = arith.select %89, %85, %90 : vector<64x8xi1>, vector<64x8xf32>
    %c0_95 = arith.constant 0 : index
    %c0_96 = arith.constant 0 : index
    %92 = vector.load %arg4[%c0_95, %c0_96] : memref<64x8xf32, #tpu.memory_space<vmem>>, vector<64x8xf32>
    tpu.vector_store %arg4[%c0_95, %c0_96], %91 {strides = array<i32>} : memref<64x8xf32, #tpu.memory_space<vmem>>, vector<64x8xf32>,
    return
  }
  func.func @transform_0(%arg0: i32) -> (i32, i32, i32, i32, i32) {
    %c0_i32 = arith.constant 0 : i32
    %c0_i32_0 = arith.constant 0 : i32
    %c0_i32_1 = arith.constant 0 : i32
    %c0_i32_2 = arith.constant 0 : i32
    %c0_i32_3 = arith.constant 0 : i32
    return %arg0, %c0_i32, %c0_i32_0, %c0_i32_1, %c0_i32_2 : i32, i32, i32, i32, i32
  }
  func.func @transform_1(%arg0: i32) -> (i32, i32, i32) {
    %c0_i32 = arith.constant 0 : i32
    %c0_i32_0 = arith.constant 0 : i32
    %c0_i32_1 = arith.constant 0 : i32
    %c0_i32_2 = arith.constant 0 : i32
    return %c0_i32, %c0_i32_0, %c0_i32_1 : i32, i32, i32
  }
  func.func @transform_2(%arg0: i32) -> (i32, i32) {
    %c0_i32 = arith.constant 0 : i32
    %c0_i32_0 = arith.constant 0 : i32
    %c0_i32_1 = arith.constant 0 : i32
    return %c0_i32, %c0_i32_0 : i32, i32
  }
  func.func @transform_3(%arg0: i32) -> (i32, i32) {
    %c0_i32 = arith.constant 0 : i32
    %c0_i32_0 = arith.constant 0 : i32
    return %arg0, %c0_i32 : i32, i32
  }
}

</mosaic_0001>

<bundles_post_ra>
// kernel: last_level_p6p7_forward.2
= control target key start
LH: loop header
LB: loop body
LE: loop exit
PB: predicated region body
PF: predicated region fallthrough
CT: control target
= control target key end

     0   :  { %s3173_s12 = smov 0   ;;  %s3751_s0 = inlined_call_operand.vmem [shape: bf16[2,4,9,17,4], index: 0, kind: input, shape index: {}]   ;;  %s3752_s1 = inlined_call_operand.vmem [shape: bf16[9,4,8], index: 1, kind: input, shape index: {}]   ;;  %s3753_s2 = inlined_call_operand.vmem [shape: f32[1,8], index: 2, kind: input, shape index: {}]   ;;  %s3754_s3 = inlined_call_operand.vmem [shape: bf16[256,8], index: 3, kind: output, shape index: {}]  }
   0x1 LB: > { %s3179_s13 = sadd.s32 4294967295, %s3150_s12   ;;  %p2601_p0 = scmp.ge.s32.totalorder %s3150_s12, 1  ;;  %s3150_s12 = sphi %s3173_s12, %s13_s12  }
   0x2   : > { %p137_p1 = scmp.lt.s32.totalorder %s3150_s12, 3 }
   0x4   : > { %p138_p2 = pnand %p2601_p0, %p137_p1 }
   0x5   : > { %p161_p3 = scmp.lt.s32.totalorder (!%p138_p2), %s3179_s13, 1  ;;  %s2603_s10 = sshll.u32 (!%p138_p2), %s3179_s13, 4 }
   0x6   : > { %141 = sbr.rel (%p138_p2) target bundleno = 373 (0x175), region = 32  ;;  %p167_p4 = scmp.lt.s32.totalorder (!%p138_p2), %s2603_s10, 31 }
   0xb   : > { %v191_v0 = vld [vmem:[%s3752_s1] sm:$0x3]  ;;  %vm257_vm0 = vcmask 1041408   ;;  %v2622_v2 = vld [vmem:[%s3752_s1 + $0xc] sm:$0x3]  ;;  %s162_s20 = scalar_select %p161_p3, %s3179_s13, 1 }
   0xc   : > { %3091 = vmatprep.subr.msk.bf16.mxu1 %vm257_vm0, %v191_v0  ;;  %v259_v1 = vsel %vm257_vm0, %v191_v0, 0  ;;  %3090 = vmatprep.subr.msk.bf16.mxu0 %vm257_vm0, %v191_v0  ;;  %v2632_v3 = vld [vmem:[%s3752_s1 + $0x4] sm:$0x3]  ;;  %vm232_vm1 = vcmask 31744   ;;  %v2649_v5 = vld [vmem:[%s3752_s1 + $0x10] sm:$0x3] }
   0xd   : > { %3089 = vmatpush3.bf16.msra.mxu1 %v259_v1  ;;  %2927 = vmatpush3.bf16.msra.mxu0 %v259_v1  ;;  %s3100_s21 = smul.u32 432, %s162_s20  ;;  %v409_v7 = vsel %vm257_vm0, %v2622_v2, 0  ;;  %v2677_v9 = vld [vmem:[%s3752_s1 + $0x2] sm:$0x3]  ;;  %v829_v11 = vsel %vm257_vm0, %v2632_v3, 0  ;;  %v3237_v15 = vsel %vm257_vm0, %v2649_v5, 0 }
   0xe   : > { %3092 = vmatprep.subr.msk.bf16.mxu1 %vm257_vm0, %v2622_v2  ;;  %3093 = vmatprep.subr.msk.bf16.mxu0 %vm257_vm0, %v2632_v3  ;;  %vm583_vm2 = vsmask.f32 3328  ;;  %vm584_vm3 = vsmask.f32 7440  ;;  %v3244_v17 = vsel %vm257_vm0, %v2677_v9, 0  ;;  %s3758_s10 = smov (!%p167_p4, %s2603_s10), 31 }
   0xf   : > { %s3202_s24 = scalar_lea.vmem %s3751_s0, %s3100_s21  ;;  %vm3262_vm4 = vmor %vm583_vm2, %vm584_vm3  ;;  %vm381_vm5 = vcmask 64512   ;;  %s2604_s15 = sshll.u32 %s3758_s10, 2  ;;  %vm2524_vm6 = vcmask 60416  }
  0x10   : > { %v3205_v4 = vld [vmem:[%s3202_s24 + $0x30] sm:$0xff]   ;;  %v3211_v6 = vld [vmem:[%s3202_s24 + $0x3c] sm:$0xff]   ;;  %v3226_v12 = vld [vmem:[%s3202_s24 + $0x48] sm:$0xff]   ;;  %s3562_s17 = scalar_lea.vmem %s3754_s3, %s2604_s15 }
  0x11   : > { %2936 = vmatprep.mubr.msk.bf16.mxu1 %vm232_vm1, %v3205_v4  ;;  %v3112_v8 = vld [vmem:[%s3202_s24] sm:$0xff]   ;;  %v3113_v10 = vld [vmem:[%s3202_s24 + $0xc] sm:$0xff]   ;;  %v3230_v13 = vld [vmem:[%s3202_s24 + $0x54] sm:$0xff]  }
  0x12   : > { %2937 = vmatmul.mubr.msk.bf16.vlgmr.msra.gmra.mxu1 %vm232_vm1, %v3211_v6  ;;  %2928 = vmatprep.mubr.msk.bf16.mxu0 %vm232_vm1, %v3112_v8  ;;  %v3116_v14 = vld [vmem:[%s3202_s24 + $0x18] sm:$0xff]   ;;  %v3240_v16 = vld [vmem:[%s3202_s24 + $0x24] sm:$0xff]   ;;  %v556_v18 = vld [vmem:[%s3202_s24] sm:$0xf] }
  0x13   : > { %2945 = vmatpush3.bf16.msra.mxu1 %v409_v7  ;;  %2929 = vmatmul.mubr.msk.bf16.vlgmr.msra.gmra.mxu0 %vm232_vm1, %v3113_v10  ;;  %v557_v19 = vld [vmem:[%s3202_s24 + $0x4] sm:$0xf]  ;;  %v558_v20 = vld [vmem:[%s3202_s24 + $0x8] sm:$0x1]  ;;  %v587_v21 = vshrl.u32 %v556_v18, 16  ;;  %v590_v22 = vshll.u32 %v556_v18, 16 }
  0x14   : > { %3094 = vmatprep.subr.msk.bf16.mxu1 %vm257_vm0, %v2649_v5  ;;  %2940 = vmatprep.mubr.msk.bf16.mxu1 %vm232_vm1, %v3226_v12  ;;  %v596_v23 = vshll.u32 %v557_v19, 16  ;;  %v600_v24 = vshrl.u32 %v557_v19, 16  ;;  %v559_v25 = vld [vmem:[%s3202_s24 + $0xc] sm:$0xf]  ;;  %v606_v26 = vshll.u32 %v558_v20, 16 }
  0x15   : > { %2963 = vmatpush3.bf16.msra.mxu0 %v829_v11  ;;  %2932 = vmatprep.mubr.msk.bf16.mxu0 %vm232_vm1, %v3116_v14  ;;  %v560_v27 = vld [vmem:[%s3202_s24 + $0x10] sm:$0xf]  ;;  %v561_v28 = vld [vmem:[%s3202_s24 + $0x14] sm:$0x1]  ;;  %v611_v29 = vshrl.u32 %v559_v25, 16  ;;  %v589_v30 = vrot.slane %v587_v21, 4 }
  0x16   : > { %3095 = vmatprep.subr.msk.bf16.mxu0 %vm257_vm0, %v2677_v9  ;;  %v592_v31 = vrot.slane %v590_v22, 5  ;;  %v598_v32 = vrot.slane %v596_v23, 5  ;;  %v602_v33 = vrot.slane %v600_v24, 4  ;;  %v562_v34 = vld [vmem:[%s3202_s24 + $0x18] sm:$0xf]  ;;  %v608_v35 = vrot.slane %v606_v26, 5 }
  0x17   : > { %v613_v36 = vrot.slane %v611_v29, 4  ;;  %v614_v37 = vshll.u32 %v559_v25, 16  ;;  %v620_v38 = vshll.u32 %v560_v27, 16  ;;  %v624_v41 = vshrl.u32 %v560_v27, 16  ;;  %v563_v43 = vld [vmem:[%s3202_s24 + $0x1c] sm:$0xf] }
  0x18   : > { %v593_v39 = vor.u32 %v592_v31, %v589_v30  ;;  %v603_v40 = vor.u32 %v602_v33, %v598_v32  ;;  %v630_v42 = vshll.u32 %v561_v28, 16  ;;  %v635_v47 = vshrl.u32 %v562_v34, 16  ;;  %v564_v53 = vld [vmem:[%s3202_s24 + $0x20] sm:$0x1]  ;;  %v565_v58 = vld [vmem:[%s3202_s24 + $0x24] sm:$0xf] }
  0x19   : > { %v616_v45 = vrot.slane %v614_v37, 5  ;;  %v622_v46 = vrot.slane %v620_v38, 5  ;;  %v638_v48 = vshll.u32 %v562_v34, 16  ;;  %v626_v51 = vrot.slane %v624_v41, 4  ;;  %v566_v63 = vld [vmem:[%s3202_s24 + $0x28] sm:$0xf] }
  0x1a   : > { %2941 = vmatmul.mubr.msk.bf16.gmra.mxu1 %vm232_vm1, %v3230_v13  ;;  %v594_v49 = vrot.slane %v593_v39, 4  ;;  %v604_v50 = vrot.slane %v603_v40, 4  ;;  %v632_v52 = vrot.slane %v630_v42, 5  ;;  %v637_v55 = vrot.slane %v635_v47, 4  ;;  %v567_v5 = vld [vmem:[%s3202_s24 + $0x2c] sm:$0x1] }
  0x1b   : > { %2946 = vmatprep.mubr.msk.bf16.mxu1 %vm232_vm1, %v3113_v10  ;;  %2933 = vmatmul.mubr.msk.bf16.gmra.mxu0 %vm232_vm1, %v3240_v16  ;;  %v617_v54 = vor.u32 %v616_v45, %v613_v36  ;;  %v640_v56 = vrot.slane %v638_v48, 5  ;;  %v644_v57 = vshll.u32 %v563_v43, 16  ;;  %v627_v61 = vor.u32 %v626_v51, %v622_v46  ;;  %v3277_v7 = vld [vmem:[%s3752_s1 + $0xe] sm:$0x3]  ;;  %v568_v18 = vld [vmem:[%s3202_s24 + $0x30] sm:$0xf] }
  0x1c   : > { %v599_v59 = vsel %vm3262_vm4, %v594_v49, %v598_v32  ;;  %v609_v60 = vsel %vm3262_vm4, %v604_v50, %v608_v35  ;;  %v648_v62 = vshrl.u32 %v563_v43, 16  ;;  %v654_v10 = vshll.u32 %v564_v53, 16  ;;  %v569_v26 = vld [vmem:[%s3202_s24 + $0x34] sm:$0xf]  ;;  %v3299_v30 = vld [vmem:[%s3752_s1 + $0x6] sm:$0x3] }
  0x1d   : > { %v2633_v0 = vcombine.low %v599_v59, %v609_v60  ;;  %v618_v1 = vrot.slane %v617_v54, 4  ;;  %v641_v2 = vor.u32 %v640_v56, %v637_v55  ;;  %v646_v3 = vrot.slane %v644_v57, 5  ;;  %v570_v33 = vld [vmem:[%s3202_s24 + $0x38] sm:$0x1]  ;;  %v571_v39 = vld [vmem:[%s3202_s24 + $0x3c] sm:$0xf] }
  0x1e   : > { %v628_v8 = vrot.slane %v627_v61, 4  ;;  %v650_v9 = vrot.slane %v648_v62, 4  ;;  %v659_v11 = vshrl.u32 %v565_v58, 16  ;;  %v662_v21 = vshll.u32 %v565_v58, 16  ;;  %v572_v45 = vld [vmem:[%s3202_s24 + $0x40] sm:$0xf] }
  0x1f   : > { %2964 = vmatprep.mubr.msk.bf16.mxu0 %vm232_vm1, %v2633_v0  ;;  %v623_v19 = vsel %vm3262_vm4, %v618_v1, %v622_v46  ;;  %v642_v20 = vrot.slane %v641_v2, 4  ;;  %v668_v22 = vshll.u32 %v566_v63, 16  ;;  %v656_v24 = vrot.slane %v654_v10, 5  ;;  %v573_v50 = vld [vmem:[%s3202_s24 + $0x44] sm:$0x1] }
  0x20   : > { %v651_v23 = vor.u32 %v650_v9, %v646_v3  ;;  %v661_v25 = vrot.slane %v659_v11, 4  ;;  %v664_v28 = vrot.slane %v662_v21, 5  ;;  %v672_v31 = vshrl.u32 %v566_v63, 16  ;;  %v574_v51 = vld [vmem:[%s3202_s24 + $0x48] sm:$0xf] }
  0x21   : > { %v647_v27 = vsel %vm3262_vm4, %v642_v20, %v646_v3  ;;  %v670_v29 = vrot.slane %v668_v22, 5  ;;  %v678_v32 = vshll.u32 %v567_v5, 16  ;;  %v683_v34 = vshrl.u32 %v568_v18, 16  ;;  %v575_v62 = vld [vmem:[%s3202_s24 + $0x4c] sm:$0xf] }
  0x22   : > { %2947 = vmatmul.mubr.msk.bf16.vlgmr.msra.gmra.mxu1 %vm232_vm1, %v3116_v14  ;;  %v633_v14 = vsel %vm3262_vm4, %v628_v8, %v632_v52  ;;  %v665_v35 = vor.u32 %v664_v28, %v661_v25  ;;  %v686_v36 = vshll.u32 %v568_v18, 16  ;;  %v692_v37 = vshll.u32 %v569_v26, 16  ;;  %v576_v3 = vld [vmem:[%s3202_s24 + $0x50] sm:$0x1]  ;;  %v577_v5 = vld [vmem:[%s3202_s24 + $0x54] sm:$0xf] }
  0x23   : > { %2981 = vmatpush3.bf16.msra.mxu1 %v3237_v15  ;;  %2950 = vmatprep.mubr.msk.bf16.mxu1 %vm232_vm1, %v3240_v16  ;;  %v3292_v15 = vcombine.low %v623_v19, %v633_v14  ;;  %v652_v16 = vrot.slane %v651_v23, 4  ;;  %v696_v38 = vshrl.u32 %v569_v26, 16  ;;  %v674_v41 = vrot.slane %v672_v31, 4  ;;  %v578_v31 = vld [vmem:[%s3202_s24 + $0x58] sm:$0xf] }
  0x24   : > { %3096 = vmatprep.subr.msk.bf16.mxu1 %vm257_vm0, %v3277_v7  ;;  %v680_v42 = vrot.slane %v678_v32, 5  ;;  %v685_v43 = vrot.slane %v683_v34, 4  ;;  %v666_v47 = vrot.slane %v665_v35, 4  ;;  %v688_v48 = vrot.slane %v686_v36, 5  ;;  %v579_v36 = vld [vmem:[%s3202_s24 + $0x5c] sm:$0x1] }
  0x25   : > { %2965 = vmatmul.mubr.msk.bf16.vlgmr.msra.gmra.mxu0 %vm232_vm1, %v3292_v15  ;;  %v657_v40 = vsel %vm3262_vm4, %v652_v16, %v656_v24  ;;  %v694_v49 = vrot.slane %v692_v37, 5  ;;  %v698_v52 = vrot.slane %v696_v38, 4  ;;  %v702_v53 = vshll.u32 %v570_v33, 16 }
  0x26   : > { %2999 = vmatpush3.bf16.msra.mxu0 %v3244_v17  ;;  %v3309_v46 = vcombine.low %v647_v27, %v657_v40  ;;  %v675_v17 = vor.u32 %v674_v41, %v670_v29  ;;  %v707_v54 = vshrl.u32 %v571_v39, 16  ;;  %v671_v55 = vsel %vm3262_vm4, %v666_v47, %v670_v29 }
  0x27   : > { %3097 = vmatprep.subr.msk.bf16.mxu0 %vm257_vm0, %v3299_v30  ;;  %v689_v56 = vor.u32 %v688_v48, %v685_v43  ;;  %v710_v57 = vshll.u32 %v571_v39, 16  ;;  %v716_v58 = vshll.u32 %v572_v45, 16  ;;  %v704_v60 = vrot.slane %v702_v53, 5 }
  0x28   : > { %2968 = vmatprep.mubr.msk.bf16.mxu0 %vm232_vm1, %v3309_v46  ;;  %v676_v59 = vrot.slane %v675_v17, 4  ;;  %v709_v61 = vrot.slane %v707_v54, 4  ;;  %v720_v2 = vshrl.u32 %v572_v45, 16  ;;  %v726_v10 = vshll.u32 %v573_v50, 16 }
  0x29   : > { %v690_v63 = vrot.slane %v689_v56, 4  ;;  %v712_v0 = vrot.slane %v710_v57, 5  ;;  %v718_v1 = vrot.slane %v716_v58, 5  ;;  %v734_v23 = vshll.u32 %v574_v51, 16 }
  0x2a   : > { %2951 = vmatmul.mubr.msk.bf16.gmra.mxu1 %vm232_vm1, %v3205_v4  ;;  %v699_v4 = vor.u32 %v698_v52, %v694_v49  ;;  %v681_v8 = vsel %vm3262_vm4, %v676_v59, %v680_v42  ;;  %v722_v20 = vrot.slane %v720_v2, 4  ;;  %v728_v22 = vrot.slane %v726_v10, 5  ;;  %v3118_v42 = vld [vmem:[%s3202_s24 + $0x60] sm:$0xff]  }
  0x2b   : > { %2954 = vmatprep.mubr.msk.bf16.mxu1 %vm232_vm1, %v3211_v6  ;;  %v731_v6 = vshrl.u32 %v574_v51, 16  ;;  %v3328_v11 = vcombine.low %v671_v55, %v681_v8  ;;  %v695_v18 = vsel %vm3262_vm4, %v690_v63, %v694_v49  ;;  %v713_v19 = vor.u32 %v712_v0, %v709_v61  ;;  %v581_v2 = vld [vmem:[%s3202_s24 + $0x64] sm:$0xf] }
  0x2c   : > { %v700_v9 = vrot.slane %v699_v4, 4  ;;  %v723_v26 = vor.u32 %v722_v20, %v718_v1  ;;  %v740_v27 = vshll.u32 %v575_v62, 16  ;;  %v736_v28 = vrot.slane %v734_v23, 5  ;;  %v3122_v23 = vld [vmem:[%s3202_s24 + $0x90] sm:$0xff]  }
  0x2d   : > { %v733_v14 = vrot.slane %v731_v6, 4  ;;  %2969 = vmatmul.mubr.msk.bf16.gmra.mxu0 %vm232_vm1, %v3328_v11  ;;  %v714_v25 = vrot.slane %v713_v19, 4  ;;  %v744_v29 = vshrl.u32 %v575_v62, 16  ;;  %v750_v16 = vshll.u32 %v576_v3, 16  ;;  %v3119_v62 = vld [vmem:[%s3202_s24 + $0x6c] sm:$0xff]   ;;  %v3121_v6 = vld [vmem:[%s3202_s24 + $0x84] sm:$0xff]  }
  0x2e   : > { %v705_v21 = vsel %vm3262_vm4, %v700_v9, %v704_v60  ;;  %v755_v32 = vshrl.u32 %v577_v5, 16  ;;  %v724_v34 = vrot.slane %v723_v26, 4  ;;  %v742_v35 = vrot.slane %v740_v27, 5  ;;  %v3120_v9 = vld [vmem:[%s3202_s24 + $0x78] sm:$0xff]  }
  0x2f   : > { %v3336_v24 = vcombine.low %v695_v18, %v705_v21  ;;  %v719_v33 = vsel %vm3262_vm4, %v714_v25, %v718_v1  ;;  %v758_v37 = vshll.u32 %v577_v5, 16  ;;  %v746_v38 = vrot.slane %v744_v29, 4  ;;  %v580_v1 = vld [vmem:[%s3202_s24 + $0x60] sm:$0xf]  ;;  %v582_v21 = vld [vmem:[%s3202_s24 + $0x68] sm:$0x1] }
  0x30   : > { %v752_v39 = vrot.slane %v750_v16, 5  ;;  %v757_v40 = vrot.slane %v755_v32, 4  ;;  %v729_v41 = vsel %vm3262_vm4, %v724_v34, %v728_v22  ;;  %v764_v45 = vshll.u32 %v578_v31, 16  ;;  %v3123_v25 = vld [vmem:[%s3202_s24 + $0x9c] sm:$0xff]   ;;  %v3124_v16 = vld [vmem:[%s3202_s24 + $0xa8] sm:$0xff]   ;;  %v3405_v32 = vld [vmem:[%s3202_s24 + $0xb4] sm:$0xff]  }
  0x31   : > { %2972 = vmatprep.mubr.msk.bf16.mxu0 %vm232_vm1, %v3336_v24  ;;  %v760_v43 = vrot.slane %v758_v37, 5  ;;  %v768_v47 = vshrl.u32 %v578_v31, 16  ;;  %v2638_v48 = vcombine.low %v719_v33, %v729_v41  ;;  %v747_v50 = vor.u32 %v746_v38, %v742_v35  ;;  %v3413_v33 = vld [vmem:[%s3202_s24 + $0xc0] sm:$0xff]   ;;  %v2737_v34 = vld [vmem:[%s3202_s24 + $0xd8] sm:$0xf] }
  0x32   : > { %2955 = vmatmul.mubr.msk.bf16.gmra.mxu1 %vm232_vm1, %v3226_v12  ;;  %v737_v12 = vor.u32 %v736_v28, %v733_v14  ;;  %v774_v51 = vshll.u32 %v579_v36, 16  ;;  %v1400_v61 = vsel %vm257_vm0, %v3277_v7, 0  ;;  %v977_v7 = vshrl.u32 %v580_v1, 16  ;;  %v2738_v36 = vld [vmem:[%s3202_s24 + $0xdc] sm:$0xf] }
  0x33   : > { %2958 = vmatprep.mubr.msk.bf16.mxu1 %vm232_vm1, %v3230_v13  ;;  %v761_v17 = vor.u32 %v760_v43, %v757_v40  ;;  %v766_v13 = vrot.slane %v764_v45, 5  ;;  %v770_v52 = vrot.slane %v768_v47, 4  ;;  %v748_v54 = vrot.slane %v747_v50, 4  ;;  %v2740_v41 = vld [vmem:[%s3202_s24 + $0xe4] sm:$0xf] }
  0x34   : > { %v738_v49 = vrot.slane %v737_v12, 4  ;;  %v776_v57 = vrot.slane %v774_v51, 5  ;;  %v980_v3 = vshll.u32 %v580_v1, 16  ;;  %v986_v5 = vshll.u32 %v581_v2, 16 }
  0x35   : > { %2973 = vmatmul.mubr.msk.bf16.gmra.mxu0 %vm232_vm1, %v2638_v48  ;;  %v762_v55 = vrot.slane %v761_v17, 4  ;;  %v771_v56 = vor.u32 %v770_v52, %v766_v13  ;;  %v753_v58 = vsel %vm3262_vm4, %v748_v54, %v752_v39  ;;  %v990_v8 = vshrl.u32 %v581_v2, 16  ;;  %v2739_v52 = vld [vmem:[%s3202_s24 + $0xe0] sm:$0x1]  ;;  %v3129_v54 = vld [vmem:[%s3202_s24 + $0xf0] sm:$0xff]  }
  0x36   : > { %v743_v53 = vsel %vm3262_vm4, %v738_v49, %v742_v35  ;;  %v1631_v10 = vsel %vm257_vm0, %v3299_v30, 0  ;;  %v982_v18 = vrot.slane %v980_v3, 5  ;;  %v988_v19 = vrot.slane %v986_v5, 5  ;;  %v3127_v35 = vld [vmem:[%s3202_s24 + $0xd8] sm:$0xff]   ;;  %v3128_v49 = vld [vmem:[%s3202_s24 + $0xe4] sm:$0xff]  }
  0x37   : > { %v2639_v59 = vcombine.low %v743_v53, %v753_v58  ;;  %v767_v4 = vsel %vm3262_vm4, %v762_v55, %v766_v13  ;;  %v772_v60 = vrot.slane %v771_v56, 4  ;;  %v992_v20 = vrot.slane %v990_v8, 4  ;;  %v2743_v55 = vld [vmem:[%s3202_s24 + $0xf0] sm:$0xf] }
  0x38   : > { %v996_v14 = vshll.u32 %v582_v21, 16  ;;  %v1803_v12 = vshrl.u32 %v2737_v34, 16  ;;  %v1806_v38 = vshll.u32 %v2737_v34, 16  ;;  %v1812_v39 = vshll.u32 %v2738_v36, 16 }
  0x39   : > { %2976 = vmatprep.mubr.msk.bf16.mxu0 %vm232_vm1, %v2639_v59  ;;  %v777_v63 = vsel %vm3262_vm4, %v772_v60, %v776_v57  ;;  %v993_v22 = vor.u32 %v992_v20, %v988_v19  ;;  %v1816_v40 = vshrl.u32 %v2738_v36, 16  ;;  %v1827_v43 = vshrl.u32 %v2740_v41, 16 }
  0x3a   : > { %2959 = vmatmul.mubr.msk.bf16.gmra.mxu1 %vm232_vm1, %v3118_v42  ;;  %v2640_v0 = vcombine.low %v767_v4, %v777_v63  ;;  %v998_v28 = vrot.slane %v996_v14, 5  ;;  %v2741_v42 = vld [vmem:[%s3202_s24 + $0xe8] sm:$0xf]  ;;  %v1830_v45 = vshll.u32 %v2740_v41, 16  ;;  %v1805_v50 = vrot.slane %v1803_v12, 4 }
  0x3b   : > { %2982 = vmatprep.mubr.msk.bf16.mxu1 %vm232_vm1, %v3292_v15  ;;  %v2761_v15 = vld [vmem:[%s3752_s1 + $0xa] sm:$0x3]  ;;  %v994_v27 = vrot.slane %v993_v22, 4  ;;  %v1836_v47 = vshll.u32 %v2741_v42, 16  ;;  %v1808_v51 = vrot.slane %v1806_v38, 5  ;;  %v3427_v17 = vrot.slane %v1812_v39, 5 }
  0x3c   : > { %v2045_v37 = vsel %vm257_vm0, %v2761_v15, 0  ;;  %v1818_v13 = vrot.slane %v1816_v40, 4  ;;  %v1829_v56 = vrot.slane %v1827_v43, 4  ;;  %v1832_v57 = vrot.slane %v1830_v45, 5  ;;  %v2744_v4 = vld [vmem:[%s3202_s24 + $0xf4] sm:$0xf] }
  0x3d   : > { %2977 = vmatmul.mubr.msk.bf16.gmra.mxu0 %vm232_vm1, %v2640_v0  ;;  %v999_v29 = vsel %vm3262_vm4, %v994_v27, %v998_v28  ;;  %v3433_v58 = vrot.slane %v1836_v47, 5  ;;  %v1809_v60 = vor.u32 %v1808_v51, %v1805_v50  ;;  %v2742_v63 = vld [vmem:[%s3202_s24 + $0xec] sm:$0x1]  ;;  %v1854_v1 = vshll.u32 %v2743_v55, 16 }
  0x3e   : > { %3000 = vmatprep.mubr.msk.bf16.mxu0 %vm232_vm1, %v3119_v62  ;;  %v1822_v62 = vshll.u32 %v2739_v52, 16  ;;  %v1860_v2 = vshll.u32 %v2744_v4, 16  ;;  %v1833_v3 = vor.u32 %v1832_v57, %v1829_v56  ;;  %v1846_v8 = vshll.u32 %v2742_v63, 16  ;;  %v2752_v56 = vld [vmem:[%s3202_s24 + $0x114] sm:$0xf] }
  0x3f   : > { %v1856_v21 = vrot.slane %v1854_v1, 5  ;;  %v1923_v1 = vshrl.u32 %v2752_v56, 16 }
  0x40   : > { %v3449_v22 = vrot.slane %v1860_v2, 5  ;;  %v1834_v27 = vrot.slane %v1833_v3, 4  ;;  %v2755_v2 = vld [vmem:[%s3202_s24 + $0x120] sm:$0xf]  ;;  %v1926_v3 = vshll.u32 %v2752_v56, 16 }
  0x42   : > { %2983 = vmatmul.mubr.msk.bf16.vlgmr.msra.gmra.mxu1 %vm232_vm1, %v3309_v46  ;;  %v979_v46 = vrot.slane %v977_v7, 4  ;;  %v3130_v7 = vld [vmem:[%s3202_s24 + $0xfc] sm:$0xff]   ;;  %v1839_v43 = vsel %vm3262_vm4, %v1834_v27, %v3433_v58 }
  0x43   : > { %3017 = vmatpush3.bf16.msra.mxu1 %v1400_v61  ;;  %2986 = vmatprep.mubr.msk.bf16.mxu1 %vm232_vm1, %v3328_v11  ;;  %v2794_v11 = vld [vmem:[%s3752_s1 + $0x8] sm:$0x3]  ;;  %v1819_v61 = vor.u32 %v1818_v13, %v3427_v17 }
  0x44   : > { %3098 = vmatprep.subr.msk.bf16.mxu1 %vm257_vm0, %v2761_v15  ;;  %v983_v30 = vor.u32 %v982_v18, %v979_v46  ;;  %v2276_v53 = vsel %vm257_vm0, %v2794_v11, 0  ;;  %v1864_v15 = vshrl.u32 %v2744_v4, 16  ;;  %v1824_v18 = vrot.slane %v1822_v62, 5 }
  0x45   : > { %3001 = vmatmul.mubr.msk.bf16.vlgmr.msra.gmra.mxu0 %vm232_vm1, %v3120_v9  ;;  %v1820_v46 = vrot.slane %v1819_v61, 4 }
  0x46   : > { %3035 = vmatpush3.bf16.msra.mxu0 %v1631_v10  ;;  %3004 = vmatprep.mubr.msk.bf16.mxu0 %vm232_vm1, %v3121_v6  ;;  %v984_v26 = vrot.slane %v983_v30, 4  ;;  %v3131_v10 = vld [vmem:[%s3202_s24 + $0x108] sm:$0xff]   ;;  %v1866_v14 = vrot.slane %v1864_v15, 4  ;;  %v2756_v15 = vld [vmem:[%s3202_s24 + $0x124] sm:$0xf] }
  0x47   : > { %3099 = vmatprep.subr.msk.bf16.mxu0 %vm257_vm0, %v2794_v11  ;;  %v2747_v11 = vld [vmem:[%s3202_s24 + $0x100] sm:$0xf]  ;;  %v2749_v30 = vld [vmem:[%s3202_s24 + $0x108] sm:$0xf] }
  0x48   : > { %v1899_v34 = vshrl.u32 %v2749_v30, 16 }
  0x4a   : > { %2987 = vmatmul.mubr.msk.bf16.gmra.mxu1 %vm232_vm1, %v3336_v24  ;;  %v989_v24 = vsel %vm3262_vm4, %v984_v26, %v988_v19  ;;  %v2745_v19 = vld [vmem:[%s3202_s24 + $0xf8] sm:$0x1]  ;;  %v2750_v26 = vld [vmem:[%s3202_s24 + $0x10c] sm:$0xf] }
  0x4b   : > { %2990 = vmatprep.mubr.msk.bf16.mxu1 %vm232_vm1, %v2638_v48  ;;  %v2650_v31 = vcombine.low %v989_v24, %v999_v29  ;;  %v1840_v48 = vshrl.u32 %v2741_v42, 16  ;;  %v1848_v24 = vrot.slane %v1846_v8, 5  ;;  %v1870_v29 = vshll.u32 %v2745_v19, 16  ;;  %v3132_v42 = vld [vmem:[%s3202_s24 + $0x114] sm:$0xff]  }
  0x4c   : > { %v1908_v12 = vshll.u32 %v2750_v26, 16  ;;  %v1912_v38 = vshrl.u32 %v2750_v26, 16  ;;  %v1950_v19 = vshll.u32 %v2755_v2, 16  ;;  %v3136_v26 = vld [vmem:[%s3202_s24 + $0x144] sm:$0xff]  }
  0x4d   : > { %3005 = vmatmul.mubr.msk.bf16.gmra.mxu0 %vm232_vm1, %v3122_v23  ;;  %v1872_v47 = vrot.slane %v1870_v29, 5 }
  0x4e   : > { %3008 = vmatprep.mubr.msk.bf16.mxu0 %vm232_vm1, %v3123_v25 }
  0x52   : > { %2991 = vmatmul.mubr.msk.bf16.gmra.mxu1 %vm232_vm1, %v2639_v59  ;;  %v1842_v59 = vrot.slane %v1840_v48, 4  ;;  %v2748_v48 = vld [vmem:[%s3202_s24 + $0x104] sm:$0x1] }
  0x53   : > { %2994 = vmatprep.mubr.msk.bf16.mxu1 %vm232_vm1, %v2640_v0  ;;  %v1851_v0 = vshrl.u32 %v2743_v55, 16  ;;  %v1914_v55 = vrot.slane %v1912_v38, 4  ;;  %v1894_v4 = vshll.u32 %v2748_v48, 16 }
  0x54   : > { %v1843_v5 = vor.u32 %v1842_v59, %v3433_v58 }
  0x55   : > { %3009 = vmatmul.mubr.msk.bf16.gmra.mxu0 %vm232_vm1, %v3124_v16  ;;  %v1853_v20 = vrot.slane %v1851_v0, 4 }
  0x56   : > { %3012 = vmatprep.mubr.msk.bf16.mxu0 %vm232_vm1, %v3405_v32  ;;  %v1844_v28 = vrot.slane %v1843_v5, 4 }
  0x57   : > { %v1857_v39 = vor.u32 %v1856_v21, %v1853_v20  ;;  %v1956_v20 = vshll.u32 %v2756_v15, 16  ;;  %v1960_v21 = vshrl.u32 %v2756_v15, 16 }
  0x58   : > { %v1849_v45 = vsel %vm3262_vm4, %v1844_v28, %v1848_v24 }
  0x59   : > { %v1858_v57 = vrot.slane %v1857_v39, 4  ;;  %v2763_v61 = vcombine.low %v1839_v43, %v1849_v45 }
  0x5a   : > { %2995 = vmatmul.mubr.msk.bf16.gmra.mxu1 %vm232_vm1, %v2650_v31  ;;  %v1888_v31 = vshrl.u32 %v2747_v11, 16 }
  0x5b   : > { %3018 = vmatprep.mubr.msk.bf16.mxu1 %vm232_vm1, %v3120_v9  ;;  %v2746_v9 = vld [vmem:[%s3202_s24 + $0xfc] sm:$0xf] }
  0x5c   : > { %v1890_v51 = vrot.slane %v1888_v31, 4  ;;  %v2758_v31 = vld [vmem:[%s3202_s24 + $0x12c] sm:$0xf] }
  0x5d   : > { %3013 = vmatmul.mubr.msk.bf16.gmra.mxu0 %vm232_vm1, %v3413_v33  ;;  %v1974_v48 = vshll.u32 %v2758_v31, 16 }
  0x5e   : > { %3036 = vmatprep.mubr.msk.bf16.mxu0 %vm232_vm1, %v3127_v35  ;;  %v1902_v35 = vshll.u32 %v2749_v30, 16 }
  0x60   : > { %v1904_v13 = vrot.slane %v1902_v35, 5  ;;  %v1952_v35 = vrot.slane %v1950_v19, 5 }
  0x62   : > { %3019 = vmatmul.mubr.msk.bf16.vlgmr.msra.gmra.mxu1 %vm232_vm1, %v3121_v6  ;;  %v1810_v6 = vrot.slane %v1809_v60, 4  ;;  %v2753_v60 = vld [vmem:[%s3202_s24 + $0x118] sm:$0xf] }
  0x63   : > { %3053 = vmatpush3.bf16.msra.mxu1 %v2045_v37  ;;  %3022 = vmatprep.mubr.msk.bf16.mxu1 %vm232_vm1, %v3122_v23  ;;  %v1875_v23 = vshrl.u32 %v2746_v9, 16  ;;  %v1825_v37 = vsel %vm3262_vm4, %v1820_v46, %v1824_v18  ;;  %v1932_v5 = vshll.u32 %v2753_v60, 16  ;;  %v1936_v8 = vshrl.u32 %v2753_v60, 16 }
  0x64   : > { %v1815_v36 = vsel %vm3262_vm4, %v1810_v6, %v3427_v17  ;;  %v1901_v17 = vrot.slane %v1899_v34, 4  ;;  %v1896_v46 = vrot.slane %v1894_v4, 5  ;;  %v1947_v18 = vshrl.u32 %v2755_v2, 16 }
  0x65   : > { %3037 = vmatmul.mubr.msk.bf16.vlgmr.msra.gmra.mxu0 %vm232_vm1, %v3128_v49  ;;  %v1877_v40 = vrot.slane %v1875_v23, 4  ;;  %v3133_v49 = vld [vmem:[%s3202_s24 + $0xcc] sm:$0xff]   ;;  %v2762_v52 = vcombine.low %v1815_v36, %v1825_v37  ;;  %v1934_v28 = vrot.slane %v1932_v5, 5  ;;  %v1938_v24 = vrot.slane %v1936_v8, 4 }
  0x66   : > { %3071 = vmatpush3.bf16.msra.mxu0 %v2276_v53  ;;  %3040 = vmatprep.mubr.msk.bf16.mxu0 %vm232_vm1, %v3129_v54  ;;  %v2751_v53 = vld [vmem:[%s3202_s24 + $0x110] sm:$0x1]  ;;  %v3476_v54 = vrot.slane %v1908_v12, 5  ;;  %v1905_v63 = vor.u32 %v1904_v13, %v1901_v17  ;;  %v1949_v34 = vrot.slane %v1947_v18, 4  ;;  %v1958_v36 = vrot.slane %v1956_v20, 5 }
  0x67   : > { %v1918_v0 = vshll.u32 %v2751_v53, 16  ;;  %v1962_v37 = vrot.slane %v1960_v21, 4  ;;  %v2759_v12 = vld [vmem:[%s3202_s24 + $0x130] sm:$0xf]  ;;  %v1939_v43 = vor.u32 %v1938_v24, %v1934_v28  ;;  %v3138_v53 = vld [vmem:[%s3202_s24 + $0x15c] sm:$0xff]  }
  0x68   : > { %v3137_v13 = vld [vmem:[%s3202_s24 + $0x150] sm:$0xff]  }
  0x69   : > { %v1920_v23 = vrot.slane %v1918_v0, 5  ;;  %v1940_v56 = vrot.slane %v1939_v43, 4  ;;  %v2760_v0 = vld [vmem:[%s3202_s24 + $0x134] sm:$0x1] }
  0x6a   : > { %3023 = vmatmul.mubr.msk.bf16.gmra.mxu1 %vm232_vm1, %v3123_v25  ;;  %v1878_v25 = vshll.u32 %v2746_v9, 16  ;;  %v1863_v9 = vsel %vm3262_vm4, %v1858_v57, %v3449_v22 }
  0x6b   : > { %3026 = vmatprep.mubr.msk.bf16.mxu1 %vm232_vm1, %v3124_v16  ;;  %v1884_v16 = vshll.u32 %v2747_v11, 16  ;;  %v3135_v11 = vld [vmem:[%s3202_s24 + $0x12c] sm:$0xff]  }
  0x6c   : > { %v1880_v41 = vrot.slane %v1878_v25, 5  ;;  %v1925_v25 = vrot.slane %v1923_v1, 4 }
  0x6d   : > { %3041 = vmatmul.mubr.msk.bf16.gmra.mxu0 %vm232_vm1, %v3130_v7  ;;  %v3473_v50 = vrot.slane %v1884_v16, 5  ;;  %v1915_v7 = vor.u32 %v1914_v55, %v3476_v54  ;;  %v2754_v16 = vld [vmem:[%s3202_s24 + $0x11c] sm:$0x1] }
  0x6e   : > { %3044 = vmatprep.mubr.msk.bf16.mxu0 %vm232_vm1, %v3131_v10  ;;  %v1881_v59 = vor.u32 %v1880_v41, %v1877_v40  ;;  %v2757_v40 = vld [vmem:[%s3202_s24 + $0x128] sm:$0x1]  ;;  %v1942_v45 = vshll.u32 %v2754_v16, 16 }
  0x6f   : > { %v1891_v62 = vor.u32 %v1890_v51, %v3473_v50  ;;  %v1916_v27 = vrot.slane %v1915_v7, 4  ;;  %v1963_v51 = vor.u32 %v1962_v37, %v1958_v36  ;;  %v1966_v17 = vshll.u32 %v2757_v40, 16 }
  0x70   : > { %v1882_v6 = vrot.slane %v1881_v59, 4  ;;  %v1944_v57 = vrot.slane %v1942_v45, 5  ;;  %v1976_v59 = vrot.slane %v1974_v48, 5 }
  0x71   : > { %v1892_v30 = vrot.slane %v1891_v62, 4  ;;  %v1921_v41 = vsel %vm3262_vm4, %v1916_v27, %v1920_v23  ;;  %v1964_v62 = vrot.slane %v1963_v51, 4  ;;  %v3142_v23 = vld [vmem:[%s3202_s24 + $0x18c] sm:$0xff]  }
  0x72   : > { %3027 = vmatmul.mubr.msk.bf16.gmra.mxu1 %vm232_vm1, %v3405_v32  ;;  %v1867_v32 = vor.u32 %v1866_v14, %v3449_v22  ;;  %v1906_v14 = vrot.slane %v1905_v63, 4  ;;  %v1928_v22 = vrot.slane %v1926_v3, 5  ;;  %v1887_v38 = vsel %vm3262_vm4, %v1882_v6, %v3473_v50  ;;  %v3140_v6 = vld [vmem:[%s3202_s24 + $0x174] sm:$0xff]  }
  0x73   : > { %3030 = vmatprep.mubr.msk.bf16.mxu1 %vm232_vm1, %v3413_v33  ;;  %v3134_v33 = vld [vmem:[%s3202_s24 + $0x120] sm:$0xff]   ;;  %v1897_v39 = vsel %vm3262_vm4, %v1892_v30, %v1896_v46  ;;  %v1953_v50 = vor.u32 %v1952_v35, %v1949_v34  ;;  %v1968_v63 = vrot.slane %v1966_v17, 5  ;;  %v1945_v2 = vsel %vm3262_vm4, %v1940_v56, %v1944_v57 }
  0x74   : > { %v1868_v58 = vrot.slane %v1867_v32, 4  ;;  %v1911_v32 = vsel %vm3262_vm4, %v1906_v14, %v3476_v54  ;;  %v1990_v3 = vshll.u32 %v2760_v0, 16  ;;  %v3141_v30 = vld [vmem:[%s3202_s24 + $0x180] sm:$0xff]  }
  0x75   : > { %3045 = vmatmul.mubr.msk.bf16.gmra.mxu0 %vm232_vm1, %v3132_v42  ;;  %v1929_v42 = vor.u32 %v1928_v22, %v1925_v25  ;;  %v2766_v54 = vcombine.low %v1911_v32, %v1921_v41  ;;  %v1969_v8 = vsel %vm3262_vm4, %v1964_v62, %v1968_v63  ;;  %v3143_v25 = vld [vmem:[%s3202_s24 + $0x198] sm:$0xff]  }
  0x76   : > { %3048 = vmatprep.mubr.msk.bf16.mxu0 %vm232_vm1, %v3134_v33  ;;  %v1873_v10 = vsel %vm3262_vm4, %v1868_v58, %v1872_v47  ;;  %v1971_v47 = vshrl.u32 %v2758_v31, 16  ;;  %v1984_v33 = vshrl.u32 %v2759_v12, 16  ;;  %v1992_v20 = vrot.slane %v1990_v3, 5 }
  0x77   : > { %v2764_v29 = vcombine.low %v1863_v9, %v1873_v10  ;;  %v1930_v55 = vrot.slane %v1929_v42, 4  ;;  %v3139_v9 = vld [vmem:[%s3202_s24 + $0x168] sm:$0xff]  }
  0x78   : > { %v1973_v58 = vrot.slane %v1971_v47, 4  ;;  %v1986_v60 = vrot.slane %v1984_v33, 4 }
  0x79   : > { %v1935_v1 = vsel %vm3262_vm4, %v1930_v55, %v1934_v28 }
  0x7a   : > { %3031 = vmatmul.mubr.msk.bf16.gmra.mxu1 %vm232_vm1, %v3133_v49  ;;  %v1980_v49 = vshll.u32 %v2759_v12, 16  ;;  %v1977_v15 = vor.u32 %v1976_v59, %v1973_v58  ;;  %v2767_v10 = vcombine.low %v1935_v1, %v1945_v2  ;;  %v3152_v12 = vmov 0.0|0.0  }
  0x7b   : > { %3054 = vmatprep.mubr.msk.bf16.mxu1 %vm232_vm1, %v2762_v52  ;;  %v2765_v52 = vcombine.low %v1887_v38, %v1897_v39  ;;  %2526 = vst.msk [vmem:[%s3562_s17 + $0x4] sm:$0xf] %vm2524_vm6, %v3152_v12  ;;  %2528 = vst.msk [vmem:[%s3562_s17 + $0xc] sm:$0xf] %vm2524_vm6, %v3152_v12 }
  0x7c   : > { %v1982_v4 = vrot.slane %v1980_v49, 5  ;;  %v1978_v18 = vrot.slane %v1977_v15, 4  ;;  %2530 = vst.msk [vmem:[%s3562_s17 + $0x14] sm:$0xf] %vm2524_vm6, %v3152_v12  ;;  %2532 = vst.msk [vmem:[%s3562_s17 + $0x1c] sm:$0xf] %vm2524_vm6, %v3152_v12 }
  0x7d   : > { %3049 = vmatmul.mubr.msk.bf16.gmra.mxu0 %vm232_vm1, %v3135_v11  ;;  %2534 = vst.msk [vmem:[%s3562_s17 + $0x24] sm:$0xf] %vm2524_vm6, %v3152_v12  ;;  %2536 = vst.msk [vmem:[%s3562_s17 + $0x2c] sm:$0xf] %vm2524_vm6, %v3152_v12 }
  0x7e   : > { %3072 = vmatprep.mubr.msk.bf16.mxu0 %vm232_vm1, %v3136_v26  ;;  %v1987_v7 = vor.u32 %v1986_v60, %v1982_v4  ;;  %v1983_v21 = vsel %vm3262_vm4, %v1978_v18, %v1982_v4  ;;  %v3549_v26 = vld [vmem:[%s3753_s2] ss:$0 sm:$0xff]  ;;  %2538 = vst.msk [vmem:[%s3562_s17 + $0x34] sm:$0xf] %vm2524_vm6, %v3152_v12  ;;  %2540 = vst.msk [vmem:[%s3562_s17 + $0x3c] sm:$0xf] %vm2524_vm6, %v3152_v12 }
  0x80   : > { %v1988_v19 = vrot.slane %v1987_v7, 4 }
  0x82   : > { %3055 = vmatmul.mubr.msk.bf16.vlgmr.msra.gmra.mxu1 %vm232_vm1, %v2763_v61  ;;  %v1954_v61 = vrot.slane %v1953_v50, 4  ;;  %v1993_v11 = vsel %vm3262_vm4, %v1988_v19, %v1992_v20 }
  0x83   : > { %3058 = vmatprep.mubr.msk.bf16.mxu1 %vm232_vm1, %v2764_v29  ;;  %v2769_v14 = vcombine.low %v1983_v21, %v1993_v11 }
  0x84   : > { %v1959_v5 = vsel %vm3262_vm4, %v1954_v61, %v1958_v36 }
  0x85   : > { %3073 = vmatmul.mubr.msk.bf16.vlgmr.msra.gmra.mxu0 %vm232_vm1, %v3137_v13  ;;  %v2768_v46 = vcombine.low %v1959_v5, %v1969_v8 }
  0x86   : > { %3076 = vmatprep.mubr.msk.bf16.mxu0 %vm232_vm1, %v3138_v53 }
  0x8a   : > { %3059 = vmatmul.mubr.msk.bf16.gmra.mxu1 %vm232_vm1, %v2765_v52 }
  0x8b   : > { %3062 = vmatprep.mubr.msk.bf16.mxu1 %vm232_vm1, %v2766_v54 }
  0x8d   : > { %3077 = vmatmul.mubr.msk.bf16.gmra.mxu0 %vm232_vm1, %v3139_v9 }
  0x8e   : > { %3080 = vmatprep.mubr.msk.bf16.mxu0 %vm232_vm1, %v3140_v6 }
  0x92   : > { %3063 = vmatmul.mubr.msk.bf16.gmra.mxu1 %vm232_vm1, %v2767_v10 }
  0x93   : > { %3066 = vmatprep.mubr.msk.bf16.mxu1 %vm232_vm1, %v2768_v46 }
  0x95   : > { %3081 = vmatmul.mubr.msk.bf16.gmra.mxu0 %vm232_vm1, %v3141_v30 }
  0x96   : > { %3084 = vmatprep.mubr.msk.bf16.mxu0 %vm232_vm1, %v3142_v23 }
  0x9a   : > { %3067 = vmatmul.mubr.msk.bf16.gmra.mxu1 %vm232_vm1, %v2769_v14 }
  0x9d   : > { %3085 = vmatmul.mubr.msk.bf16.gmra.mxu0 %vm232_vm1, %v3143_v25 }
  0xd2   : > { %v2938_v44 = vpop.f32.mrf.mxu1 }
  0xd3   : > { %v375_v27 = vadd.f32 %v2938_v44, %v3549_v26  ;;  %v2930_v28 = vpop.f32.mrf.mxu0 }
  0xd4   : > { %v327_v22 = vpop.f32.mrf.mxu1  ;;  %v367_v29 = vadd.f32 %v2930_v28, %v3549_v26 }
  0xd5   : > { %392 = vst.msk [vmem:[#allocation2 + $0x50] sm:$0xff] %vm381_vm5, %v375_v27  ;;  %v373_v24 = vadd.f32 %v3549_v26, %v327_v22  ;;  %v295_v31 = vpop.f32.mrf.mxu0 }
  0xd6   : > { %v2939_v16 = vpop.f32.mrf.mxu1  ;;  %384 = vst.msk [vmem:[#allocation2 + $0x10] sm:$0xff] %vm381_vm5, %v367_v29  ;;  %v365_v35 = vadd.f32 %v3549_v26, %v295_v31 }
  0xd7   : > { %390 = vst.msk [vmem:[#allocation2 + $0x40] sm:$0xff] %vm381_vm5, %v373_v24  ;;  %v376_v34 = vadd.f32 %v2939_v16, %v3549_v26  ;;  %v2931_v37 = vpop.f32.mrf.mxu0 }
  0xd8   : > { %v330_v36 = vpop.f32.mrf.mxu1  ;;  %382 = vst.msk [vmem:[#allocation2] sm:$0xff] %vm381_vm5, %v365_v35  ;;  %v368_v39 = vadd.f32 %v2931_v37, %v3549_v26 }
  0xd9   : > { %393 = vst.msk [vmem:[#allocation2 + $0x58] sm:$0xff] %vm381_vm5, %v376_v34  ;;  %v374_v38 = vadd.f32 %v3549_v26, %v330_v36  ;;  %v298_v40 = vpop.f32.mrf.mxu0 }
  0xda   : > { %v2942_v32 = vpop.f32.mrf.mxu1  ;;  %385 = vst.msk [vmem:[#allocation2 + $0x18] sm:$0xff] %vm381_vm5, %v368_v39  ;;  %v366_v42 = vadd.f32 %v3549_v26, %v298_v40 }
  0xdb   : > { %391 = vst.msk [vmem:[#allocation2 + $0x48] sm:$0xff] %vm381_vm5, %v374_v38  ;;  %v379_v41 = vadd.f32 %v2942_v32, %v3549_v26  ;;  %v2934_v45 = vpop.f32.mrf.mxu0 }
  0xdc   : > { %v343_v43 = vpop.f32.mrf.mxu1  ;;  %383 = vst.msk [vmem:[#allocation2 + $0x8] sm:$0xff] %vm381_vm5, %v366_v42  ;;  %v371_v48 = vadd.f32 %v2934_v45, %v3549_v26  ;;  %v518_v16 = vld [vmem:[#allocation2 + $0x50] sm:$0xff] }
  0xdd   : > { %396 = vst.msk [vmem:[#allocation2 + $0x70] sm:$0xff] %vm381_vm5, %v379_v41  ;;  %v377_v47 = vadd.f32 %v3549_v26, %v343_v43  ;;  %v311_v33 = vpop.f32.mrf.mxu0  ;;  %v510_v52 = vld [vmem:[#allocation2 + $0x10] sm:$0xff] }
  0xde   : > { %v2943_v49 = vpop.f32.mrf.mxu1  ;;  %388 = vst.msk [vmem:[#allocation2 + $0x30] sm:$0xff] %vm381_vm5, %v371_v48  ;;  %v369_v51 = vadd.f32 %v3549_v26, %v311_v33  ;;  %v516_v12 = vld [vmem:[#allocation2 + $0x40] sm:$0xff] }
  0xdf   : > { %394 = vst.msk [vmem:[#allocation2 + $0x60] sm:$0xff] %vm381_vm5, %v377_v47  ;;  %v380_v50 = vadd.f32 %v2943_v49, %v3549_v26  ;;  %v2935_v13 = vpop.f32.mrf.mxu0  ;;  %v508_v57 = vld [vmem:[#allocation2] sm:$0xff] }
  0xe0   : > { %v346_v17 = vpop.f32.mrf.mxu1  ;;  %386 = vst.msk [vmem:[#allocation2 + $0x20] sm:$0xff] %vm381_vm5, %v369_v51  ;;  %v372_v54 = vadd.f32 %v2935_v13, %v3549_v26  ;;  %v519_v42 = vld [vmem:[#allocation2 + $0x58] sm:$0xff] }
  0xe1   : > { %397 = vst.msk [vmem:[#allocation2 + $0x78] sm:$0xff] %vm381_vm5, %v380_v50  ;;  %v378_v53 = vadd.f32 %v3549_v26, %v346_v17  ;;  %v314_v56 = vpop.f32.mrf.mxu0  ;;  %v511_v60 = vld [vmem:[#allocation2 + $0x18] sm:$0xff] }
  0xe2   : > { %v2948_v55 = vpop.f32.mrf.mxu1  ;;  %389 = vst.msk [vmem:[#allocation2 + $0x38] sm:$0xff] %vm381_vm5, %v372_v54  ;;  %v370_v59 = vadd.f32 %v3549_v26, %v314_v56  ;;  %v517_v33 = vld [vmem:[#allocation2 + $0x48] sm:$0xff] }
  0xe3   : > { %395 = vst.msk [vmem:[#allocation2 + $0x68] sm:$0xff] %vm381_vm5, %v378_v53  ;;  %v526_v58 = vadd.f32 %v2948_v55, %v510_v52  ;;  %v509_v2 = vld [vmem:[#allocation2 + $0x8] sm:$0xff] }
  0xe4   : > { %v445_v4 = vpop.f32.mrf.mxu1  ;;  %387 = vst.msk [vmem:[#allocation2 + $0x28] sm:$0xff] %vm381_vm5, %v370_v59  ;;  %v522_v53 = vld [vmem:[#allocation2 + $0x70] sm:$0xff] }
  0xe5   : > { %542 = vst.msk [vmem:[#allocation2 + $0x10] sm:$0xff] %vm381_vm5, %v526_v58  ;;  %v524_v61 = vadd.f32 %v508_v57, %v445_v4  ;;  %v2966_v0 = vpop.f32.mrf.mxu0  ;;  %v514_v15 = vld [vmem:[#allocation2 + $0x30] sm:$0xff] }
  0xe6   : > { %v2949_v62 = vpop.f32.mrf.mxu1  ;;  %v520_v59 = vld [vmem:[#allocation2 + $0x60] sm:$0xff] }
  0xe7   : > { %540 = vst.msk [vmem:[#allocation2] sm:$0xff] %vm381_vm5, %v524_v61  ;;  %v527_v63 = vadd.f32 %v2949_v62, %v511_v60  ;;  %v865_v3 = vpop.f32.mrf.mxu0  ;;  %v512_v8 = vld [vmem:[#allocation2 + $0x20] sm:$0xff] }
  0xe8   : > { %v448_v1 = vpop.f32.mrf.mxu1 }
  0xe9   : > { %543 = vst.msk [vmem:[#allocation2 + $0x18] sm:$0xff] %vm381_vm5, %v527_v63  ;;  %v525_v7 = vadd.f32 %v509_v2, %v448_v1  ;;  %v2967_v10 = vpop.f32.mrf.mxu0  ;;  %v515_v18 = vld [vmem:[#allocation2 + $0x38] sm:$0xff] }
  0xea   : > { %v2952_v5 = vpop.f32.mrf.mxu1 }
  0xeb   : > { %541 = vst.msk [vmem:[#allocation2 + $0x8] sm:$0xff] %vm381_vm5, %v525_v7  ;;  %v530_v9 = vadd.f32 %v2952_v5, %v514_v15  ;;  %v868_v21 = vpop.f32.mrf.mxu0  ;;  %v513_v44 = vld [vmem:[#allocation2 + $0x28] sm:$0xff] }
  0xec   : > { %v930_v6 = vld [vmem:[#allocation2 + $0x10] sm:$0xff]  ;;  %v461_v46 = vpop.f32.mrf.mxu1  ;;  %v521_v5 = vld [vmem:[#allocation2 + $0x68] sm:$0xff] }
  0xed   : > { %v946_v19 = vadd.f32 %v2966_v0, %v930_v6  ;;  %546 = vst.msk [vmem:[#allocation2 + $0x30] sm:$0xff] %vm381_vm5, %v530_v9  ;;  %v528_v20 = vadd.f32 %v512_v8, %v461_v46  ;;  %v2970_v22 = vpop.f32.mrf.mxu0  ;;  %v523_v0 = vld [vmem:[#allocation2 + $0x78] sm:$0xff] }
  0xee   : > { %v928_v11 = vld [vmem:[#allocation2] sm:$0xff]  ;;  %v2953_v30 = vpop.f32.mrf.mxu1 }
  0xef   : > { %962 = vst.msk [vmem:[#allocation2 + $0x10] sm:$0xff] %vm381_vm5, %v946_v19  ;;  %v944_v14 = vadd.f32 %v928_v11, %v865_v3  ;;  %544 = vst.msk [vmem:[#allocation2 + $0x20] sm:$0xff] %vm381_vm5, %v528_v20  ;;  %v531_v23 = vadd.f32 %v2953_v30, %v515_v18  ;;  %v881_v34 = vpop.f32.mrf.mxu0 }
  0xf0   : > { %v931_v25 = vld [vmem:[#allocation2 + $0x18] sm:$0xff]  ;;  %v464_v26 = vpop.f32.mrf.mxu1 }
  0xf1   : > { %960 = vst.msk [vmem:[#allocation2] sm:$0xff] %vm381_vm5, %v944_v14  ;;  %v947_v27 = vadd.f32 %v2967_v10, %v931_v25  ;;  %547 = vst.msk [vmem:[#allocation2 + $0x38] sm:$0xff] %vm381_vm5, %v531_v23  ;;  %v529_v28 = vadd.f32 %v513_v44, %v464_v26  ;;  %v2971_v39 = vpop.f32.mrf.mxu0 }
  0xf2   : > { %v929_v24 = vld [vmem:[#allocation2 + $0x8] sm:$0xff]  ;;  %v2956_v29 = vpop.f32.mrf.mxu1 }
  0xf3   : > { %963 = vst.msk [vmem:[#allocation2 + $0x18] sm:$0xff] %vm381_vm5, %v947_v27  ;;  %v945_v31 = vadd.f32 %v929_v24, %v868_v21  ;;  %545 = vst.msk [vmem:[#allocation2 + $0x28] sm:$0xff] %vm381_vm5, %v529_v28  ;;  %v534_v35 = vadd.f32 %v2956_v29, %v518_v16  ;;  %v884_v45 = vpop.f32.mrf.mxu0 }
  0xf4   : > { %v934_v36 = vld [vmem:[#allocation2 + $0x30] sm:$0xff]  ;;  %v477_v37 = vpop.f32.mrf.mxu1 }
  0xf5   : > { %961 = vst.msk [vmem:[#allocation2 + $0x8] sm:$0xff] %vm381_vm5, %v945_v31  ;;  %v950_v38 = vadd.f32 %v2970_v22, %v934_v36  ;;  %550 = vst.msk [vmem:[#allocation2 + $0x50] sm:$0xff] %vm381_vm5, %v534_v35  ;;  %v532_v32 = vadd.f32 %v516_v12, %v477_v37  ;;  %v2974_v51 = vpop.f32.mrf.mxu0 }
  0xf6   : > { %v932_v40 = vld [vmem:[#allocation2 + $0x20] sm:$0xff]  ;;  %v2957_v41 = vpop.f32.mrf.mxu1  ;;  %v1110_v18 = vld [vmem:[#allocation2 + $0x10] sm:$0xff] }
  0xf7   : > { %966 = vst.msk [vmem:[#allocation2 + $0x30] sm:$0xff] %vm381_vm5, %v950_v38  ;;  %v948_v43 = vadd.f32 %v932_v40, %v881_v34  ;;  %548 = vst.msk [vmem:[#allocation2 + $0x40] sm:$0xff] %vm381_vm5, %v532_v32  ;;  %v535_v47 = vadd.f32 %v2957_v41, %v519_v42  ;;  %v897_v55 = vpop.f32.mrf.mxu0 }
  0xf8   : > { %v935_v48 = vld [vmem:[#allocation2 + $0x38] sm:$0xff]  ;;  %v480_v49 = vpop.f32.mrf.mxu1  ;;  %v1108_v14 = vld [vmem:[#allocation2] sm:$0xff] }
  0xf9   : > { %964 = vst.msk [vmem:[#allocation2 + $0x20] sm:$0xff] %vm381_vm5, %v948_v43  ;;  %v951_v50 = vadd.f32 %v2971_v39, %v935_v48  ;;  %551 = vst.msk [vmem:[#allocation2 + $0x58] sm:$0xff] %vm381_vm5, %v535_v47  ;;  %v533_v17 = vadd.f32 %v517_v33, %v480_v49  ;;  %v2975_v60 = vpop.f32.mrf.mxu0 }
  0xfa   : > { %v933_v13 = vld [vmem:[#allocation2 + $0x28] sm:$0xff]  ;;  %v2960_v52 = vpop.f32.mrf.mxu1  ;;  %v1111_v22 = vld [vmem:[#allocation2 + $0x18] sm:$0xff] }
  0xfb   : > { %967 = vst.msk [vmem:[#allocation2 + $0x38] sm:$0xff] %vm381_vm5, %v951_v50  ;;  %v949_v54 = vadd.f32 %v933_v13, %v884_v45  ;;  %549 = vst.msk [vmem:[#allocation2 + $0x48] sm:$0xff] %vm381_vm5, %v533_v17  ;;  %v538_v56 = vadd.f32 %v2960_v52, %v522_v53  ;;  %v900_v2 = vpop.f32.mrf.mxu0 }
  0xfc   : > { %v938_v57 = vld [vmem:[#allocation2 + $0x50] sm:$0xff]  ;;  %v493_v58 = vpop.f32.mrf.mxu1  ;;  %v1109_v34 = vld [vmem:[#allocation2 + $0x8] sm:$0xff] }
  0xfd   : > { %965 = vst.msk [vmem:[#allocation2 + $0x28] sm:$0xff] %vm381_vm5, %v949_v54  ;;  %v954_v4 = vadd.f32 %v2974_v51, %v938_v57  ;;  %554 = vst.msk [vmem:[#allocation2 + $0x70] sm:$0xff] %vm381_vm5, %v538_v56  ;;  %v536_v61 = vadd.f32 %v520_v59, %v493_v58  ;;  %v2978_v9 = vpop.f32.mrf.mxu0 }
  0xfe   : > { %v936_v62 = vld [vmem:[#allocation2 + $0x40] sm:$0xff]  ;;  %v2961_v63 = vpop.f32.mrf.mxu1  ;;  %v1114_v39 = vld [vmem:[#allocation2 + $0x30] sm:$0xff] }
  0xff   : > { %970 = vst.msk [vmem:[#allocation2 + $0x50] sm:$0xff] %vm381_vm5, %v954_v4  ;;  %v952_v1 = vadd.f32 %v936_v62, %v897_v55  ;;  %552 = vst.msk [vmem:[#allocation2 + $0x60] sm:$0xff] %vm381_vm5, %v536_v61  ;;  %v539_v15 = vadd.f32 %v2961_v63, %v523_v0  ;;  %v913_v20 = vpop.f32.mrf.mxu0 }
 0x100   : > { %v939_v7 = vld [vmem:[#allocation2 + $0x58] sm:$0xff]  ;;  %v496_v3 = vpop.f32.mrf.mxu1  ;;  %v1112_v45 = vld [vmem:[#allocation2 + $0x20] sm:$0xff] }
 0x101   : > { %968 = vst.msk [vmem:[#allocation2 + $0x40] sm:$0xff] %vm381_vm5, %v952_v1  ;;  %v955_v8 = vadd.f32 %v2975_v60, %v939_v7  ;;  %555 = vst.msk [vmem:[#allocation2 + $0x78] sm:$0xff] %vm381_vm5, %v539_v15  ;;  %v537_v10 = vadd.f32 %v521_v5, %v496_v3  ;;  %v2979_v25 = vpop.f32.mrf.mxu0 }
 0x102   : > { %v937_v6 = vld [vmem:[#allocation2 + $0x48] sm:$0xff]  ;;  %v2984_v46 = vpop.f32.mrf.mxu1  ;;  %v1115_v51 = vld [vmem:[#allocation2 + $0x38] sm:$0xff] }
 0x103   : > { %971 = vst.msk [vmem:[#allocation2 + $0x58] sm:$0xff] %vm381_vm5, %v955_v8  ;;  %v953_v19 = vadd.f32 %v937_v6, %v900_v2  ;;  %553 = vst.msk [vmem:[#allocation2 + $0x68] sm:$0xff] %vm381_vm5, %v537_v10  ;;  %v1126_v21 = vadd.f32 %v2984_v46, %v1110_v18  ;;  %v916_v24 = vpop.f32.mrf.mxu0 }
 0x104   : > { %v942_v11 = vld [vmem:[#allocation2 + $0x70] sm:$0xff]  ;;  %v1045_v30 = vpop.f32.mrf.mxu1  ;;  %v1113_v55 = vld [vmem:[#allocation2 + $0x28] sm:$0xff] }
 0x105   : > { %969 = vst.msk [vmem:[#allocation2 + $0x48] sm:$0xff] %vm381_vm5, %v953_v19  ;;  %v958_v23 = vadd.f32 %v2978_v9, %v942_v11  ;;  %1142 = vst.msk [vmem:[#allocation2 + $0x10] sm:$0xff] %vm381_vm5, %v1126_v21  ;;  %v1124_v26 = vadd.f32 %v1108_v14, %v1045_v30  ;;  %v3002_v36 = vpop.f32.mrf.mxu0 }
 0x106   : > { %v940_v44 = vld [vmem:[#allocation2 + $0x60] sm:$0xff]  ;;  %v2985_v27 = vpop.f32.mrf.mxu1  ;;  %v1118_v60 = vld [vmem:[#allocation2 + $0x50] sm:$0xff] }
 0x107   : > { %974 = vst.msk [vmem:[#allocation2 + $0x70] sm:$0xff] %vm381_vm5, %v958_v23  ;;  %v956_v28 = vadd.f32 %v940_v44, %v913_v20  ;;  %1140 = vst.msk [vmem:[#allocation2] sm:$0xff] %vm381_vm5, %v1124_v26  ;;  %v1127_v29 = vadd.f32 %v2985_v27, %v1111_v22  ;;  %v1278_v40 = vpop.f32.mrf.mxu0 }
 0x108   : > { %v943_v16 = vld [vmem:[#allocation2 + $0x78] sm:$0xff]  ;;  %v1048_v31 = vpop.f32.mrf.mxu1  ;;  %v1116_v2 = vld [vmem:[#allocation2 + $0x40] sm:$0xff] }
 0x109   : > { %972 = vst.msk [vmem:[#allocation2 + $0x60] sm:$0xff] %vm381_vm5, %v956_v28  ;;  %v959_v35 = vadd.f32 %v2979_v25, %v943_v16  ;;  %1143 = vst.msk [vmem:[#allocation2 + $0x18] sm:$0xff] %vm381_vm5, %v1127_v29  ;;  %v1125_v37 = vadd.f32 %v1109_v34, %v1048_v31  ;;  %v3003_v48 = vpop.f32.mrf.mxu0 }
 0x10a   : > { %v941_v12 = vld [vmem:[#allocation2 + $0x68] sm:$0xff]  ;;  %v2988_v38 = vpop.f32.mrf.mxu1  ;;  %v1119_v9 = vld [vmem:[#allocation2 + $0x58] sm:$0xff] }
 0x10b   : > { %975 = vst.msk [vmem:[#allocation2 + $0x78] sm:$0xff] %vm381_vm5, %v959_v35  ;;  %v957_v32 = vadd.f32 %v941_v12, %v916_v24  ;;  %1141 = vst.msk [vmem:[#allocation2 + $0x8] sm:$0xff] %vm381_vm5, %v1125_v37  ;;  %v1130_v41 = vadd.f32 %v2988_v38, %v1114_v39  ;;  %v1281_v13 = vpop.f32.mrf.mxu0 }
 0x10c   : > { %v1343_v42 = vld [vmem:[#allocation2 + $0x10] sm:$0xff]  ;;  %v1061_v43 = vpop.f32.mrf.mxu1  ;;  %v1117_v20 = vld [vmem:[#allocation2 + $0x48] sm:$0xff] }
 0x10d   : > { %973 = vst.msk [vmem:[#allocation2 + $0x68] sm:$0xff] %vm381_vm5, %v957_v32  ;;  %v1359_v47 = vadd.f32 %v3002_v36, %v1343_v42  ;;  %1146 = vst.msk [vmem:[#allocation2 + $0x30] sm:$0xff] %vm381_vm5, %v1130_v41  ;;  %v1128_v49 = vadd.f32 %v1112_v45, %v1061_v43  ;;  %v3006_v57 = vpop.f32.mrf.mxu0 }
 0x10e   : > { %v1341_v33 = vld [vmem:[#allocation2] sm:$0xff]  ;;  %v2989_v50 = vpop.f32.mrf.mxu1  ;;  %v1122_v25 = vld [vmem:[#allocation2 + $0x70] sm:$0xff] }
 0x10f   : > { %1375 = vst.msk [vmem:[#allocation2 + $0x10] sm:$0xff] %vm381_vm5, %v1359_v47  ;;  %v1357_v17 = vadd.f32 %v1341_v33, %v1278_v40  ;;  %1144 = vst.msk [vmem:[#allocation2 + $0x20] sm:$0xff] %vm381_vm5, %v1128_v49  ;;  %v1131_v52 = vadd.f32 %v2989_v50, %v1115_v51  ;;  %v1294_v62 = vpop.f32.mrf.mxu0 }
 0x110   : > { %v1344_v53 = vld [vmem:[#allocation2 + $0x18] sm:$0xff]  ;;  %v1064_v54 = vpop.f32.mrf.mxu1  ;;  %v1120_v24 = vld [vmem:[#allocation2 + $0x60] sm:$0xff] }
 0x111   : > { %1373 = vst.msk [vmem:[#allocation2] sm:$0xff] %vm381_vm5, %v1357_v17  ;;  %v1360_v56 = vadd.f32 %v3003_v48, %v1344_v53  ;;  %1147 = vst.msk [vmem:[#allocation2 + $0x38] sm:$0xff] %vm381_vm5, %v1131_v52  ;;  %v1129_v58 = vadd.f32 %v1113_v55, %v1064_v54  ;;  %v3007_v7 = vpop.f32.mrf.mxu0 }
 0x112   : > { %v1342_v59 = vld [vmem:[#allocation2 + $0x8] sm:$0xff]  ;;  %v2992_v4 = vpop.f32.mrf.mxu1  ;;  %v1123_v36 = vld [vmem:[#allocation2 + $0x78] sm:$0xff] }
 0x113   : > { %1376 = vst.msk [vmem:[#allocation2 + $0x18] sm:$0xff] %vm381_vm5, %v1360_v56  ;;  %v1358_v61 = vadd.f32 %v1342_v59, %v1281_v13  ;;  %1145 = vst.msk [vmem:[#allocation2 + $0x28] sm:$0xff] %vm381_vm5, %v1129_v58  ;;  %v1134_v63 = vadd.f32 %v2992_v4, %v1118_v60  ;;  %v1297_v6 = vpop.f32.mrf.mxu0 }
 0x114   : > { %v1347_v0 = vld [vmem:[#allocation2 + $0x30] sm:$0xff]  ;;  %v1077_v1 = vpop.f32.mrf.mxu1  ;;  %v1121_v40 = vld [vmem:[#allocation2 + $0x68] sm:$0xff] }
 0x115   : > { %1374 = vst.msk [vmem:[#allocation2 + $0x8] sm:$0xff] %vm381_vm5, %v1358_v61  ;;  %v1363_v15 = vadd.f32 %v3006_v57, %v1347_v0  ;;  %1150 = vst.msk [vmem:[#allocation2 + $0x50] sm:$0xff] %vm381_vm5, %v1134_v63  ;;  %v1132_v3 = vadd.f32 %v1116_v2, %v1077_v1  ;;  %v3010_v11 = vpop.f32.mrf.mxu0 }
 0x116   : > { %v1345_v5 = vld [vmem:[#allocation2 + $0x20] sm:$0xff]  ;;  %v2993_v8 = vpop.f32.mrf.mxu1  ;;  %v1501_v48 = vld [vmem:[#allocation2 + $0x10] sm:$0xff] }
 0x117   : > { %1379 = vst.msk [vmem:[#allocation2 + $0x30] sm:$0xff] %vm381_vm5, %v1363_v15  ;;  %v1361_v10 = vadd.f32 %v1345_v5, %v1294_v62  ;;  %1148 = vst.msk [vmem:[#allocation2 + $0x40] sm:$0xff] %vm381_vm5, %v1132_v3  ;;  %v1135_v46 = vadd.f32 %v2993_v8, %v1119_v9  ;;  %v1310_v44 = vpop.f32.mrf.mxu0 }
 0x118   : > { %v1348_v18 = vld [vmem:[#allocation2 + $0x38] sm:$0xff]  ;;  %v1080_v19 = vpop.f32.mrf.mxu1  ;;  %v1499_v13 = vld [vmem:[#allocation2] sm:$0xff] }
 0x119   : > { %1377 = vst.msk [vmem:[#allocation2 + $0x20] sm:$0xff] %vm381_vm5, %v1361_v10  ;;  %v1364_v21 = vadd.f32 %v3007_v7, %v1348_v18  ;;  %1151 = vst.msk [vmem:[#allocation2 + $0x58] sm:$0xff] %vm381_vm5, %v1135_v46  ;;  %v1133_v30 = vadd.f32 %v1117_v20, %v1080_v19  ;;  %v3011_v16 = vpop.f32.mrf.mxu0 }
 0x11a   : > { %v1346_v14 = vld [vmem:[#allocation2 + $0x28] sm:$0xff]  ;;  %v2996_v23 = vpop.f32.mrf.mxu1  ;;  %v1502_v57 = vld [vmem:[#allocation2 + $0x18] sm:$0xff] }
 0x11b   : > { %1380 = vst.msk [vmem:[#allocation2 + $0x38] sm:$0xff] %vm381_vm5, %v1364_v21  ;;  %v1362_v26 = vadd.f32 %v1346_v14, %v1297_v6  ;;  %1149 = vst.msk [vmem:[#allocation2 + $0x48] sm:$0xff] %vm381_vm5, %v1133_v30  ;;  %v1138_v27 = vadd.f32 %v2996_v23, %v1122_v25  ;;  %v1313_v12 = vpop.f32.mrf.mxu0 }
 0x11c   : > { %v1351_v22 = vld [vmem:[#allocation2 + $0x50] sm:$0xff]  ;;  %v1093_v28 = vpop.f32.mrf.mxu1  ;;  %v1500_v62 = vld [vmem:[#allocation2 + $0x8] sm:$0xff] }
 0x11d   : > { %1378 = vst.msk [vmem:[#allocation2 + $0x28] sm:$0xff] %vm381_vm5, %v1362_v26  ;;  %v1367_v29 = vadd.f32 %v3010_v11, %v1351_v22  ;;  %1154 = vst.msk [vmem:[#allocation2 + $0x70] sm:$0xff] %vm381_vm5, %v1138_v27  ;;  %v1136_v31 = vadd.f32 %v1120_v24, %v1093_v28  ;;  %v3014_v42 = vpop.f32.mrf.mxu0 }
 0x11e   : > { %v1349_v34 = vld [vmem:[#allocation2 + $0x40] sm:$0xff]  ;;  %v2997_v35 = vpop.f32.mrf.mxu1  ;;  %v1505_v7 = vld [vmem:[#allocation2 + $0x30] sm:$0xff] }
 0x11f   : > { %1383 = vst.msk [vmem:[#allocation2 + $0x50] sm:$0xff] %vm381_vm5, %v1367_v29  ;;  %v1365_v37 = vadd.f32 %v1349_v34, %v1310_v44  ;;  %1152 = vst.msk [vmem:[#allocation2 + $0x60] sm:$0xff] %vm381_vm5, %v1136_v31  ;;  %v1139_v38 = vadd.f32 %v2997_v35, %v1123_v36  ;;  %v1326_v33 = vpop.f32.mrf.mxu0 }
 0x120   : > { %v1352_v39 = vld [vmem:[#allocation2 + $0x58] sm:$0xff]  ;;  %v1096_v32 = vpop.f32.mrf.mxu1  ;;  %v1503_v6 = vld [vmem:[#allocation2 + $0x20] sm:$0xff] }
 0x121   : > { %1381 = vst.msk [vmem:[#allocation2 + $0x40] sm:$0xff] %vm381_vm5, %v1365_v37  ;;  %v1368_v41 = vadd.f32 %v3011_v16, %v1352_v39  ;;  %1155 = vst.msk [vmem:[#allocation2 + $0x78] sm:$0xff] %vm381_vm5, %v1139_v38  ;;  %v1137_v43 = vadd.f32 %v1121_v40, %v1096_v32  ;;  %v3015_v53 = vpop.f32.mrf.mxu0 }
 0x122   : > { %v1350_v45 = vld [vmem:[#allocation2 + $0x48] sm:$0xff]  ;;  %v3020_v47 = vpop.f32.mrf.mxu1  ;;  %v1506_v11 = vld [vmem:[#allocation2 + $0x38] sm:$0xff] }
 0x123   : > { %1384 = vst.msk [vmem:[#allocation2 + $0x58] sm:$0xff] %vm381_vm5, %v1368_v41  ;;  %v1366_v49 = vadd.f32 %v1350_v45, %v1313_v12  ;;  %1153 = vst.msk [vmem:[#allocation2 + $0x68] sm:$0xff] %vm381_vm5, %v1137_v43  ;;  %v1517_v50 = vadd.f32 %v3020_v47, %v1501_v48  ;;  %v1329_v59 = vpop.f32.mrf.mxu0 }
 0x124   : > { %v1355_v51 = vld [vmem:[#allocation2 + $0x70] sm:$0xff]  ;;  %v1436_v17 = vpop.f32.mrf.mxu1  ;;  %v1504_v44 = vld [vmem:[#allocation2 + $0x28] sm:$0xff] }
 0x125   : > { %1382 = vst.msk [vmem:[#allocation2 + $0x48] sm:$0xff] %vm381_vm5, %v1366_v49  ;;  %v1371_v52 = vadd.f32 %v3014_v42, %v1355_v51  ;;  %1533 = vst.msk [vmem:[#allocation2 + $0x10] sm:$0xff] %vm381_vm5, %v1517_v50  ;;  %v1515_v54 = vadd.f32 %v1499_v13, %v1436_v17  ;;  %v3038_v0 = vpop.f32.mrf.mxu0 }
 0x126   : > { %v1353_v55 = vld [vmem:[#allocation2 + $0x60] sm:$0xff]  ;;  %v3021_v56 = vpop.f32.mrf.mxu1  ;;  %v1509_v16 = vld [vmem:[#allocation2 + $0x50] sm:$0xff] }
 0x127   : > { %1387 = vst.msk [vmem:[#allocation2 + $0x70] sm:$0xff] %vm381_vm5, %v1371_v52  ;;  %v1369_v58 = vadd.f32 %v1353_v55, %v1326_v33  ;;  %1531 = vst.msk [vmem:[#allocation2] sm:$0xff] %vm381_vm5, %v1515_v54  ;;  %v1518_v4 = vadd.f32 %v3021_v56, %v1502_v57  ;;  %v1667_v5 = vpop.f32.mrf.mxu0 }
 0x128   : > { %v1356_v60 = vld [vmem:[#allocation2 + $0x78] sm:$0xff]  ;;  %v1439_v61 = vpop.f32.mrf.mxu1  ;;  %v1507_v12 = vld [vmem:[#allocation2 + $0x40] sm:$0xff] }
 0x129   : > { %1385 = vst.msk [vmem:[#allocation2 + $0x60] sm:$0xff] %vm381_vm5, %v1369_v58  ;;  %v1372_v63 = vadd.f32 %v3015_v53, %v1356_v60  ;;  %1534 = vst.msk [vmem:[#allocation2 + $0x18] sm:$0xff] %vm381_vm5, %v1518_v4  ;;  %v1516_v1 = vadd.f32 %v1500_v62, %v1439_v61  ;;  %v3039_v18 = vpop.f32.mrf.mxu0 }
 0x12a   : > { %v1354_v2 = vld [vmem:[#allocation2 + $0x68] sm:$0xff]  ;;  %v3024_v15 = vpop.f32.mrf.mxu1  ;;  %v1510_v42 = vld [vmem:[#allocation2 + $0x58] sm:$0xff] }
 0x12b   : > { %1388 = vst.msk [vmem:[#allocation2 + $0x78] sm:$0xff] %vm381_vm5, %v1372_v63  ;;  %v1370_v3 = vadd.f32 %v1354_v2, %v1329_v59  ;;  %1532 = vst.msk [vmem:[#allocation2 + $0x8] sm:$0xff] %vm381_vm5, %v1516_v1  ;;  %v1521_v8 = vadd.f32 %v3024_v15, %v1505_v7  ;;  %v1670_v14 = vpop.f32.mrf.mxu0 }
 0x12c   : > { %v1732_v9 = vld [vmem:[#allocation2 + $0x10] sm:$0xff]  ;;  %v1452_v10 = vpop.f32.mrf.mxu1  ;;  %v1508_v33 = vld [vmem:[#allocation2 + $0x48] sm:$0xff] }
 0x12d   : > { %1386 = vst.msk [vmem:[#allocation2 + $0x68] sm:$0xff] %vm381_vm5, %v1370_v3  ;;  %v1748_v46 = vadd.f32 %v3038_v0, %v1732_v9  ;;  %1537 = vst.msk [vmem:[#allocation2 + $0x30] sm:$0xff] %vm381_vm5, %v1521_v8  ;;  %v1519_v19 = vadd.f32 %v1503_v6, %v1452_v10  ;;  %v3042_v22 = vpop.f32.mrf.mxu0 }
 0x12e   : > { %v1730_v20 = vld [vmem:[#allocation2] sm:$0xff]  ;;  %v3025_v21 = vpop.f32.mrf.mxu1  ;;  %v1513_v53 = vld [vmem:[#allocation2 + $0x70] sm:$0xff] }
 0x12f   : > { %1764 = vst.msk [vmem:[#allocation2 + $0x10] sm:$0xff] %vm381_vm5, %v1748_v46  ;;  %v1746_v30 = vadd.f32 %v1730_v20, %v1667_v5  ;;  %1535 = vst.msk [vmem:[#allocation2 + $0x20] sm:$0xff] %vm381_vm5, %v1519_v19  ;;  %v1522_v23 = vadd.f32 %v3025_v21, %v1506_v11  ;;  %v1683_v34 = vpop.f32.mrf.mxu0 }
 0x130   : > { %v1733_v25 = vld [vmem:[#allocation2 + $0x18] sm:$0xff]  ;;  %v1455_v26 = vpop.f32.mrf.mxu1  ;;  %v1511_v59 = vld [vmem:[#allocation2 + $0x60] sm:$0xff] }
 0x131   : > { %1762 = vst.msk [vmem:[#allocation2] sm:$0xff] %vm381_vm5, %v1746_v30  ;;  %v1749_v27 = vadd.f32 %v3039_v18, %v1733_v25  ;;  %1538 = vst.msk [vmem:[#allocation2 + $0x38] sm:$0xff] %vm381_vm5, %v1522_v23  ;;  %v1520_v28 = vadd.f32 %v1504_v44, %v1455_v26  ;;  %v3043_v39 = vpop.f32.mrf.mxu0 }
 0x132   : > { %v1731_v24 = vld [vmem:[#allocation2 + $0x8] sm:$0xff]  ;;  %v3028_v29 = vpop.f32.mrf.mxu1  ;;  %v1514_v0 = vld [vmem:[#allocation2 + $0x78] sm:$0xff] }
 0x133   : > { %1765 = vst.msk [vmem:[#allocation2 + $0x18] sm:$0xff] %vm381_vm5, %v1749_v27  ;;  %v1747_v31 = vadd.f32 %v1731_v24, %v1670_v14  ;;  %1536 = vst.msk [vmem:[#allocation2 + $0x28] sm:$0xff] %vm381_vm5, %v1520_v28  ;;  %v1525_v35 = vadd.f32 %v3028_v29, %v1509_v16  ;;  %v1686_v45 = vpop.f32.mrf.mxu0 }
 0x134   : > { %v1736_v36 = vld [vmem:[#allocation2 + $0x30] sm:$0xff]  ;;  %v1468_v37 = vpop.f32.mrf.mxu1  ;;  %v1512_v5 = vld [vmem:[#allocation2 + $0x68] sm:$0xff] }
 0x135   : > { %1763 = vst.msk [vmem:[#allocation2 + $0x8] sm:$0xff] %vm381_vm5, %v1747_v31  ;;  %v1752_v38 = vadd.f32 %v3042_v22, %v1736_v36  ;;  %1541 = vst.msk [vmem:[#allocation2 + $0x50] sm:$0xff] %vm381_vm5, %v1525_v35  ;;  %v1523_v32 = vadd.f32 %v1507_v12, %v1468_v37  ;;  %v3046_v51 = vpop.f32.mrf.mxu0 }
 0x136   : > { %v1734_v40 = vld [vmem:[#allocation2 + $0x20] sm:$0xff]  ;;  %v3029_v41 = vpop.f32.mrf.mxu1  ;;  %v2146_v18 = vld [vmem:[#allocation2 + $0x10] sm:$0xff] }
 0x137   : > { %1768 = vst.msk [vmem:[#allocation2 + $0x30] sm:$0xff] %vm381_vm5, %v1752_v38  ;;  %v1750_v43 = vadd.f32 %v1734_v40, %v1683_v34  ;;  %1539 = vst.msk [vmem:[#allocation2 + $0x40] sm:$0xff] %vm381_vm5, %v1523_v32  ;;  %v1526_v47 = vadd.f32 %v3029_v41, %v1510_v42  ;;  %v1699_v55 = vpop.f32.mrf.mxu0 }
 0x138   : > { %v1737_v48 = vld [vmem:[#allocation2 + $0x38] sm:$0xff]  ;;  %v1471_v49 = vpop.f32.mrf.mxu1  ;;  %v2144_v14 = vld [vmem:[#allocation2] sm:$0xff] }
 0x139   : > { %1766 = vst.msk [vmem:[#allocation2 + $0x20] sm:$0xff] %vm381_vm5, %v1750_v43  ;;  %v1753_v50 = vadd.f32 %v3043_v39, %v1737_v48  ;;  %1542 = vst.msk [vmem:[#allocation2 + $0x58] sm:$0xff] %vm381_vm5, %v1526_v47  ;;  %v1524_v17 = vadd.f32 %v1508_v33, %v1471_v49  ;;  %v3047_v60 = vpop.f32.mrf.mxu0 }
 0x13a   : > { %v1735_v13 = vld [vmem:[#allocation2 + $0x28] sm:$0xff]  ;;  %v3032_v52 = vpop.f32.mrf.mxu1  ;;  %v2147_v22 = vld [vmem:[#allocation2 + $0x18] sm:$0xff] }
 0x13b   : > { %1769 = vst.msk [vmem:[#allocation2 + $0x38] sm:$0xff] %vm381_vm5, %v1753_v50  ;;  %v1751_v54 = vadd.f32 %v1735_v13, %v1686_v45  ;;  %1540 = vst.msk [vmem:[#allocation2 + $0x48] sm:$0xff] %vm381_vm5, %v1524_v17  ;;  %v1529_v56 = vadd.f32 %v3032_v52, %v1513_v53  ;;  %v1702_v2 = vpop.f32.mrf.mxu0 }
 0x13c   : > { %v1740_v57 = vld [vmem:[#allocation2 + $0x50] sm:$0xff]  ;;  %v1484_v58 = vpop.f32.mrf.mxu1  ;;  %v2145_v34 = vld [vmem:[#allocation2 + $0x8] sm:$0xff] }
 0x13d   : > { %1767 = vst.msk [vmem:[#allocation2 + $0x28] sm:$0xff] %vm381_vm5, %v1751_v54  ;;  %v1756_v4 = vadd.f32 %v3046_v51, %v1740_v57  ;;  %1545 = vst.msk [vmem:[#allocation2 + $0x70] sm:$0xff] %vm381_vm5, %v1529_v56  ;;  %v1527_v61 = vadd.f32 %v1511_v59, %v1484_v58  ;;  %v3050_v9 = vpop.f32.mrf.mxu0 }
 0x13e   : > { %v1738_v62 = vld [vmem:[#allocation2 + $0x40] sm:$0xff]  ;;  %v3033_v63 = vpop.f32.mrf.mxu1  ;;  %v2150_v39 = vld [vmem:[#allocation2 + $0x30] sm:$0xff] }
 0x13f   : > { %1772 = vst.msk [vmem:[#allocation2 + $0x50] sm:$0xff] %vm381_vm5, %v1756_v4  ;;  %v1754_v1 = vadd.f32 %v1738_v62, %v1699_v55  ;;  %1543 = vst.msk [vmem:[#allocation2 + $0x60] sm:$0xff] %vm381_vm5, %v1527_v61  ;;  %v1530_v15 = vadd.f32 %v3033_v63, %v1514_v0  ;;  %v1715_v20 = vpop.f32.mrf.mxu0 }
 0x140   : > { %v1741_v7 = vld [vmem:[#allocation2 + $0x58] sm:$0xff]  ;;  %v1487_v3 = vpop.f32.mrf.mxu1  ;;  %v2148_v45 = vld [vmem:[#allocation2 + $0x20] sm:$0xff] }
 0x141   : > { %1770 = vst.msk [vmem:[#allocation2 + $0x40] sm:$0xff] %vm381_vm5, %v1754_v1  ;;  %v1757_v8 = vadd.f32 %v3047_v60, %v1741_v7  ;;  %1546 = vst.msk [vmem:[#allocation2 + $0x78] sm:$0xff] %vm381_vm5, %v1530_v15  ;;  %v1528_v10 = vadd.f32 %v1512_v5, %v1487_v3  ;;  %v3051_v25 = vpop.f32.mrf.mxu0 }
 0x142   : > { %v1739_v6 = vld [vmem:[#allocation2 + $0x48] sm:$0xff]  ;;  %v3056_v46 = vpop.f32.mrf.mxu1  ;;  %v2151_v51 = vld [vmem:[#allocation2 + $0x38] sm:$0xff] }
 0x143   : > { %1773 = vst.msk [vmem:[#allocation2 + $0x58] sm:$0xff] %vm381_vm5, %v1757_v8  ;;  %v1755_v19 = vadd.f32 %v1739_v6, %v1702_v2  ;;  %1544 = vst.msk [vmem:[#allocation2 + $0x68] sm:$0xff] %vm381_vm5, %v1528_v10  ;;  %v2162_v21 = vadd.f32 %v3056_v46, %v2146_v18  ;;  %v1718_v24 = vpop.f32.mrf.mxu0 }
 0x144   : > { %v1744_v11 = vld [vmem:[#allocation2 + $0x70] sm:$0xff]  ;;  %v2081_v30 = vpop.f32.mrf.mxu1  ;;  %v2149_v55 = vld [vmem:[#allocation2 + $0x28] sm:$0xff] }
 0x145   : > { %1771 = vst.msk [vmem:[#allocation2 + $0x48] sm:$0xff] %vm381_vm5, %v1755_v19  ;;  %v1760_v23 = vadd.f32 %v3050_v9, %v1744_v11  ;;  %2178 = vst.msk [vmem:[#allocation2 + $0x10] sm:$0xff] %vm381_vm5, %v2162_v21  ;;  %v2160_v26 = vadd.f32 %v2144_v14, %v2081_v30  ;;  %v3074_v36 = vpop.f32.mrf.mxu0 }
 0x146   : > { %v1742_v44 = vld [vmem:[#allocation2 + $0x60] sm:$0xff]  ;;  %v3057_v27 = vpop.f32.mrf.mxu1  ;;  %v2154_v60 = vld [vmem:[#allocation2 + $0x50] sm:$0xff] }
 0x147   : > { %1776 = vst.msk [vmem:[#allocation2 + $0x70] sm:$0xff] %vm381_vm5, %v1760_v23  ;;  %v1758_v28 = vadd.f32 %v1742_v44, %v1715_v20  ;;  %2176 = vst.msk [vmem:[#allocation2] sm:$0xff] %vm381_vm5, %v2160_v26  ;;  %v2163_v29 = vadd.f32 %v3057_v27, %v2147_v22  ;;  %v2312_v40 = vpop.f32.mrf.mxu0 }
 0x148   : > { %v1745_v16 = vld [vmem:[#allocation2 + $0x78] sm:$0xff]  ;;  %v2084_v31 = vpop.f32.mrf.mxu1  ;;  %v2152_v2 = vld [vmem:[#allocation2 + $0x40] sm:$0xff] }
 0x149   : > { %1774 = vst.msk [vmem:[#allocation2 + $0x60] sm:$0xff] %vm381_vm5, %v1758_v28  ;;  %v1761_v35 = vadd.f32 %v3051_v25, %v1745_v16  ;;  %2179 = vst.msk [vmem:[#allocation2 + $0x18] sm:$0xff] %vm381_vm5, %v2163_v29  ;;  %v2161_v37 = vadd.f32 %v2145_v34, %v2084_v31  ;;  %v3075_v48 = vpop.f32.mrf.mxu0 }
 0x14a   : > { %v1743_v12 = vld [vmem:[#allocation2 + $0x68] sm:$0xff]  ;;  %v3060_v38 = vpop.f32.mrf.mxu1  ;;  %v2155_v10 = vld [vmem:[#allocation2 + $0x58] sm:$0xff] }
 0x14b   : > { %1777 = vst.msk [vmem:[#allocation2 + $0x78] sm:$0xff] %vm381_vm5, %v1761_v35  ;;  %v1759_v32 = vadd.f32 %v1743_v12, %v1718_v24  ;;  %2177 = vst.msk [vmem:[#allocation2 + $0x8] sm:$0xff] %vm381_vm5, %v2161_v37  ;;  %v2166_v41 = vadd.f32 %v3060_v38, %v2150_v39  ;;  %v2315_v13 = vpop.f32.mrf.mxu0 }
 0x14c   : > { %v2377_v42 = vld [vmem:[#allocation2 + $0x10] sm:$0xff]  ;;  %v2097_v43 = vpop.f32.mrf.mxu1  ;;  %v2153_v30 = vld [vmem:[#allocation2 + $0x48] sm:$0xff] }
 0x14d   : > { %1775 = vst.msk [vmem:[#allocation2 + $0x68] sm:$0xff] %vm381_vm5, %v1759_v32  ;;  %v2393_v47 = vadd.f32 %v3074_v36, %v2377_v42  ;;  %2182 = vst.msk [vmem:[#allocation2 + $0x30] sm:$0xff] %vm381_vm5, %v2166_v41  ;;  %v2164_v49 = vadd.f32 %v2148_v45, %v2097_v43  ;;  %v3078_v57 = vpop.f32.mrf.mxu0 }
 0x14e   : > { %v2375_v33 = vld [vmem:[#allocation2] sm:$0xff]  ;;  %v3061_v50 = vpop.f32.mrf.mxu1  ;;  %v2158_v22 = vld [vmem:[#allocation2 + $0x70] sm:$0xff] }
 0x14f   : > { %2409 = vst.msk [vmem:[#allocation2 + $0x10] sm:$0xff] %vm381_vm5, %v2393_v47  ;;  %v2391_v17 = vadd.f32 %v2375_v33, %v2312_v40  ;;  %2180 = vst.msk [vmem:[#allocation2 + $0x20] sm:$0xff] %vm381_vm5, %v2164_v49  ;;  %v2167_v52 = vadd.f32 %v3061_v50, %v2151_v51  ;;  %v2328_v62 = vpop.f32.mrf.mxu0 }
 0x150   : > { %v2378_v53 = vld [vmem:[#allocation2 + $0x18] sm:$0xff]  ;;  %v2100_v54 = vpop.f32.mrf.mxu1  ;;  %v2156_v34 = vld [vmem:[#allocation2 + $0x60] sm:$0xff] }
 0x151   : > { %2407 = vst.msk [vmem:[#allocation2] sm:$0xff] %vm381_vm5, %v2391_v17  ;;  %v2394_v56 = vadd.f32 %v3075_v48, %v2378_v53  ;;  %2183 = vst.msk [vmem:[#allocation2 + $0x38] sm:$0xff] %vm381_vm5, %v2167_v52  ;;  %v2165_v58 = vadd.f32 %v2149_v55, %v2100_v54  ;;  %v3079_v7 = vpop.f32.mrf.mxu0 }
 0x152   : > { %v2376_v59 = vld [vmem:[#allocation2 + $0x8] sm:$0xff]  ;;  %v3064_v4 = vpop.f32.mrf.mxu1  ;;  %v2159_v32 = vld [vmem:[#allocation2 + $0x78] sm:$0xff] }
 0x153   : > { %2410 = vst.msk [vmem:[#allocation2 + $0x18] sm:$0xff] %vm381_vm5, %v2394_v56  ;;  %v2392_v61 = vadd.f32 %v2376_v59, %v2315_v13  ;;  %2181 = vst.msk [vmem:[#allocation2 + $0x28] sm:$0xff] %vm381_vm5, %v2165_v58  ;;  %v2170_v63 = vadd.f32 %v3064_v4, %v2154_v60  ;;  %v2331_v18 = vpop.f32.mrf.mxu0 }
 0x154   : > { %v2381_v0 = vld [vmem:[#allocation2 + $0x30] sm:$0xff]  ;;  %v2113_v1 = vpop.f32.mrf.mxu1  ;;  %v2157_v49 = vld [vmem:[#allocation2 + $0x68] sm:$0xff] }
 0x155   : > { %2408 = vst.msk [vmem:[#allocation2 + $0x8] sm:$0xff] %vm381_vm5, %v2392_v61  ;;  %v2397_v15 = vadd.f32 %v3078_v57, %v2381_v0  ;;  %2186 = vst.msk [vmem:[#allocation2 + $0x50] sm:$0xff] %vm381_vm5, %v2170_v63  ;;  %v2168_v3 = vadd.f32 %v2152_v2, %v2113_v1  ;;  %v3082_v25 = vpop.f32.mrf.mxu0 }
 0x156   : > { %v2425_v5 = vld [vmem:[#allocation2 + $0x10] sm:$0xff]  ;;  %v2379_v8 = vld [vmem:[#allocation2 + $0x20] sm:$0xff]  ;;  %v3065_v9 = vpop.f32.mrf.mxu1 }
 0x157   : > { %v2831_v6 = vpack.c.bf16 %v2425_v5, %v2425_v5  ;;  %2413 = vst.msk [vmem:[#allocation2 + $0x30] sm:$0xff] %vm381_vm5, %v2397_v15  ;;  %v2395_v46 = vadd.f32 %v2379_v8, %v2328_v62  ;;  %2184 = vst.msk [vmem:[#allocation2 + $0x40] sm:$0xff] %vm381_vm5, %v2168_v3  ;;  %v2171_v19 = vadd.f32 %v3065_v9, %v2155_v10  ;;  %v2344_v24 = vpop.f32.mrf.mxu0 }
 0x158   : > { %v2423_v20 = vld [vmem:[#allocation2] sm:$0xff]  ;;  %v2382_v21 = vld [vmem:[#allocation2 + $0x38] sm:$0xff]  ;;  %v2116_v11 = vpop.f32.mrf.mxu1 }
 0x159   : > { %2527 = vst.msk [vmem:[%s3562_s17 + $0x8] sm:$0xf] %vm2524_vm6, %v2831_v6  ;;  %v2829_v14 = vpack.c.bf16 %v2423_v20, %v2423_v20  ;;  %v2398_v23 = vadd.f32 %v3079_v7, %v2382_v21  ;;  %v2169_v26 = vadd.f32 %v2153_v30, %v2116_v11  ;;  %v3083_v36 = vpop.f32.mrf.mxu0 }
 0x15a   : > { %2411 = vst.msk [vmem:[#allocation2 + $0x20] sm:$0xff] %vm381_vm5, %v2395_v46  ;;  %2187 = vst.msk [vmem:[#allocation2 + $0x58] sm:$0xff] %vm381_vm5, %v2171_v19  ;;  %v2380_v44 = vld [vmem:[#allocation2 + $0x28] sm:$0xff]  ;;  %v3068_v27 = vpop.f32.mrf.mxu1 }
 0x15b   : > { %2525 = vst.msk [vmem:[%s3562_s17] sm:$0xf] %vm2524_vm6, %v2829_v14  ;;  %v2396_v28 = vadd.f32 %v2380_v44, %v2331_v18  ;;  %v2174_v29 = vadd.f32 %v3068_v27, %v2158_v22  ;;  %v2347_v42 = vpop.f32.mrf.mxu0 }
 0x15c   : > { %2414 = vst.msk [vmem:[#allocation2 + $0x38] sm:$0xff] %vm381_vm5, %v2398_v23  ;;  %2185 = vst.msk [vmem:[#allocation2 + $0x48] sm:$0xff] %vm381_vm5, %v2169_v26  ;;  %v2385_v16 = vld [vmem:[#allocation2 + $0x50] sm:$0xff]  ;;  %v2129_v31 = vpop.f32.mrf.mxu1 }
 0x15d   : > { %2412 = vst.msk [vmem:[#allocation2 + $0x28] sm:$0xff] %vm381_vm5, %v2396_v28  ;;  %v2401_v35 = vadd.f32 %v3082_v25, %v2385_v16  ;;  %2190 = vst.msk [vmem:[#allocation2 + $0x70] sm:$0xff] %vm381_vm5, %v2174_v29  ;;  %v2172_v37 = vadd.f32 %v2156_v34, %v2129_v31  ;;  %v3086_v51 = vpop.f32.mrf.mxu0 }
 0x15e   : > { %v2429_v12 = vld [vmem:[#allocation2 + $0x30] sm:$0xff]  ;;  %v2383_v38 = vld [vmem:[#allocation2 + $0x40] sm:$0xff]  ;;  %v3069_v39 = vpop.f32.mrf.mxu1 }
 0x15f   : > { %v2835_v40 = vpack.c.bf16 %v2429_v12, %v2429_v12  ;;  %2417 = vst.msk [vmem:[#allocation2 + $0x50] sm:$0xff] %vm381_vm5, %v2401_v35  ;;  %v2399_v41 = vadd.f32 %v2383_v38, %v2344_v24  ;;  %2188 = vst.msk [vmem:[#allocation2 + $0x60] sm:$0xff] %vm381_vm5, %v2172_v37  ;;  %v2175_v43 = vadd.f32 %v3069_v39, %v2159_v32  ;;  %v2360_v53 = vpop.f32.mrf.mxu0 }
 0x160   : > { %v2132_v48 = vpop.f32.mrf.mxu1 }
 0x161   : > { %v2427_v45 = vld [vmem:[#allocation2 + $0x20] sm:$0xff]  ;;  %v2386_v47 = vld [vmem:[#allocation2 + $0x58] sm:$0xff]  ;;  %2531 = vst.msk [vmem:[%s3562_s17 + $0x18] sm:$0xf] %vm2524_vm6, %v2835_v40  ;;  %v2173_v17 = vadd.f32 %v2157_v49, %v2132_v48  ;;  %v3087_v58 = vpop.f32.mrf.mxu0 }
 0x162   : > { %v2833_v33 = vpack.c.bf16 %v2427_v45, %v2427_v45  ;;  %2415 = vst.msk [vmem:[#allocation2 + $0x40] sm:$0xff] %vm381_vm5, %v2399_v41  ;;  %v2402_v50 = vadd.f32 %v3083_v36, %v2386_v47  ;;  %2191 = vst.msk [vmem:[#allocation2 + $0x78] sm:$0xff] %vm381_vm5, %v2175_v43 }
 0x163   : > { %v2384_v13 = vld [vmem:[#allocation2 + $0x48] sm:$0xff]  ;;  %2189 = vst.msk [vmem:[#allocation2 + $0x68] sm:$0xff] %vm381_vm5, %v2173_v17  ;;  %v2363_v0 = vpop.f32.mrf.mxu0 }
 0x164   : > { %2529 = vst.msk [vmem:[%s3562_s17 + $0x10] sm:$0xf] %vm2524_vm6, %v2833_v33  ;;  %v2400_v52 = vadd.f32 %v2384_v13, %v2347_v42  ;;  %v2389_v54 = vld [vmem:[#allocation2 + $0x70] sm:$0xff] }
 0x165   : > { %2418 = vst.msk [vmem:[#allocation2 + $0x58] sm:$0xff] %vm381_vm5, %v2402_v50  ;;  %v2405_v55 = vadd.f32 %v3086_v51, %v2389_v54 }
 0x166   : > { %2416 = vst.msk [vmem:[#allocation2 + $0x48] sm:$0xff] %vm381_vm5, %v2400_v52  ;;  %v2433_v56 = vld [vmem:[#allocation2 + $0x50] sm:$0xff]  ;;  %v2387_v57 = vld [vmem:[#allocation2 + $0x60] sm:$0xff] }
 0x167   : > { %v2839_v59 = vpack.c.bf16 %v2433_v56, %v2433_v56  ;;  %2421 = vst.msk [vmem:[#allocation2 + $0x70] sm:$0xff] %vm381_vm5, %v2405_v55  ;;  %v2403_v4 = vadd.f32 %v2387_v57, %v2360_v53 }
 0x169   : > { %v2431_v60 = vld [vmem:[#allocation2 + $0x40] sm:$0xff]  ;;  %v2390_v61 = vld [vmem:[#allocation2 + $0x78] sm:$0xff]  ;;  %2535 = vst.msk [vmem:[%s3562_s17 + $0x28] sm:$0xf] %vm2524_vm6, %v2839_v59 }
 0x16a   : > { %v2837_v62 = vpack.c.bf16 %v2431_v60, %v2431_v60  ;;  %2419 = vst.msk [vmem:[#allocation2 + $0x60] sm:$0xff] %vm381_vm5, %v2403_v4  ;;  %v2406_v63 = vadd.f32 %v3087_v58, %v2390_v61  ;;  %v2388_v1 = vld [vmem:[#allocation2 + $0x68] sm:$0xff] }
 0x16b   : > { %v2404_v2 = vadd.f32 %v2388_v1, %v2363_v0 }
 0x16c   : > { %2533 = vst.msk [vmem:[%s3562_s17 + $0x20] sm:$0xf] %vm2524_vm6, %v2837_v62 }
 0x16d   : > { %2422 = vst.msk [vmem:[#allocation2 + $0x78] sm:$0xff] %vm381_vm5, %v2406_v63  ;;  %2420 = vst.msk [vmem:[#allocation2 + $0x68] sm:$0xff] %vm381_vm5, %v2404_v2 }
 0x16e   : > { %v2437_v15 = vld [vmem:[#allocation2 + $0x70] sm:$0xff] }
 0x16f   : > { %v2843_v7 = vpack.c.bf16 %v2437_v15, %v2437_v15 }
 0x171   : > { %v2435_v3 = vld [vmem:[#allocation2 + $0x60] sm:$0xff]  ;;  %2539 = vst.msk [vmem:[%s3562_s17 + $0x38] sm:$0xf] %vm2524_vm6, %v2843_v7 }
 0x172   : > { %v2841_v5 = vpack.c.bf16 %v2435_v3, %v2435_v3 }
 0x174   : > { %2537 = vst.msk [vmem:[%s3562_s17 + $0x30] sm:$0xf] %vm2524_vm6, %v2841_v5 }
 0x175 PF: > { %s13_s12 = sadd.s32 1, %s3150_s12  }
 0x176   : > { %p10_p5 = scmp.ge.s32.totalorder %s13_s12, 4  }
 0x178   :  { %12 = sbr.rel (!%p10_p5) target bundleno = 1 (0x1), region = 73 }

// kernel: last_level_p6p7_forward.3
= control target key start
LH: loop header
LB: loop body
LE: loop exit
PB: predicated region body
PF: predicated region fallthrough
CT: control target
= control target key end

     0   :  { %s1911_s12 = smov 0   ;;  %s2220_s0 = inlined_call_operand.vmem [shape: bf16[2,4,5,17,8], index: 0, kind: input, shape index: {}]   ;;  %s2221_s1 = inlined_call_operand.vmem [shape: bf16[9,8,8], index: 1, kind: input, shape index: {}]   ;;  %s2222_s2 = inlined_call_operand.vmem [shape: f32[1,8], index: 2, kind: input, shape index: {}]   ;;  %s2223_s3 = inlined_call_operand.vmem [shape: f32[128,8], index: 3, kind: output, shape index: {}]  }
   0x1 LB: > { %s1917_s13 = sadd.s32 4294967295, %s1888_s12   ;;  %p1591_p0 = scmp.ge.s32.totalorder %s1888_s12, 1  ;;  %s1888_s12 = sphi %s1911_s12, %s13_s12  }
   0x2   : > { %p137_p1 = scmp.lt.s32.totalorder %s1888_s12, 3 }
   0x4   : > { %p138_p2 = pnand %p1591_p0, %p137_p1 }
   0x5   : > { %p161_p3 = scmp.lt.s32.totalorder (!%p138_p2), %s1917_s13, 1  ;;  %s1593_s10 = sshll.u32 (!%p138_p2), %s1917_s13, 3 }
   0x6   : > { %141 = sbr.rel (%p138_p2) target bundleno = 311 (0x137), region = 32  ;;  %p167_p4 = scmp.lt.s32.totalorder (!%p138_p2), %s1593_s10, 15 }
   0xb   : > { %v183_v0 = vld [vmem:[%s2221_s1] sm:$0xf]  ;;  %vm217_vm0 = vcmask 1043456   ;;  %v1604_v2 = vld [vmem:[%s2221_s1 + $0x18] sm:$0xf]  ;;  %s162_s20 = scalar_select %p161_p3, %s1917_s13, 1 }
   0xc   : > { %1845 = vmatprep.subr.msk.bf16.mxu1 %vm217_vm0, %v183_v0  ;;  %1844 = vmatprep.subr.msk.bf16.mxu0 %vm217_vm0, %v183_v0  ;;  %v219_v1 = vsel %vm217_vm0, %v183_v0, 0  ;;  %v1610_v3 = vld [vmem:[%s2221_s1 + $0x8] sm:$0xf]  ;;  %vm204_vm1 = vcmask 64512   ;;  %vm426_vm2 = vsmask.f32 3328 }
   0xd   : > { %1843 = vmatpush3.bf16.msra.mxu1 %v219_v1  ;;  %1753 = vmatpush3.bf16.msra.mxu0 %v219_v1  ;;  %s1854_s21 = smul.u32 240, %s162_s20  ;;  %vm427_vm3 = vsmask.f32 7440  ;;  %v1619_v4 = vld [vmem:[%s2221_s1 + $0x20] sm:$0xf]  ;;  %v320_v7 = vsel %vm217_vm0, %v1604_v2, 0 }
   0xe   : > { %1846 = vmatprep.subr.msk.bf16.mxu1 %vm217_vm0, %v1604_v2  ;;  %1847 = vmatprep.subr.msk.bf16.mxu0 %vm217_vm0, %v1610_v3  ;;  %v1635_v5 = vld [vmem:[%s2221_s1 + $0x4] sm:$0xf]  ;;  %v552_v9 = vsel %vm217_vm0, %v1610_v3, 0  ;;  %v676_v11 = vsel %vm217_vm0, %v1619_v4, 0  ;;  %vm1974_vm4 = vmor %vm426_vm2, %vm427_vm3  ;;  %v1982_v43 = vld [vmem:[%s2221_s1 + $0x1c] sm:$0xf] }
   0xf   : > { %s1940_s24 = scalar_lea.vmem %s2220_s0, %s1854_s21  ;;  %v1958_v13 = vsel %vm217_vm0, %v1635_v5, 0  ;;  %s2227_s10 = smov (!%p167_p4, %s1593_s10), 15  ;;  %v1890_v39 = vmov 0.0  }
  0x10   : > { %v1864_v6 = vld [vmem:[%s1940_s24] sm:$0xff]   ;;  %v1865_v8 = vld [vmem:[%s1940_s24 + $0x18] sm:$0xff]   ;;  %v1866_v10 = vld [vmem:[%s1940_s24 + $0xc] sm:$0xff]   ;;  %s1594_s11 = sshll.u32 %s2227_s10, 3 }
  0x11   : > { %1754 = vmatprep.mubr.msk.bf16.mxu0 %vm204_vm1, %v1864_v6  ;;  %1758 = vmatprep.mubr.msk.bf16.mxu1 %vm204_vm1, %v1865_v8  ;;  %v1867_v12 = vld [vmem:[%s1940_s24 + $0x24] sm:$0xff]   ;;  %v411_v14 = vld [vmem:[%s1940_s24] sm:$0xf]  ;;  %v414_v21 = vld [vmem:[%s1940_s24 + $0xc] sm:$0xf]  ;;  %s2120_s16 = scalar_lea.vmem %s2223_s3, %s1594_s11 }
  0x12   : > { %1755 = vmatmul.mubr.msk.bf16.vlgmr.msra.gmra.mxu0 %vm204_vm1, %v1866_v10  ;;  %v412_v15 = vld [vmem:[%s1940_s24 + $0x4] sm:$0xf]  ;;  %v413_v16 = vld [vmem:[%s1940_s24 + $0x8] sm:$0x1]  ;;  %1759 = vmatmul.mubr.msk.bf16.vlgmr.msra.gmra.mxu1 %vm204_vm1, %v1867_v12  ;;  %v430_v17 = vshrl.u32 %v411_v14, 16  ;;  %v433_v18 = vshll.u32 %v411_v14, 16 }
  0x13   : > { %1773 = vmatpush3.bf16.msra.mxu0 %v552_v9  ;;  %v439_v19 = vshll.u32 %v412_v15, 16  ;;  %v443_v20 = vshrl.u32 %v412_v15, 16  ;;  %1763 = vmatpush3.bf16.msra.mxu1 %v320_v7  ;;  %v449_v22 = vshll.u32 %v413_v16, 16  ;;  %v415_v23 = vld [vmem:[%s1940_s24 + $0x10] sm:$0xf]  ;;  %v454_v25 = vshrl.u32 %v414_v21, 16 }
  0x14   : > { %1764 = vmatprep.mubr.msk.bf16.mxu1 %vm204_vm1, %v1866_v10  ;;  %v416_v24 = vld [vmem:[%s1940_s24 + $0x14] sm:$0x1]  ;;  %v432_v26 = vrot.slane %v430_v17, 4  ;;  %v435_v27 = vrot.slane %v433_v18, 5  ;;  %1848 = vmatprep.subr.msk.bf16.mxu1 %vm217_vm0, %v1619_v4  ;;  %v457_v32 = vshll.u32 %v414_v21, 16  ;;  %v463_v33 = vshll.u32 %v415_v23, 16 }
  0x15   : > { %v441_v28 = vrot.slane %v439_v19, 5  ;;  %v445_v29 = vrot.slane %v443_v20, 4  ;;  %1849 = vmatprep.subr.msk.bf16.mxu0 %vm217_vm0, %v1635_v5  ;;  %v451_v30 = vrot.slane %v449_v22, 5  ;;  %v456_v31 = vrot.slane %v454_v25, 4  ;;  %v417_v38 = vld [vmem:[%s1940_s24 + $0x18] sm:$0xf] }
  0x16   : > { %v436_v34 = vor.u32 %v435_v27, %v432_v26  ;;  %v467_v36 = vshrl.u32 %v415_v23, 16  ;;  %v473_v37 = vshll.u32 %v416_v24, 16  ;;  %v459_v40 = vrot.slane %v457_v32, 5  ;;  %v418_v42 = vld [vmem:[%s1940_s24 + $0x1c] sm:$0xf]  ;;  %v1868_v0 = vld [vmem:[%s1940_s24 + $0x30] sm:$0xff]  }
  0x17   : > { %v446_v35 = vor.u32 %v445_v29, %v441_v28  ;;  %v465_v41 = vrot.slane %v463_v33, 5  ;;  %v419_v48 = vld [vmem:[%s1940_s24 + $0x20] sm:$0x1]  ;;  %v478_v50 = vshrl.u32 %v417_v38, 16  ;;  %v481_v51 = vshll.u32 %v417_v38, 16  ;;  %1524 = vst.msk [vmem:[%s2120_s16 + $0x8] sm:$0xff] %vm204_vm1, %v1890_v39 }
  0x18   : > { %v437_v44 = vrot.slane %v436_v34, 4  ;;  %v469_v46 = vrot.slane %v467_v36, 4  ;;  %v475_v47 = vrot.slane %v473_v37, 5  ;;  %v460_v49 = vor.u32 %v459_v40, %v456_v31  ;;  %v420_v53 = vld [vmem:[%s1940_s24 + $0x24] sm:$0xf]  ;;  %1526 = vst.msk [vmem:[%s2120_s16 + $0x18] sm:$0xff] %vm204_vm1, %v1890_v39 }
  0x19   : > { %v447_v45 = vrot.slane %v446_v35, 4  ;;  %v487_v52 = vshll.u32 %v418_v42, 16  ;;  %v491_v57 = vshrl.u32 %v418_v42, 16  ;;  %v421_v58 = vld [vmem:[%s1940_s24 + $0x28] sm:$0xf]  ;;  %v480_v61 = vrot.slane %v478_v50, 4 }
  0x1a   : > { %1765 = vmatmul.mubr.msk.bf16.vlgmr.msra.gmra.mxu1 %vm204_vm1, %v1865_v8  ;;  %v442_v54 = vsel %vm1974_vm4, %v437_v44, %v441_v28  ;;  %v470_v56 = vor.u32 %v469_v46, %v465_v41  ;;  %v461_v60 = vrot.slane %v460_v49, 4  ;;  %v483_v62 = vrot.slane %v481_v51, 5  ;;  %v422_v4 = vld [vmem:[%s1940_s24 + $0x2c] sm:$0x1]  ;;  %v423_v9 = vld [vmem:[%s1940_s24 + $0x30] sm:$0xf] }
  0x1b   : > { %v452_v55 = vsel %vm1974_vm4, %v447_v45, %v451_v30  ;;  %1783 = vmatpush3.bf16.msra.mxu1 %v676_v11  ;;  %1768 = vmatprep.mubr.msk.bf16.mxu1 %vm204_vm1, %v1867_v12  ;;  %v489_v1 = vrot.slane %v487_v52, 5  ;;  %v493_v2 = vrot.slane %v491_v57, 4  ;;  %v497_v3 = vshll.u32 %v419_v48, 16  ;;  %v424_v10 = vld [vmem:[%s1940_s24 + $0x34] sm:$0xf]  ;;  %v1869_v46 = vld [vmem:[%s1940_s24 + $0x3c] sm:$0xff]  }
  0x1c   : > { %v1611_v59 = vcombine.low %v442_v54, %v452_v55  ;;  %v471_v63 = vrot.slane %v470_v56, 4  ;;  %1850 = vmatprep.subr.msk.bf16.mxu1 %vm217_vm0, %v1982_v43  ;;  %v466_v5 = vsel %vm1974_vm4, %v461_v60, %v465_v41  ;;  %v484_v6 = vor.u32 %v483_v62, %v480_v61  ;;  %v2007_v16 = vld [vmem:[%s2221_s1 + $0xc] sm:$0xf]  ;;  %v425_v21 = vld [vmem:[%s1940_s24 + $0x38] sm:$0x1]  ;;  %1528 = vst.msk [vmem:[%s2120_s16 + $0x28] sm:$0xff] %vm204_vm1, %v1890_v39 }
  0x1d   : > { %v502_v7 = vshrl.u32 %v420_v53, 16  ;;  %v505_v8 = vshll.u32 %v420_v53, 16  ;;  %v494_v12 = vor.u32 %v493_v2, %v489_v1  ;;  %v499_v14 = vrot.slane %v497_v3, 5  ;;  %v1667_v52 = vld [vmem:[%s1940_s24 + $0x78] sm:$0xf]  ;;  %1530 = vst.msk [vmem:[%s2120_s16 + $0x38] sm:$0xff] %vm204_vm1, %v1890_v39 }
  0x1e   : > { %1774 = vmatprep.mubr.msk.bf16.mxu0 %vm204_vm1, %v1611_v59  ;;  %v476_v11 = vsel %vm1974_vm4, %v471_v63, %v475_v47  ;;  %v511_v15 = vshll.u32 %v421_v58, 16  ;;  %v485_v18 = vrot.slane %v484_v6, 4  ;;  %v515_v24 = vshrl.u32 %v421_v58, 16  ;;  %v1668_v53 = vld [vmem:[%s1940_s24 + $0x7c] sm:$0xf]  ;;  %v1870_v6 = vld [vmem:[%s1940_s24 + $0x48] sm:$0xff]  }
  0x1f   : > { %v1612_v17 = vcombine.low %v466_v5, %v476_v11  ;;  %v504_v19 = vrot.slane %v502_v7, 4  ;;  %v507_v20 = vrot.slane %v505_v8, 5  ;;  %v495_v22 = vrot.slane %v494_v12, 4  ;;  %v1679_v58 = vld [vmem:[%s2221_s1 + $0x14] sm:$0xf] }
  0x20   : > { %v513_v23 = vrot.slane %v511_v15, 5  ;;  %v521_v25 = vshll.u32 %v422_v4, 16  ;;  %v490_v26 = vsel %vm1974_vm4, %v485_v18, %v489_v1  ;;  %v644_v28 = vshrl.u32 %v423_v9, 16  ;;  %v1669_v63 = vld [vmem:[%s1940_s24 + $0x80] sm:$0x1] }
  0x21   : > { %1775 = vmatmul.mubr.msk.bf16.vlgmr.msra.gmra.mxu0 %vm204_vm1, %v1612_v17  ;;  %v508_v27 = vor.u32 %v507_v20, %v504_v19  ;;  %v647_v29 = vshll.u32 %v423_v9, 16  ;;  %v500_v30 = vsel %vm1974_vm4, %v495_v22, %v499_v14  ;;  %v517_v31 = vrot.slane %v515_v24, 4  ;;  %v1670_v1 = vld [vmem:[%s1940_s24 + $0x84] sm:$0xf]  ;;  %v1671_v8 = vld [vmem:[%s1940_s24 + $0x88] sm:$0xf] }
  0x22   : > { %1769 = vmatmul.mubr.msk.bf16.gmra.mxu1 %vm204_vm1, %v1868_v0  ;;  %v523_v32 = vrot.slane %v521_v25, 5  ;;  %1793 = vmatpush3.bf16.msra.mxu0 %v1958_v13  ;;  %v653_v33 = vshll.u32 %v424_v10, 16  ;;  %v1613_v34 = vcombine.low %v490_v26, %v500_v30  ;;  %v646_v36 = vrot.slane %v644_v28, 4  ;;  %v1871_v9 = vld [vmem:[%s1940_s24 + $0x54] sm:$0xff]   ;;  %v2054_v11 = vld [vmem:[%s2221_s1 + $0x10] sm:$0xf] }
  0x23   : > { %v509_v35 = vrot.slane %v508_v27, 4  ;;  %1784 = vmatprep.mubr.msk.bf16.mxu1 %vm204_vm1, %v1612_v17  ;;  %v649_v37 = vrot.slane %v647_v29, 5  ;;  %1851 = vmatprep.subr.msk.bf16.mxu0 %vm217_vm0, %v2007_v16  ;;  %v518_v38 = vor.u32 %v517_v31, %v513_v23  ;;  %v657_v41 = vshrl.u32 %v424_v10, 16  ;;  %v1673_v15 = vld [vmem:[%s1940_s24 + $0x90] sm:$0xf] }
  0x24   : > { %v655_v40 = vrot.slane %v653_v33, 5  ;;  %v663_v42 = vshll.u32 %v425_v21, 16  ;;  %1778 = vmatprep.mubr.msk.bf16.mxu0 %vm204_vm1, %v1613_v34  ;;  %v915_v55 = vsel %vm217_vm0, %v1982_v43, 0  ;;  %v1154_v56 = vshrl.u32 %v1667_v52, 16  ;;  %v1674_v17 = vld [vmem:[%s1940_s24 + $0x94] sm:$0xf] }
  0x25   : > { %v650_v13 = vor.u32 %v649_v37, %v646_v36  ;;  %v514_v44 = vsel %vm1974_vm4, %v509_v35, %v513_v23  ;;  %v519_v45 = vrot.slane %v518_v38, 4  ;;  %v659_v47 = vrot.slane %v657_v41, 4  ;;  %v1672_v21 = vld [vmem:[%s1940_s24 + $0x8c] sm:$0x1]  ;;  %v1872_v33 = vld [vmem:[%s1940_s24 + $0x60] sm:$0xff]  }
  0x26   : > { %v665_v49 = vrot.slane %v663_v42, 5  ;;  %v1157_v59 = vshll.u32 %v1667_v52, 16  ;;  %v1163_v60 = vshll.u32 %v1668_v53, 16  ;;  %v1167_v61 = vshrl.u32 %v1668_v53, 16  ;;  %v1676_v35 = vld [vmem:[%s1940_s24 + $0x9c] sm:$0xf] }
  0x27   : > { %v651_v48 = vrot.slane %v650_v13, 4  ;;  %v524_v50 = vsel %vm1974_vm4, %v519_v45, %v523_v32  ;;  %v660_v51 = vor.u32 %v659_v47, %v655_v40  ;;  %v1156_v0 = vrot.slane %v1154_v56, 4  ;;  %v1677_v41 = vld [vmem:[%s1940_s24 + $0xa0] sm:$0xf]  ;;  %v1873_v56 = vld [vmem:[%s1940_s24 + $0x6c] sm:$0xff]  }
  0x28   : > { %v1614_v54 = vcombine.low %v514_v44, %v524_v50  ;;  %v1159_v3 = vrot.slane %v1157_v59, 5  ;;  %v2044_v4 = vrot.slane %v1163_v60, 5  ;;  %v1169_v5 = vrot.slane %v1167_v61, 4  ;;  %v1675_v44 = vld [vmem:[%s1940_s24 + $0x98] sm:$0x1]  ;;  %v1875_v61 = vld [vmem:[%s1940_s24 + $0x84] sm:$0xff]  }
  0x29   : > { %v661_v57 = vrot.slane %v660_v51, 4  ;;  %v656_v43 = vsel %vm1974_vm4, %v651_v48, %v655_v40  ;;  %v1050_v7 = vsel %vm217_vm0, %v2007_v16, 0  ;;  %v1173_v10 = vshll.u32 %v1669_v63, 16 }
  0x2a   : > { %1785 = vmatmul.mubr.msk.bf16.vlgmr.msra.gmra.mxu1 %vm204_vm1, %v1613_v34  ;;  %1779 = vmatmul.mubr.msk.bf16.gmra.mxu0 %vm204_vm1, %v1614_v54  ;;  %v1178_v12 = vshrl.u32 %v1670_v1, 16  ;;  %v1181_v14 = vshll.u32 %v1670_v1, 16  ;;  %v1160_v18 = vor.u32 %v1159_v3, %v1156_v0  ;;  %v1170_v19 = vor.u32 %v1169_v5, %v2044_v4  ;;  %v1874_v34 = vld [vmem:[%s1940_s24 + $0x78] sm:$0xff]   ;;  %v1876_v1 = vld [vmem:[%s1940_s24 + $0x90] sm:$0xff]   ;;  %v1678_v5 = vld [vmem:[%s1940_s24 + $0xa4] sm:$0x1] }
  0x2b   : > { %1788 = vmatprep.mubr.msk.bf16.mxu1 %vm204_vm1, %v1614_v54  ;;  %1794 = vmatprep.mubr.msk.bf16.mxu0 %vm204_vm1, %v1869_v46  ;;  %v666_v62 = vsel %vm1974_vm4, %v661_v57, %v665_v49  ;;  %v1187_v20 = vshll.u32 %v1671_v8, 16  ;;  %v1191_v16 = vshrl.u32 %v1671_v8, 16  ;;  %v1202_v22 = vshrl.u32 %v1673_v15, 16 }
  0x2c   : > { %1803 = vmatpush3.bf16.msra.mxu1 %v915_v55  ;;  %v1620_v2 = vcombine.low %v656_v43, %v666_v62  ;;  %v1205_v23 = vshll.u32 %v1673_v15, 16  ;;  %v1211_v24 = vshll.u32 %v1674_v17, 16  ;;  %v1215_v25 = vshrl.u32 %v1674_v17, 16  ;;  %v1877_v17 = vld [vmem:[%s1940_s24 + $0x9c] sm:$0xff]  }
  0x2d   : > { %1852 = vmatprep.subr.msk.bf16.mxu1 %vm217_vm0, %v1679_v58  ;;  %v1175_v26 = vrot.slane %v1173_v10, 5  ;;  %v1180_v27 = vrot.slane %v1178_v12, 4  ;;  %v1183_v28 = vrot.slane %v1181_v14, 5  ;;  %v1161_v29 = vrot.slane %v1160_v18, 4 }
  0x2e   : > { %v1171_v30 = vrot.slane %v1170_v19, 4  ;;  %v1189_v31 = vrot.slane %v1187_v20, 5  ;;  %v1193_v32 = vrot.slane %v1191_v16, 4  ;;  %v1204_v36 = vrot.slane %v1202_v22, 4 }
  0x2f   : > { %v1207_v37 = vrot.slane %v1205_v23, 5  ;;  %v1213_v38 = vrot.slane %v1211_v24, 5  ;;  %v1217_v40 = vrot.slane %v1215_v25, 4  ;;  %v1276_v42 = vsel %vm217_vm0, %v1679_v58, 0  ;;  %v1879_v25 = vld [vmem:[%s1940_s24 + $0xc0] sm:$0xff]  }
  0x30   : > { %v1197_v13 = vshll.u32 %v1672_v21, 16  ;;  %v1166_v45 = vsel %vm1974_vm4, %v1161_v29, %v2044_v4  ;;  %v1176_v46 = vsel %vm1974_vm4, %v1171_v30, %v1175_v26  ;;  %v1184_v47 = vor.u32 %v1183_v28, %v1180_v27  ;;  %v1878_v21 = vld [vmem:[%s1940_s24 + $0xb4] sm:$0xff]   ;;  %v1880_v26 = vld [vmem:[%s1940_s24 + $0xcc] sm:$0xff]   ;;  %v1603_v28 = vld [vmem:[%s2222_s2] ss:$0 sm:$0xff] }
  0x31   : > { %v1194_v48 = vor.u32 %v1193_v32, %v1189_v31  ;;  %v1226_v49 = vshrl.u32 %v1676_v35, 16  ;;  %v1229_v50 = vshll.u32 %v1676_v35, 16  ;;  %v1235_v51 = vshll.u32 %v1677_v41, 16  ;;  %v1881_v27 = vld [vmem:[%s1940_s24 + $0xd8] sm:$0xff]  }
  0x32   : > { %1789 = vmatmul.mubr.msk.bf16.gmra.mxu1 %vm204_vm1, %v1620_v2  ;;  %1795 = vmatmul.mubr.msk.bf16.vlgmr.msra.gmra.mxu0 %vm204_vm1, %v1870_v6  ;;  %v1239_v52 = vshrl.u32 %v1677_v41, 16  ;;  %v1208_v53 = vor.u32 %v1207_v37, %v1204_v36  ;;  %v1218_v54 = vor.u32 %v1217_v40, %v1213_v38  ;;  %v1221_v55 = vshll.u32 %v1675_v44, 16 }
  0x33   : > { %1804 = vmatprep.mubr.msk.bf16.mxu1 %vm204_vm1, %v1870_v6  ;;  %1798 = vmatprep.mubr.msk.bf16.mxu0 %vm204_vm1, %v1871_v9  ;;  %v1680_v57 = vcombine.low %v1166_v45, %v1176_v46  ;;  %v1185_v58 = vrot.slane %v1184_v47, 4  ;;  %v1195_v59 = vrot.slane %v1194_v48, 4  ;;  %v1199_v60 = vrot.slane %v1197_v13, 5 }
  0x34   : > { %1813 = vmatpush3.bf16.msra.mxu0 %v1050_v7  ;;  %v1228_v43 = vrot.slane %v1226_v49, 4  ;;  %v1231_v62 = vrot.slane %v1229_v50, 5  ;;  %v1237_v63 = vrot.slane %v1235_v51, 5  ;;  %v1241_v0 = vrot.slane %v1239_v52, 4 }
  0x35   : > { %1853 = vmatprep.subr.msk.bf16.mxu0 %vm217_vm0, %v2054_v11  ;;  %v1209_v2 = vrot.slane %v1208_v53, 4  ;;  %v1219_v3 = vrot.slane %v1218_v54, 4  ;;  %v1223_v4 = vrot.slane %v1221_v55, 5  ;;  %v1411_v6 = vsel %vm217_vm0, %v2054_v11, 0 }
  0x36   : > { %v1190_v7 = vsel %vm1974_vm4, %v1185_v58, %v1189_v31  ;;  %v1200_v8 = vsel %vm1974_vm4, %v1195_v59, %v1199_v60  ;;  %v1242_v10 = vor.u32 %v1241_v0, %v1237_v63  ;;  %v1245_v12 = vshll.u32 %v1678_v5, 16 }
  0x37   : > { %v1214_v11 = vsel %vm1974_vm4, %v1209_v2, %v1213_v38  ;;  %v1224_v14 = vsel %vm1974_vm4, %v1219_v3, %v1223_v4  ;;  %v1681_v15 = vcombine.low %v1190_v7, %v1200_v8 }
  0x38   : > { %v1682_v18 = vcombine.low %v1214_v11, %v1224_v14  ;;  %v1243_v20 = vrot.slane %v1242_v10, 4  ;;  %v1247_v16 = vrot.slane %v1245_v12, 5 }
  0x3a   : > { %1805 = vmatmul.mubr.msk.bf16.vlgmr.msra.gmra.mxu1 %vm204_vm1, %v1871_v9  ;;  %1799 = vmatmul.mubr.msk.bf16.gmra.mxu0 %vm204_vm1, %v1872_v33  ;;  %v1232_v9 = vor.u32 %v1231_v62, %v1228_v43  ;;  %v1248_v23 = vsel %vm1974_vm4, %v1243_v20, %v1247_v16 }
  0x3b   : > { %1808 = vmatprep.mubr.msk.bf16.mxu1 %vm204_vm1, %v1872_v33  ;;  %1814 = vmatprep.mubr.msk.bf16.mxu0 %vm204_vm1, %v1874_v34 }
  0x3c   : > { %1823 = vmatpush3.bf16.msra.mxu1 %v1276_v42  ;;  %v1233_v19 = vrot.slane %v1232_v9, 4 }
  0x3e   : > { %v1238_v22 = vsel %vm1974_vm4, %v1233_v19, %v1237_v63 }
  0x3f   : > { %v1683_v24 = vcombine.low %v1238_v22, %v1248_v23 }
  0x42   : > { %1809 = vmatmul.mubr.msk.bf16.gmra.mxu1 %vm204_vm1, %v1873_v56  ;;  %1815 = vmatmul.mubr.msk.bf16.vlgmr.msra.gmra.mxu0 %vm204_vm1, %v1875_v61 }
  0x43   : > { %1824 = vmatprep.mubr.msk.bf16.mxu1 %vm204_vm1, %v1680_v57  ;;  %1818 = vmatprep.mubr.msk.bf16.mxu0 %vm204_vm1, %v1876_v1 }
  0x44   : > { %1833 = vmatpush3.bf16.msra.mxu0 %v1411_v6 }
  0x4a   : > { %1825 = vmatmul.mubr.msk.bf16.vlgmr.msra.gmra.mxu1 %vm204_vm1, %v1681_v15  ;;  %1819 = vmatmul.mubr.msk.bf16.gmra.mxu0 %vm204_vm1, %v1877_v17 }
  0x4b   : > { %1828 = vmatprep.mubr.msk.bf16.mxu1 %vm204_vm1, %v1682_v18  ;;  %1834 = vmatprep.mubr.msk.bf16.mxu0 %vm204_vm1, %v1878_v21 }
  0x52   : > { %1829 = vmatmul.mubr.msk.bf16.gmra.mxu1 %vm204_vm1, %v1683_v24  ;;  %1835 = vmatmul.mubr.msk.bf16.vlgmr.msra.gmra.mxu0 %vm204_vm1, %v1879_v25 }
  0x53   : > { %1838 = vmatprep.mubr.msk.bf16.mxu0 %vm204_vm1, %v1880_v26 }
  0x5a   : > { %1839 = vmatmul.mubr.msk.bf16.gmra.mxu0 %vm204_vm1, %v1881_v27 }
  0xd2   : > { %v1756_v29 = vpop.f32.mrf.mxu0  ;;  %v1760_v31 = vpop.f32.mrf.mxu1 }
  0xd3   : > { %v295_v30 = vadd.f32 %v1756_v29, %v1603_v28  ;;  %v299_v32 = vadd.f32 %v1760_v31, %v1603_v28 }
  0xd4   : > { %v255_v33 = vpop.f32.mrf.mxu0  ;;  %v271_v35 = vpop.f32.mrf.mxu1 }
  0xd5   : > { %303 = vst.msk [vmem:[#allocation2 + $0x10] sm:$0xff] %vm204_vm1, %v295_v30  ;;  %v293_v34 = vadd.f32 %v1603_v28, %v255_v33  ;;  %307 = vst.msk [vmem:[#allocation2 + $0x30] sm:$0xff] %vm204_vm1, %v299_v32  ;;  %v297_v36 = vadd.f32 %v1603_v28, %v271_v35 }
  0xd6   : > { %v1757_v37 = vpop.f32.mrf.mxu0  ;;  %v1761_v40 = vpop.f32.mrf.mxu1 }
  0xd7   : > { %301 = vst.msk [vmem:[#allocation2] sm:$0xff] %vm204_vm1, %v293_v34  ;;  %v296_v38 = vadd.f32 %v1757_v37, %v1603_v28  ;;  %305 = vst.msk [vmem:[#allocation2 + $0x20] sm:$0xff] %vm204_vm1, %v297_v36  ;;  %v300_v41 = vadd.f32 %v1761_v40, %v1603_v28 }
  0xd8   : > { %v258_v42 = vpop.f32.mrf.mxu0  ;;  %v274_v44 = vpop.f32.mrf.mxu1 }
  0xd9   : > { %304 = vst.msk [vmem:[#allocation2 + $0x18] sm:$0xff] %vm204_vm1, %v296_v38  ;;  %v294_v13 = vadd.f32 %v1603_v28, %v258_v42  ;;  %308 = vst.msk [vmem:[#allocation2 + $0x38] sm:$0xff] %vm204_vm1, %v300_v41  ;;  %v298_v45 = vadd.f32 %v1603_v28, %v274_v44 }
  0xda   : > { %v1766_v46 = vpop.f32.mrf.mxu1 }
  0xdb   : > { %302 = vst.msk [vmem:[#allocation2 + $0x8] sm:$0xff] %vm204_vm1, %v294_v13  ;;  %306 = vst.msk [vmem:[#allocation2 + $0x28] sm:$0xff] %vm204_vm1, %v298_v45 }
  0xdc   : > { %v389_v47 = vld [vmem:[#allocation2 + $0x10] sm:$0xff]  ;;  %v356_v49 = vpop.f32.mrf.mxu1 }
  0xdd   : > { %v397_v48 = vadd.f32 %v1766_v46, %v389_v47  ;;  %v393_v60 = vld [vmem:[#allocation2 + $0x30] sm:$0xff] }
  0xde   : > { %v387_v50 = vld [vmem:[#allocation2] sm:$0xff]  ;;  %v1767_v52 = vpop.f32.mrf.mxu1 }
  0xdf   : > { %405 = vst.msk [vmem:[#allocation2 + $0x10] sm:$0xff] %vm204_vm1, %v397_v48  ;;  %v395_v51 = vadd.f32 %v387_v50, %v356_v49  ;;  %v391_v63 = vld [vmem:[#allocation2 + $0x20] sm:$0xff] }
  0xe0   : > { %v390_v53 = vld [vmem:[#allocation2 + $0x18] sm:$0xff]  ;;  %v359_v55 = vpop.f32.mrf.mxu1 }
  0xe1   : > { %403 = vst.msk [vmem:[#allocation2] sm:$0xff] %vm204_vm1, %v395_v51  ;;  %v398_v54 = vadd.f32 %v1767_v52, %v390_v53  ;;  %v1776_v56 = vpop.f32.mrf.mxu0  ;;  %v394_v5 = vld [vmem:[#allocation2 + $0x38] sm:$0xff] }
  0xe2   : > { %v388_v57 = vld [vmem:[#allocation2 + $0x8] sm:$0xff]  ;;  %v1770_v59 = vpop.f32.mrf.mxu1 }
  0xe3   : > { %406 = vst.msk [vmem:[#allocation2 + $0x18] sm:$0xff] %vm204_vm1, %v398_v54  ;;  %v396_v58 = vadd.f32 %v388_v57, %v359_v55  ;;  %v588_v61 = vpop.f32.mrf.mxu0  ;;  %v401_v43 = vadd.f32 %v1770_v59, %v393_v60  ;;  %v392_v12 = vld [vmem:[#allocation2 + $0x28] sm:$0xff] }
  0xe4   : > { %v372_v62 = vpop.f32.mrf.mxu1 }
  0xe5   : > { %404 = vst.msk [vmem:[#allocation2 + $0x8] sm:$0xff] %vm204_vm1, %v396_v58  ;;  %409 = vst.msk [vmem:[#allocation2 + $0x30] sm:$0xff] %vm204_vm1, %v401_v43  ;;  %v1777_v1 = vpop.f32.mrf.mxu0  ;;  %v399_v2 = vadd.f32 %v391_v63, %v372_v62 }
  0xe6   : > { %v621_v0 = vld [vmem:[#allocation2 + $0x10] sm:$0xff]  ;;  %v1771_v4 = vpop.f32.mrf.mxu1 }
  0xe7   : > { %v629_v3 = vadd.f32 %v1776_v56, %v621_v0  ;;  %407 = vst.msk [vmem:[#allocation2 + $0x20] sm:$0xff] %vm204_vm1, %v399_v2  ;;  %v591_v7 = vpop.f32.mrf.mxu0  ;;  %v402_v8 = vadd.f32 %v1771_v4, %v394_v5 }
  0xe8   : > { %v619_v6 = vld [vmem:[#allocation2] sm:$0xff]  ;;  %v375_v10 = vpop.f32.mrf.mxu1 }
  0xe9   : > { %637 = vst.msk [vmem:[#allocation2 + $0x10] sm:$0xff] %vm204_vm1, %v629_v3  ;;  %v627_v9 = vadd.f32 %v619_v6, %v588_v61  ;;  %410 = vst.msk [vmem:[#allocation2 + $0x38] sm:$0xff] %vm204_vm1, %v402_v8  ;;  %v400_v14 = vadd.f32 %v392_v12, %v375_v10 }
  0xea   : > { %v622_v11 = vld [vmem:[#allocation2 + $0x18] sm:$0xff]  ;;  %v1786_v17 = vpop.f32.mrf.mxu1  ;;  %v1780_v19 = vpop.f32.mrf.mxu0 }
  0xeb   : > { %635 = vst.msk [vmem:[#allocation2] sm:$0xff] %vm204_vm1, %v627_v9  ;;  %v630_v15 = vadd.f32 %v1777_v1, %v622_v11  ;;  %408 = vst.msk [vmem:[#allocation2 + $0x28] sm:$0xff] %vm204_vm1, %v400_v14 }
  0xec   : > { %v620_v18 = vld [vmem:[#allocation2 + $0x8] sm:$0xff]  ;;  %v625_v16 = vld [vmem:[#allocation2 + $0x30] sm:$0xff]  ;;  %v712_v21 = vpop.f32.mrf.mxu1  ;;  %v604_v23 = vpop.f32.mrf.mxu0 }
  0xed   : > { %638 = vst.msk [vmem:[#allocation2 + $0x18] sm:$0xff] %vm204_vm1, %v630_v15  ;;  %v628_v20 = vadd.f32 %v620_v18, %v591_v7  ;;  %v633_v22 = vadd.f32 %v1780_v19, %v625_v16 }
  0xee   : > { %v623_v24 = vld [vmem:[#allocation2 + $0x20] sm:$0xff]  ;;  %v1787_v25 = vpop.f32.mrf.mxu1  ;;  %v1781_v27 = vpop.f32.mrf.mxu0 }
  0xef   : > { %636 = vst.msk [vmem:[#allocation2 + $0x8] sm:$0xff] %vm204_vm1, %v628_v20  ;;  %641 = vst.msk [vmem:[#allocation2 + $0x30] sm:$0xff] %vm204_vm1, %v633_v22  ;;  %v631_v26 = vadd.f32 %v623_v24, %v604_v23 }
  0xf0   : > { %v745_v39 = vld [vmem:[#allocation2 + $0x10] sm:$0xff]  ;;  %v626_v28 = vld [vmem:[#allocation2 + $0x38] sm:$0xff]  ;;  %v715_v30 = vpop.f32.mrf.mxu1  ;;  %v607_v32 = vpop.f32.mrf.mxu0 }
  0xf1   : > { %v753_v29 = vadd.f32 %v1786_v17, %v745_v39  ;;  %639 = vst.msk [vmem:[#allocation2 + $0x20] sm:$0xff] %vm204_vm1, %v631_v26  ;;  %v634_v31 = vadd.f32 %v1781_v27, %v626_v28 }
  0xf2   : > { %v743_v33 = vld [vmem:[#allocation2] sm:$0xff]  ;;  %v624_v34 = vld [vmem:[#allocation2 + $0x28] sm:$0xff]  ;;  %v1790_v36 = vpop.f32.mrf.mxu1  ;;  %v1796_v40 = vpop.f32.mrf.mxu0 }
  0xf3   : > { %761 = vst.msk [vmem:[#allocation2 + $0x10] sm:$0xff] %vm204_vm1, %v753_v29  ;;  %v751_v35 = vadd.f32 %v743_v33, %v712_v21  ;;  %642 = vst.msk [vmem:[#allocation2 + $0x38] sm:$0xff] %vm204_vm1, %v634_v31  ;;  %v632_v37 = vadd.f32 %v624_v34, %v607_v32 }
  0xf4   : > { %v746_v38 = vld [vmem:[#allocation2 + $0x18] sm:$0xff]  ;;  %v728_v42 = vpop.f32.mrf.mxu1  ;;  %v849_v44 = vpop.f32.mrf.mxu0 }
  0xf5   : > { %759 = vst.msk [vmem:[#allocation2] sm:$0xff] %vm204_vm1, %v751_v35  ;;  %v754_v41 = vadd.f32 %v1787_v25, %v746_v38  ;;  %640 = vst.msk [vmem:[#allocation2 + $0x28] sm:$0xff] %vm204_vm1, %v632_v37 }
  0xf6   : > { %v744_v13 = vld [vmem:[#allocation2 + $0x8] sm:$0xff]  ;;  %v749_v46 = vld [vmem:[#allocation2 + $0x30] sm:$0xff]  ;;  %v1791_v47 = vpop.f32.mrf.mxu1  ;;  %v1797_v49 = vpop.f32.mrf.mxu0 }
  0xf7   : > { %762 = vst.msk [vmem:[#allocation2 + $0x18] sm:$0xff] %vm204_vm1, %v754_v41  ;;  %v752_v45 = vadd.f32 %v744_v13, %v715_v30  ;;  %v757_v48 = vadd.f32 %v1790_v36, %v749_v46 }
  0xf8   : > { %v747_v50 = vld [vmem:[#allocation2 + $0x20] sm:$0xff]  ;;  %v731_v51 = vpop.f32.mrf.mxu1  ;;  %v852_v54 = vpop.f32.mrf.mxu0 }
  0xf9   : > { %760 = vst.msk [vmem:[#allocation2 + $0x8] sm:$0xff] %vm204_vm1, %v752_v45  ;;  %765 = vst.msk [vmem:[#allocation2 + $0x30] sm:$0xff] %vm204_vm1, %v757_v48  ;;  %v755_v53 = vadd.f32 %v747_v50, %v728_v42 }
  0xfa   : > { %v882_v52 = vld [vmem:[#allocation2 + $0x10] sm:$0xff]  ;;  %v750_v56 = vld [vmem:[#allocation2 + $0x38] sm:$0xff]  ;;  %v1806_v57 = vpop.f32.mrf.mxu1  ;;  %v1800_v60 = vpop.f32.mrf.mxu0 }
  0xfb   : > { %v890_v55 = vadd.f32 %v1796_v40, %v882_v52  ;;  %763 = vst.msk [vmem:[#allocation2 + $0x20] sm:$0xff] %vm204_vm1, %v755_v53  ;;  %v758_v59 = vadd.f32 %v1791_v47, %v750_v56 }
  0xfc   : > { %v880_v58 = vld [vmem:[#allocation2] sm:$0xff]  ;;  %v748_v43 = vld [vmem:[#allocation2 + $0x28] sm:$0xff]  ;;  %v951_v62 = vpop.f32.mrf.mxu1  ;;  %v865_v1 = vpop.f32.mrf.mxu0 }
  0xfd   : > { %898 = vst.msk [vmem:[#allocation2 + $0x10] sm:$0xff] %vm204_vm1, %v890_v55  ;;  %v888_v61 = vadd.f32 %v880_v58, %v849_v44  ;;  %766 = vst.msk [vmem:[#allocation2 + $0x38] sm:$0xff] %vm204_vm1, %v758_v59  ;;  %v756_v0 = vadd.f32 %v748_v43, %v731_v51 }
  0xfe   : > { %v883_v63 = vld [vmem:[#allocation2 + $0x18] sm:$0xff]  ;;  %v1807_v3 = vpop.f32.mrf.mxu1  ;;  %v1801_v5 = vpop.f32.mrf.mxu0 }
  0xff   : > { %896 = vst.msk [vmem:[#allocation2] sm:$0xff] %vm204_vm1, %v888_v61  ;;  %v891_v2 = vadd.f32 %v1797_v49, %v883_v63  ;;  %764 = vst.msk [vmem:[#allocation2 + $0x28] sm:$0xff] %vm204_vm1, %v756_v0 }
 0x100   : > { %v881_v4 = vld [vmem:[#allocation2 + $0x8] sm:$0xff]  ;;  %v886_v7 = vld [vmem:[#allocation2 + $0x30] sm:$0xff]  ;;  %v954_v8 = vpop.f32.mrf.mxu1  ;;  %v868_v10 = vpop.f32.mrf.mxu0 }
 0x101   : > { %899 = vst.msk [vmem:[#allocation2 + $0x18] sm:$0xff] %vm204_vm1, %v891_v2  ;;  %v889_v6 = vadd.f32 %v881_v4, %v852_v54  ;;  %v894_v9 = vadd.f32 %v1800_v60, %v886_v7 }
 0x102   : > { %v884_v12 = vld [vmem:[#allocation2 + $0x20] sm:$0xff]  ;;  %v1810_v11 = vpop.f32.mrf.mxu1  ;;  %v1816_v17 = vpop.f32.mrf.mxu0 }
 0x103   : > { %897 = vst.msk [vmem:[#allocation2 + $0x8] sm:$0xff] %vm204_vm1, %v889_v6  ;;  %902 = vst.msk [vmem:[#allocation2 + $0x30] sm:$0xff] %vm204_vm1, %v894_v9  ;;  %v892_v14 = vadd.f32 %v884_v12, %v865_v1 }
 0x104   : > { %v984_v15 = vld [vmem:[#allocation2 + $0x10] sm:$0xff]  ;;  %v887_v19 = vld [vmem:[#allocation2 + $0x38] sm:$0xff]  ;;  %v967_v20 = vpop.f32.mrf.mxu1  ;;  %v1086_v22 = vpop.f32.mrf.mxu0 }
 0x105   : > { %v992_v18 = vadd.f32 %v1806_v57, %v984_v15  ;;  %900 = vst.msk [vmem:[#allocation2 + $0x20] sm:$0xff] %vm204_vm1, %v892_v14  ;;  %v895_v16 = vadd.f32 %v1801_v5, %v887_v19 }
 0x106   : > { %v982_v21 = vld [vmem:[#allocation2] sm:$0xff]  ;;  %v885_v24 = vld [vmem:[#allocation2 + $0x28] sm:$0xff]  ;;  %v1811_v25 = vpop.f32.mrf.mxu1  ;;  %v1817_v39 = vpop.f32.mrf.mxu0 }
 0x107   : > { %1000 = vst.msk [vmem:[#allocation2 + $0x10] sm:$0xff] %vm204_vm1, %v992_v18  ;;  %v990_v23 = vadd.f32 %v982_v21, %v951_v62  ;;  %903 = vst.msk [vmem:[#allocation2 + $0x38] sm:$0xff] %vm204_vm1, %v895_v16  ;;  %v893_v26 = vadd.f32 %v885_v24, %v868_v10 }
 0x108   : > { %v985_v27 = vld [vmem:[#allocation2 + $0x18] sm:$0xff]  ;;  %v970_v29 = vpop.f32.mrf.mxu1  ;;  %v1089_v31 = vpop.f32.mrf.mxu0 }
 0x109   : > { %998 = vst.msk [vmem:[#allocation2] sm:$0xff] %vm204_vm1, %v990_v23  ;;  %v993_v28 = vadd.f32 %v1807_v3, %v985_v27  ;;  %901 = vst.msk [vmem:[#allocation2 + $0x28] sm:$0xff] %vm204_vm1, %v893_v26 }
 0x10a   : > { %v983_v30 = vld [vmem:[#allocation2 + $0x8] sm:$0xff]  ;;  %v988_v33 = vld [vmem:[#allocation2 + $0x30] sm:$0xff]  ;;  %v1826_v34 = vpop.f32.mrf.mxu1  ;;  %v1820_v36 = vpop.f32.mrf.mxu0 }
 0x10b   : > { %1001 = vst.msk [vmem:[#allocation2 + $0x18] sm:$0xff] %vm204_vm1, %v993_v28  ;;  %v991_v32 = vadd.f32 %v983_v30, %v954_v8  ;;  %v996_v35 = vadd.f32 %v1810_v11, %v988_v33 }
 0x10c   : > { %v986_v37 = vld [vmem:[#allocation2 + $0x20] sm:$0xff]  ;;  %v1312_v38 = vpop.f32.mrf.mxu1  ;;  %v1102_v42 = vpop.f32.mrf.mxu0 }
 0x10d   : > { %999 = vst.msk [vmem:[#allocation2 + $0x8] sm:$0xff] %vm204_vm1, %v991_v32  ;;  %1004 = vst.msk [vmem:[#allocation2 + $0x30] sm:$0xff] %vm204_vm1, %v996_v35  ;;  %v994_v40 = vadd.f32 %v986_v37, %v967_v20 }
 0x10e   : > { %v1119_v41 = vld [vmem:[#allocation2 + $0x10] sm:$0xff]  ;;  %v989_v44 = vld [vmem:[#allocation2 + $0x38] sm:$0xff]  ;;  %v1821_v47 = vpop.f32.mrf.mxu0  ;;  %v1827_v50 = vpop.f32.mrf.mxu1 }
 0x10f   : > { %v1127_v13 = vadd.f32 %v1816_v17, %v1119_v41  ;;  %1002 = vst.msk [vmem:[#allocation2 + $0x20] sm:$0xff] %vm204_vm1, %v994_v40  ;;  %v997_v45 = vadd.f32 %v1811_v25, %v989_v44 }
 0x110   : > { %v1117_v46 = vld [vmem:[#allocation2] sm:$0xff]  ;;  %v987_v49 = vld [vmem:[#allocation2 + $0x28] sm:$0xff]  ;;  %v1105_v53 = vpop.f32.mrf.mxu0  ;;  %v1315_v59 = vpop.f32.mrf.mxu1 }
 0x111   : > { %1135 = vst.msk [vmem:[#allocation2 + $0x10] sm:$0xff] %vm204_vm1, %v1127_v13  ;;  %v1125_v48 = vadd.f32 %v1117_v46, %v1086_v22  ;;  %1005 = vst.msk [vmem:[#allocation2 + $0x38] sm:$0xff] %vm204_vm1, %v997_v45  ;;  %v995_v51 = vadd.f32 %v987_v49, %v970_v29  ;;  %v1510_v22 = vlaneseq }
 0x112   : > { %v1120_v52 = vld [vmem:[#allocation2 + $0x18] sm:$0xff]  ;;  %v1836_v56 = vpop.f32.mrf.mxu0  ;;  %v1830_v2 = vpop.f32.mrf.mxu1 }
 0x113   : > { %1133 = vst.msk [vmem:[#allocation2] sm:$0xff] %vm204_vm1, %v1125_v48  ;;  %v1128_v54 = vadd.f32 %v1817_v39, %v1120_v52  ;;  %1003 = vst.msk [vmem:[#allocation2 + $0x28] sm:$0xff] %vm204_vm1, %v995_v51  ;;  %v1511_v30 = vshrl.u32 %v1510_v22, 7 }
 0x114   : > { %v1118_v55 = vld [vmem:[#allocation2 + $0x8] sm:$0xff]  ;;  %v1123_v58 = vld [vmem:[#allocation2 + $0x30] sm:$0xff]  ;;  %v1447_v43 = vpop.f32.mrf.mxu0  ;;  %v1328_v12 = vpop.f32.mrf.mxu1 }
 0x115   : > { %1136 = vst.msk [vmem:[#allocation2 + $0x18] sm:$0xff] %vm204_vm1, %v1128_v54  ;;  %v1126_v57 = vadd.f32 %v1118_v55, %v1089_v31  ;;  %v1131_v60 = vadd.f32 %v1820_v36, %v1123_v58  ;;  %vm1513_vm5 = vcmp.lt.s32.totalorder %v1511_v30, 4 }
 0x116   : > { %v1121_v61 = vld [vmem:[#allocation2 + $0x20] sm:$0xff]  ;;  %v1837_v7 = vpop.f32.mrf.mxu0  ;;  %v1831_v20 = vpop.f32.mrf.mxu1 }
 0x117   : > { %1134 = vst.msk [vmem:[#allocation2 + $0x8] sm:$0xff] %vm204_vm1, %v1126_v57  ;;  %1139 = vst.msk [vmem:[#allocation2 + $0x30] sm:$0xff] %vm204_vm1, %v1131_v60  ;;  %v1129_v62 = vadd.f32 %v1121_v61, %v1102_v42 }
 0x118   : > { %v1345_v63 = vld [vmem:[#allocation2 + $0x10] sm:$0xff]  ;;  %v1124_v1 = vld [vmem:[#allocation2 + $0x38] sm:$0xff]  ;;  %v1450_v17 = vpop.f32.mrf.mxu0  ;;  %v1331_v28 = vpop.f32.mrf.mxu1 }
 0x119   : > { %v1353_v0 = vadd.f32 %v1826_v34, %v1345_v63  ;;  %1137 = vst.msk [vmem:[#allocation2 + $0x20] sm:$0xff] %vm204_vm1, %v1129_v62  ;;  %v1132_v3 = vadd.f32 %v1821_v47, %v1124_v1 }
 0x11a   : > { %v1343_v4 = vld [vmem:[#allocation2] sm:$0xff]  ;;  %v1122_v6 = vld [vmem:[#allocation2 + $0x28] sm:$0xff]  ;;  %v1840_v25 = vpop.f32.mrf.mxu0 }
 0x11b   : > { %1361 = vst.msk [vmem:[#allocation2 + $0x10] sm:$0xff] %vm204_vm1, %v1353_v0  ;;  %v1351_v5 = vadd.f32 %v1343_v4, %v1312_v38  ;;  %1140 = vst.msk [vmem:[#allocation2 + $0x38] sm:$0xff] %vm204_vm1, %v1132_v3  ;;  %v1130_v8 = vadd.f32 %v1122_v6, %v1105_v53 }
 0x11c   : > { %v1346_v9 = vld [vmem:[#allocation2 + $0x18] sm:$0xff]  ;;  %v1463_v34 = vpop.f32.mrf.mxu0 }
 0x11d   : > { %1359 = vst.msk [vmem:[#allocation2] sm:$0xff] %vm204_vm1, %v1351_v5  ;;  %v1354_v10 = vadd.f32 %v1827_v50, %v1346_v9  ;;  %1138 = vst.msk [vmem:[#allocation2 + $0x28] sm:$0xff] %vm204_vm1, %v1130_v8 }
 0x11e   : > { %v1344_v11 = vld [vmem:[#allocation2 + $0x8] sm:$0xff]  ;;  %v1349_v15 = vld [vmem:[#allocation2 + $0x30] sm:$0xff]  ;;  %v1841_v41 = vpop.f32.mrf.mxu0 }
 0x11f   : > { %1362 = vst.msk [vmem:[#allocation2 + $0x18] sm:$0xff] %vm204_vm1, %v1354_v10  ;;  %v1352_v14 = vadd.f32 %v1344_v11, %v1315_v59  ;;  %v1357_v18 = vadd.f32 %v1830_v2, %v1349_v15 }
 0x120   : > { %v1347_v19 = vld [vmem:[#allocation2 + $0x20] sm:$0xff]  ;;  %v1466_v49 = vpop.f32.mrf.mxu0 }
 0x121   : > { %1360 = vst.msk [vmem:[#allocation2 + $0x8] sm:$0xff] %vm204_vm1, %v1352_v14  ;;  %1365 = vst.msk [vmem:[#allocation2 + $0x30] sm:$0xff] %vm204_vm1, %v1357_v18  ;;  %v1355_v16 = vadd.f32 %v1347_v19, %v1328_v12 }
 0x122   : > { %v1480_v21 = vld [vmem:[#allocation2 + $0x10] sm:$0xff]  ;;  %v1350_v24 = vld [vmem:[#allocation2 + $0x38] sm:$0xff] }
 0x123   : > { %v1488_v23 = vadd.f32 %v1836_v56, %v1480_v21  ;;  %1363 = vst.msk [vmem:[#allocation2 + $0x20] sm:$0xff] %vm204_vm1, %v1355_v16  ;;  %v1358_v26 = vadd.f32 %v1831_v20, %v1350_v24 }
 0x124   : > { %v1478_v27 = vld [vmem:[#allocation2] sm:$0xff]  ;;  %v1348_v29 = vld [vmem:[#allocation2 + $0x28] sm:$0xff] }
 0x125   : > { %1496 = vst.msk [vmem:[#allocation2 + $0x10] sm:$0xff] %vm204_vm1, %v1488_v23  ;;  %v1486_v39 = vadd.f32 %v1478_v27, %v1447_v43  ;;  %1366 = vst.msk [vmem:[#allocation2 + $0x38] sm:$0xff] %vm204_vm1, %v1358_v26  ;;  %v1356_v31 = vadd.f32 %v1348_v29, %v1331_v28 }
 0x126   : > { %v1481_v32 = vld [vmem:[#allocation2 + $0x18] sm:$0xff] }
 0x127   : > { %1494 = vst.msk [vmem:[#allocation2] sm:$0xff] %vm204_vm1, %v1486_v39  ;;  %v1489_v33 = vadd.f32 %v1837_v7, %v1481_v32  ;;  %1364 = vst.msk [vmem:[#allocation2 + $0x28] sm:$0xff] %vm204_vm1, %v1356_v31 }
 0x128   : > { %v1479_v35 = vld [vmem:[#allocation2 + $0x8] sm:$0xff]  ;;  %v1484_v37 = vld [vmem:[#allocation2 + $0x30] sm:$0xff] }
 0x129   : > { %1497 = vst.msk [vmem:[#allocation2 + $0x18] sm:$0xff] %vm204_vm1, %v1489_v33  ;;  %v1487_v36 = vadd.f32 %v1479_v35, %v1450_v17  ;;  %v1492_v38 = vadd.f32 %v1840_v25, %v1484_v37 }
 0x12a   : > { %v1482_v40 = vld [vmem:[#allocation2 + $0x20] sm:$0xff] }
 0x12b   : > { %1495 = vst.msk [vmem:[#allocation2 + $0x8] sm:$0xff] %vm204_vm1, %v1487_v36  ;;  %1500 = vst.msk [vmem:[#allocation2 + $0x30] sm:$0xff] %vm204_vm1, %v1492_v38  ;;  %v1490_v13 = vadd.f32 %v1482_v40, %v1463_v34 }
 0x12c   : > { %v1504_v42 = vld [vmem:[#allocation2 + $0x10] sm:$0xff]  ;;  %v1485_v45 = vld [vmem:[#allocation2 + $0x38] sm:$0xff] }
 0x12d   : > { %v1517_v44 = vsel %vm1513_vm5, %v1504_v42, 0.0  ;;  %1498 = vst.msk [vmem:[#allocation2 + $0x20] sm:$0xff] %vm204_vm1, %v1490_v13  ;;  %v1493_v47 = vadd.f32 %v1841_v41, %v1485_v45 }
 0x12e   : > { %1525 = vst.msk [vmem:[%s2120_s16 + $0x10] sm:$0xff] %vm204_vm1, %v1517_v44  ;;  %v1502_v46 = vld [vmem:[#allocation2] sm:$0xff]  ;;  %v1483_v50 = vld [vmem:[#allocation2 + $0x28] sm:$0xff] }
 0x12f   : > { %v1515_v48 = vsel %vm1513_vm5, %v1502_v46, 0.0  ;;  %1501 = vst.msk [vmem:[#allocation2 + $0x38] sm:$0xff] %vm204_vm1, %v1493_v47  ;;  %v1491_v51 = vadd.f32 %v1483_v50, %v1466_v49 }
 0x130   : > { %1523 = vst.msk [vmem:[%s2120_s16] sm:$0xff] %vm204_vm1, %v1515_v48 }
 0x131   : > { %1499 = vst.msk [vmem:[#allocation2 + $0x28] sm:$0xff] %vm204_vm1, %v1491_v51 }
 0x132   : > { %v1508_v52 = vld [vmem:[#allocation2 + $0x30] sm:$0xff] }
 0x133   : > { %v1521_v53 = vsel %vm1513_vm5, %v1508_v52, 0.0 }
 0x134   : > { %1529 = vst.msk [vmem:[%s2120_s16 + $0x30] sm:$0xff] %vm204_vm1, %v1521_v53  ;;  %v1506_v54 = vld [vmem:[#allocation2 + $0x20] sm:$0xff] }
 0x135   : > { %v1519_v55 = vsel %vm1513_vm5, %v1506_v54, 0.0 }
 0x136   : > { %1527 = vst.msk [vmem:[%s2120_s16 + $0x20] sm:$0xff] %vm204_vm1, %v1519_v55 }
 0x137 PF: > { %s13_s12 = sadd.s32 1, %s1888_s12  }
 0x138   : > { %p10_p5 = scmp.ge.s32.totalorder %s13_s12, 4  }
 0x13a   :  { %12 = sbr.rel (!%p10_p5) target bundleno = 1 (0x1), region = 73 }

</bundles_post_ra>
